<compile_context>
chip_gen: v7x
topology: tpu7x:2x2x1
jax: 0.10.0
libtpu: 0.0.40
codegen_flags: <defaults>
</compile_context>

<pallas_src>
import functools

import jax
import jax.numpy as jnp
from jax.experimental import pallas as pl
from jax.experimental.pallas import tpu as pltpu

LANES = 128
_VMEM_LIMIT = 32 * 1024 * 1024          # safe on v5e/v6e (128 MiB phys) and v7x (64 MiB phys)
ASPP_DILATE = (12, 24, 36)


# ----------------------------------------------------------------------------- helpers

def _rup(n, m=LANES):
    return -(-n // m) * m


def _pad_axis(a, axis, target):
    pad = target - a.shape[axis]
    if pad == 0:
        return a
    cfg = [(0, 0)] * a.ndim
    cfg[axis] = (0, pad)
    return jnp.pad(a, cfg)


def _pick_l_tile(L):
    # Full-L block for small L; 512-row tiles (double-buffered) for large L.
    return 512 if (L % 512 == 0 and L > 512) else L


def im2col_1d(x, K, stride=1, dilation=1):
    """'Same'-padded conv taps gathered into the channel dim, with output stride.
    x: (B, L, C) -> (B, ceil(L/stride), K*C).  Plain-JAX glue (data movement only)."""
    B, L, C = x.shape
    pad = dilation * (K - 1) // 2
    L_out = -(-L // stride)
    xp = jnp.pad(x, ((0, 0), (pad, pad), (0, 0)))
    cols = [xp[:, k * dilation::stride, :][:, :L_out, :] for k in range(K)]
    return jnp.concatenate(cols, axis=-1), L_out


# ----------------------------------------------------------------------------- kernels

def _matmul_bn_act_kernel(x_ref, w_ref, s_ref, b_ref, o_ref, *, relu):
    # Fused (x @ W) * scale + shift [+ ReLU]; bf16 MXU matmul, f32 accumulation.
    y = jnp.dot(x_ref[0], w_ref[...], preferred_element_type=jnp.float32)
    y = y * s_ref[...] + b_ref[...]
    if relu:
        y = jnp.maximum(y, 0.0)
    o_ref[0] = y.astype(o_ref.dtype)


def _aspp_fused_kernel(x_ref, w0_ref, wd_ref, wp_ref, wproj_ref, sbr_ref, bbr_ref,
                       sP_ref, bP_ref, o_ref, *, rates, halo, L_h):
    # All 5 ASPP branches + 1x1 projection; `high` (zero-padded by `halo`) read once.
    xp = x_ref[0]                                          # (L_h + 2*halo, C1p) bf16
    xc = xp[halo:halo + L_h, :]                            # unpadded center, reused
    wd = wd_ref[...]                                       # (nr, 3, C1p, A)
    wproj = wproj_ref[...]                                 # (nb, A, A)
    s_all = sbr_ref[...]                                   # (nb, A) f32
    b_all = bbr_ref[...]
    nb = wproj.shape[0]

    def bn_relu(acc, i):
        return jnp.maximum(acc * s_all[i:i + 1, :] + b_all[i:i + 1, :], 0.0)

    # branch 0: 1x1 conv
    y = bn_relu(jnp.dot(xc, w0_ref[...], preferred_element_type=jnp.float32), 0)
    acc = jnp.dot(y.astype(jnp.bfloat16), wproj[0], preferred_element_type=jnp.float32)

    # dilated 3-tap branches (center tap slice shared with branch 0)
    for bi, r in enumerate(rates):
        lo = xp[halo - r:halo - r + L_h, :]
        hi = xp[halo + r:halo + r + L_h, :]
        a = (jnp.dot(lo, wd[bi, 0], preferred_element_type=jnp.float32)
             + jnp.dot(xc, wd[bi, 1], preferred_element_type=jnp.float32)
             + jnp.dot(hi, wd[bi, 2], preferred_element_type=jnp.float32))
        y = bn_relu(a, bi + 1)
        acc = acc + jnp.dot(y.astype(jnp.bfloat16), wproj[bi + 1],
                            preferred_element_type=jnp.float32)

    # global-average-pool branch (padding is zero, so summing the padded block is exact)
    m = jnp.sum(xp.astype(jnp.float32), axis=0, keepdims=True) / float(L_h)    # (1, C1p)
    z = bn_relu(jnp.dot(m.astype(jnp.bfloat16), wp_ref[...],
                        preferred_element_type=jnp.float32), nb - 1)           # (1, A)
    acc = acc + jnp.dot(z.astype(jnp.bfloat16), wproj[nb - 1],
                        preferred_element_type=jnp.float32)                    # broadcast over L

    out = jnp.maximum(acc * sP_ref[...] + bP_ref[...], 0.0)
    o_ref[0] = out.astype(o_ref.dtype)


def _classifier_kernel(lp_ref, au_ref, w1l_ref, w1a_ref, s1_ref, b1_ref,
                       w2_ref, b2_ref, o_ref, *, L_out):
    # cat([low_proj, aspp_up]) -> conv3+BN+ReLU -> conv1(+bias); cat/hidden never hit HBM.
    lp = lp_ref[0]                                         # (L_out+2, LLCp) bf16
    au = au_ref[0]                                         # (L_out+2, A)    bf16
    w1l = w1l_ref[...]
    w1a = w1a_ref[...]
    acc = jnp.zeros((L_out, w1a.shape[-1]), jnp.float32)
    for k in range(3):
        acc = acc + jnp.dot(lp[k:k + L_out, :], w1l[k], preferred_element_type=jnp.float32)
        acc = acc + jnp.dot(au[k:k + L_out, :], w1a[k], preferred_element_type=jnp.float32)
    h = jnp.maximum(acc * s1_ref[...] + b1_ref[...], 0.0)
    out = jnp.dot(h.astype(jnp.bfloat16), w2_ref[...],
                  preferred_element_type=jnp.float32) + b2_ref[...]
    o_ref[0] = out.astype(o_ref.dtype)


def _lerp_kernel(lam_ref, x0_ref, x1_ref, o_ref):
    # 2-tap linear interpolation blend (VPU); the row gather is done by the wrapper.
    lam = lam_ref[...]                                     # (TL, 1) f32
    x0 = x0_ref[0].astype(jnp.float32)
    x1 = x1_ref[0].astype(jnp.float32)
    o_ref[0] = (x0 + lam * (x1 - x0)).astype(o_ref.dtype)


# ----------------------------------------------------------------------------- wrappers

def matmul_bn_act(x, w, scale, shift, *, relu=True, out_dtype=jnp.bfloat16):
    """x: (B, L, Cin) ; w: (Cin, Cout) ; scale/shift: (Cout,).
    Output channels are zero-padded to a multiple of 128 (lane-dense stores)."""
    B, L, Cin = x.shape
    Cout = w.shape[1]
    Cop = _rup(Cout)
    w_p = _pad_axis(w, 1, Cop).astype(jnp.bfloat16)
    s_p = _pad_axis(scale.reshape(1, Cout).astype(jnp.float32), 1, Cop)
    b_p = _pad_axis(shift.reshape(1, Cout).astype(jnp.float32), 1, Cop)
    x = x.astype(jnp.bfloat16)
    tl = _pick_l_tile(L)
    kernel = functools.partial(_matmul_bn_act_kernel, relu=relu)
    return pl.pallas_call(
        kernel,
        out_shape=jax.ShapeDtypeStruct((B, L, Cop), out_dtype),
        grid=(B, L // tl),
        in_specs=[
            pl.BlockSpec((1, tl, Cin), lambda b, l: (b, l, 0)),
            pl.BlockSpec((Cin, Cop), lambda b, l: (0, 0)),
            pl.BlockSpec((1, Cop), lambda b, l: (0, 0)),
            pl.BlockSpec((1, Cop), lambda b, l: (0, 0)),
        ],
        out_specs=pl.BlockSpec((1, tl, Cop), lambda b, l: (b, l, 0)),
        compiler_params=pltpu.CompilerParams(
            dimension_semantics=("parallel", "parallel"),
            vmem_limit_bytes=_VMEM_LIMIT),
    )(x, w_p, s_p, b_p)


def aspp_fused(high, p, rates):
    """Fused ASPP: 5 branches + projection in one kernel. high: (B, L8, C1p) bf16."""
    B, L8, C1p = high.shape
    A = p["aspp0"]["w"].shape[-1]
    nb = 2 + len(rates)
    halo = max(rates)
    xpad = jnp.pad(high, ((0, 0), (halo, halo), (0, 0)))
    Lp = L8 + 2 * halo

    def cinpad(w):                       # pad Cin (second-to-last axis) to C1p
        return _pad_axis(w, w.ndim - 2, C1p).astype(jnp.bfloat16)

    w0 = cinpad(p["aspp0"]["w"][0])                                          # (C1p, A)
    wd = jnp.stack([cinpad(p[f"aspp{i + 1}"]["w"]) for i in range(len(rates))])  # (nr,3,C1p,A)
    wp = cinpad(p["aspp_pool"]["w"])                                         # (C1p, A)
    wproj = p["aspp_proj"]["w"][0].reshape(nb, A, A).astype(jnp.bfloat16)    # (nb, A, A)
    sbr = jnp.stack([p["aspp0"]["s"]]
                    + [p[f"aspp{i + 1}"]["s"] for i in range(len(rates))]
                    + [p["aspp_pool"]["s"]]).astype(jnp.float32)             # (nb, A)
    bbr = jnp.stack([p["aspp0"]["b"]]
                    + [p[f"aspp{i + 1}"]["b"] for i in range(len(rates))]
                    + [p["aspp_pool"]["b"]]).astype(jnp.float32)
    sP = p["aspp_proj"]["s"].reshape(1, A).astype(jnp.float32)
    bP = p["aspp_proj"]["b"].reshape(1, A).astype(jnp.float32)

    kernel = functools.partial(_aspp_fused_kernel, rates=tuple(rates), halo=halo, L_h=L8)
    # TODO(synk): the global-pool branch needs the full L/8 extent, so this kernel keeps a
    # full-L8 block per batch step instead of L-tiling (L/8 is already the smallest map).
    return pl.pallas_call(
        kernel,
        out_shape=jax.ShapeDtypeStruct((B, L8, A), jnp.bfloat16),
        grid=(B,),
        in_specs=[
            pl.BlockSpec((1, Lp, C1p), lambda b: (b, 0, 0)),
            pl.BlockSpec((C1p, A), lambda b: (0, 0)),
            pl.BlockSpec((len(rates), 3, C1p, A), lambda b: (0, 0, 0, 0)),
            pl.BlockSpec((C1p, A), lambda b: (0, 0)),
            pl.BlockSpec((nb, A, A), lambda b: (0, 0, 0)),
            pl.BlockSpec((nb, A), lambda b: (0, 0)),
            pl.BlockSpec((nb, A), lambda b: (0, 0)),
            pl.BlockSpec((1, A), lambda b: (0, 0)),
            pl.BlockSpec((1, A), lambda b: (0, 0)),
        ],
        out_specs=pl.BlockSpec((1, L8, A), lambda b: (b, 0, 0)),
        compiler_params=pltpu.CompilerParams(
            dimension_semantics=("parallel",), vmem_limit_bytes=_VMEM_LIMIT),
    )(xpad, w0, wd, wp, wproj, sbr, bbr, sP, bP)


def classifier_fused(low_proj, aspp_up, p):
    """Fused cat2 + cls1(conv3+BN+ReLU) + cls2(conv1+bias)."""
    B, L4, LLCp = low_proj.shape
    A = aspp_up.shape[-1]
    H = p["cls1"]["w"].shape[-1]
    OF = p["cls2"]["w"].shape[-1]
    OFp = _rup(OF)
    llc = p["cls1"]["w"].shape[1] - A                      # real low-level channels

    w1 = p["cls1"]["w"]                                    # (3, llc + A, H)
    w1l = _pad_axis(w1[:, :llc, :], 1, LLCp).astype(jnp.bfloat16)
    w1a = w1[:, llc:, :].astype(jnp.bfloat16)
    s1 = p["cls1"]["s"].reshape(1, H).astype(jnp.float32)
    b1 = p["cls1"]["b"].reshape(1, H).astype(jnp.float32)
    w2 = _pad_axis(p["cls2"]["w"][0], 1, OFp).astype(jnp.bfloat16)
    b2 = _pad_axis(p["cls2"]["b"].reshape(1, OF).astype(jnp.float32), 1, OFp)

    lp_pad = jnp.pad(low_proj, ((0, 0), (1, 1), (0, 0)))
    au_pad = jnp.pad(aspp_up, ((0, 0), (1, 1), (0, 0)))

    kernel = functools.partial(_classifier_kernel, L_out=L4)
    return pl.pallas_call(
        kernel,
        out_shape=jax.ShapeDtypeStruct((B, L4, OFp), jnp.bfloat16),
        grid=(B,),
        in_specs=[
            pl.BlockSpec((1, L4 + 2, LLCp), lambda b: (b, 0, 0)),
            pl.BlockSpec((1, L4 + 2, A), lambda b: (b, 0, 0)),
            pl.BlockSpec((3, LLCp, H), lambda b: (0, 0, 0)),
            pl.BlockSpec((3, A, H), lambda b: (0, 0, 0)),
            pl.BlockSpec((1, H), lambda b: (0, 0)),
            pl.BlockSpec((1, H), lambda b: (0, 0)),
            pl.BlockSpec((H, OFp), lambda b: (0, 0)),
            pl.BlockSpec((1, OFp), lambda b: (0, 0)),
        ],
        out_specs=pl.BlockSpec((1, L4, OFp), lambda b: (b, 0, 0)),
        compiler_params=pltpu.CompilerParams(
            dimension_semantics=("parallel",), vmem_limit_bytes=_VMEM_LIMIT),
    )(lp_pad, au_pad, w1l, w1a, s1, b1, w2, b2)


def _interp_coeffs(L_in, L_out):
    # PyTorch F.interpolate(mode='linear', align_corners=False) source-index math.
    scale = L_in / L_out
    i = jnp.arange(L_out, dtype=jnp.float32)
    src = jnp.maximum((i + 0.5) * scale - 0.5, 0.0)
    i0 = jnp.clip(jnp.floor(src).astype(jnp.int32), 0, L_in - 1)
    i1 = jnp.minimum(i0 + 1, L_in - 1)
    lam = src - i0.astype(jnp.float32)
    return i0, i1, lam


def linear_interp(x, L_out, out_dtype=jnp.bfloat16):
    """Linear (align_corners=False) resize along L as a 2-tap lerp (no dense matmul)."""
    B, L_in, C = x.shape
    i0, i1, lam = _interp_coeffs(L_in, L_out)
    x0 = jnp.take(x, i0, axis=1)                           # gathers: plain-JAX glue
    x1 = jnp.take(x, i1, axis=1)
    lam2 = lam.reshape(L_out, 1)
    tl = _pick_l_tile(L_out)
    return pl.pallas_call(
        _lerp_kernel,
        out_shape=jax.ShapeDtypeStruct((B, L_out, C), out_dtype),
        grid=(B, L_out // tl),
        in_specs=[
            pl.BlockSpec((tl, 1), lambda b, l: (l, 0)),
            pl.BlockSpec((1, tl, C), lambda b, l: (b, l, 0)),
            pl.BlockSpec((1, tl, C), lambda b, l: (b, l, 0)),
        ],
        out_specs=pl.BlockSpec((1, tl, C), lambda b, l: (b, l, 0)),
        compiler_params=pltpu.CompilerParams(
            dimension_semantics=("parallel", "parallel"),
            vmem_limit_bytes=_VMEM_LIMIT),
    )(lam2, x0, x1)


# ----------------------------------------------------------------------------- params

def _fold_bn(key, cout):
    # BatchNorm1d (inference) folded into (scale, shift); synthetic gamma/beta/stats.
    kg, kb, km, kv = jax.random.split(key, 4)
    gamma = 1.0 + 0.1 * jax.random.normal(kg, (cout,), jnp.float32)
    beta = 0.1 * jax.random.normal(kb, (cout,), jnp.float32)
    mean = 0.1 * jax.random.normal(km, (cout,), jnp.float32)
    var = jax.random.uniform(kv, (cout,), jnp.float32, 0.5, 1.5)
    scale = gamma / jnp.sqrt(var + 1e-5)
    shift = beta - mean * scale
    return scale, shift


def _conv_bn(key, K, cin, cout):
    kw, kbn = jax.random.split(key)
    w = 0.1 * jax.random.normal(kw, (K, cin, cout), jnp.float32)
    s, b = _fold_bn(kbn, cout)
    return {"w": w, "s": s, "b": b}


def init_params(key, cin, backbone_channels, out_feats, aspp_out=256,
                aspp_dilate=ASPP_DILATE):
    c0, c1 = backbone_channels
    llc_prj = c0 // 2
    keys = jax.random.split(key, 12)
    p = {}
    # TODO(synk): ResNetFeatures backbone is not defined in the provided source; using a
    # synthetic 2-stage strided-conv backbone honoring the 2-feature / channel contract.
    p["bb1"] = _conv_bn(keys[0], 3, cin, c0)
    p["bb2"] = _conv_bn(keys[1], 3, c0, c1)
    p["proj"] = _conv_bn(keys[2], 1, c0, llc_prj)
    p["aspp0"] = _conv_bn(keys[3], 1, c1, aspp_out)
    for i, _r in enumerate(aspp_dilate):
        p[f"aspp{i + 1}"] = _conv_bn(keys[4 + i], 3, c1, aspp_out)
    kpw, kpbn = jax.random.split(keys[7])
    pool_w = 0.1 * jax.random.normal(kpw, (c1, aspp_out), jnp.float32)
    pool_s, pool_b = _fold_bn(kpbn, aspp_out)
    p["aspp_pool"] = {"w": pool_w, "s": pool_s, "b": pool_b}
    p["aspp_proj"] = _conv_bn(keys[8], 1, (2 + len(aspp_dilate)) * aspp_out, aspp_out)
    p["cls1"] = _conv_bn(keys[9], 3, llc_prj + aspp_out, 256)
    kcw, kcb = jax.random.split(keys[10])
    p["cls2"] = {"w": 0.1 * jax.random.normal(kcw, (1, 256, out_feats), jnp.float32),
                 "b": 0.1 * jax.random.normal(kcb, (out_feats,), jnp.float32)}
    return p


# ----------------------------------------------------------------------------- model

def deeplab_net(x, p, out_shape=None):
    """x: (B, L, C) float32 (the tensor PyTorch's forward receives before its internal
    permute(0,2,1)).  Returns (B, out_len, out_feats), matching PyTorch's output after
    its final permute(0,2,1)."""
    B, L, _ = x.shape
    out_len = out_shape if out_shape is not None else L
    out_feats = p["cls2"]["w"].shape[-1]
    x = x.astype(jnp.bfloat16)

    # --- synthetic backbone: two strided conv+BN+ReLU stages (/4 then /2) ---
    xc1, L4 = im2col_1d(x, K=3, stride=4)
    w1 = p["bb1"]["w"]
    low = matmul_bn_act(xc1, w1.reshape(-1, w1.shape[-1]), p["bb1"]["s"], p["bb1"]["b"])

    xc2, L8 = im2col_1d(low, K=3, stride=2)
    w2 = _pad_axis(p["bb2"]["w"], 1, low.shape[-1])
    high = matmul_bn_act(xc2, w2.reshape(-1, w2.shape[-1]), p["bb2"]["s"], p["bb2"]["b"])

    # --- DeepLabHeadV3Plus ---
    wpr = _pad_axis(p["proj"]["w"][0], 0, low.shape[-1])
    low_proj = matmul_bn_act(low, wpr, p["proj"]["s"], p["proj"]["b"])      # (B, L4, 128)

    aspp = aspp_fused(high, p, ASPP_DILATE)                                 # (B, L8, 256)
    # TODO(synk): nn.Dropout(0.5) treated as eval-mode identity.

    aspp_up = linear_interp(aspp, L4)                                       # (B, L4, 256)
    out_cls = classifier_fused(low_proj, aspp_up, p)                        # (B, L4, 128)

    out = linear_interp(out_cls, out_len, out_dtype=jnp.float32)            # (B, out_len, 128)
    return out[:, :, :out_feats]                                            # drop lane padding


# ----------------------------------------------------------------------------- main

if __name__ == "__main__":
    key = jax.random.PRNGKey(0)
    kx, kp = jax.random.split(key)

    B, L, Cin = 2, 32, 4
    backbone_channels = [8, 16]
    out_feats = 6

    x = jax.random.normal(kx, (B, L, Cin), jnp.float32)
    params = init_params(kp, Cin, backbone_channels, out_feats)

    y = jax.jit(deeplab_net)(x, params)
    y = jax.block_until_ready(y)
    assert y.shape == (B, L, out_feats), y.shape
    assert bool(jnp.all(jnp.isfinite(y)))
    print("KERNEL_OK")
</pallas_src>

<mosaic_0001>
module attributes {stable_mosaic.version = 11 : i64} {
  func.func @_matmul_bn_act_kernel(%arg0: i32, %arg1: i32, %arg2: memref<1x8x12xbf16, #tpu.memory_space<vmem>>, %arg3: memref<12x128xbf16, #tpu.memory_space<vmem>>, %arg4: memref<1x128xf32, #tpu.memory_space<vmem>>, %arg5: memref<1x128xf32, #tpu.memory_space<vmem>>, %arg6: memref<1x8x128xbf16, #tpu.memory_space<vmem>>) attributes {dimension_semantics = [#tpu.dimension_semantics<parallel>, #tpu.dimension_semantics<parallel>], iteration_bounds = array<i64: 2, 1>, scalar_prefetch = 0 : i64, scratch_operands = 0 : i64, tpu.core_type = #tpu.core_type<tc>, window_params = [{transform_indices = @transform_0, window_bounds = array<i64: 1, 8, 12>}, {pipeline_mode = #tpu.pipeline_mode<synchronous>, transform_indices = @transform_1, window_bounds = array<i64: 12, 128>}, {pipeline_mode = #tpu.pipeline_mode<synchronous>, transform_indices = @transform_2, window_bounds = array<i64: 1, 128>}, {pipeline_mode = #tpu.pipeline_mode<synchronous>, transform_indices = @transform_3, window_bounds = array<i64: 1, 128>}, {transform_indices = @transform_4, window_bounds = array<i64: 1, 8, 128>}]} {
    %c0 = arith.constant 0 : index
    %c0_0 = arith.constant 0 : index
    %c0_1 = arith.constant 0 : index
    %0 = vector.load %arg2[%c0, %c0_0, %c0_1] : memref<1x8x12xbf16, #tpu.memory_space<vmem>>, vector<1x8x12xbf16>
    %1 = vector.shape_cast %0 : vector<1x8x12xbf16> to vector<8x12xbf16>
    %c0_2 = arith.constant 0 : index
    %c0_3 = arith.constant 0 : index
    %2 = vector.load %arg3[%c0_2, %c0_3] : memref<12x128xbf16, #tpu.memory_space<vmem>>, vector<12x128xbf16>
    %cst = arith.constant dense<0.000000e+00> : vector<8x128xf32>
    %3 = tpu.matmul %1, %2, %cst {dimension_numbers = #tpu.dot_dimension_numbers<[1], [0], [0], [1], [0, 0, 1, 1], [], []>} : vector<8x12xbf16>, vector<12x128xbf16>, vector<8x128xf32> -> vector<8x128xf32>
    %c0_4 = arith.constant 0 : index
    %c0_5 = arith.constant 0 : index
    %4 = vector.load %arg4[%c0_4, %c0_5] : memref<1x128xf32, #tpu.memory_space<vmem>>, vector<1x128xf32>
    %5 = vector.broadcast %4 : vector<1x128xf32> to vector<8x128xf32>
    %6 = arith.mulf %3, %5 : vector<8x128xf32>
    %c0_6 = arith.constant 0 : index
    %c0_7 = arith.constant 0 : index
    %7 = vector.load %arg5[%c0_6, %c0_7] : memref<1x128xf32, #tpu.memory_space<vmem>>, vector<1x128xf32>
    %8 = vector.broadcast %7 : vector<1x128xf32> to vector<8x128xf32>
    %9 = arith.addf %6, %8 : vector<8x128xf32>
    %cst_8 = arith.constant 0.000000e+00 : f32
    %10 = vector.broadcast %cst_8 : f32 to vector<8x128xf32>
    %11 = arith.maximumf %9, %10 : vector<8x128xf32>
    %12 = arith.truncf %11 : vector<8x128xf32> to vector<8x128xbf16>
    %c0_9 = arith.constant 0 : index
    %c0_10 = arith.constant 0 : index
    %c0_11 = arith.constant 0 : index
    %13 = vector.load %arg6[%c0_9, %c0_10, %c0_11] : memref<1x8x128xbf16, #tpu.memory_space<vmem>>, vector<1x8x128xbf16>
    %14 = vector.shape_cast %13 : vector<1x8x128xbf16> to vector<8x128xbf16>
    %15 = vector.shape_cast %12 : vector<8x128xbf16> to vector<1x8x128xbf16>
    tpu.vector_store %arg6[%c0_9, %c0_10, %c0_11], %15 {strides = array<i32>} : memref<1x8x128xbf16, #tpu.memory_space<vmem>>, vector<1x8x128xbf16>,
    return
  }
  func.func @transform_0(%arg0: i32, %arg1: i32) -> (i32, i32, i32) {
    %c0_i32 = arith.constant 0 : i32
    %c0_i32_0 = arith.constant 0 : i32
    return %arg0, %arg1, %c0_i32 : i32, i32, i32
  }
  func.func @transform_1(%arg0: i32, %arg1: i32) -> (i32, i32) {
    %c0_i32 = arith.constant 0 : i32
    %c0_i32_0 = arith.constant 0 : i32
    %c0_i32_1 = arith.constant 0 : i32
    return %c0_i32, %c0_i32_0 : i32, i32
  }
  func.func @transform_2(%arg0: i32, %arg1: i32) -> (i32, i32) {
    %c0_i32 = arith.constant 0 : i32
    %c0_i32_0 = arith.constant 0 : i32
    %c0_i32_1 = arith.constant 0 : i32
    return %c0_i32, %c0_i32_0 : i32, i32
  }
  func.func @transform_3(%arg0: i32, %arg1: i32) -> (i32, i32) {
    %c0_i32 = arith.constant 0 : i32
    %c0_i32_0 = arith.constant 0 : i32
    %c0_i32_1 = arith.constant 0 : i32
    return %c0_i32, %c0_i32_0 : i32, i32
  }
  func.func @transform_4(%arg0: i32, %arg1: i32) -> (i32, i32, i32) {
    %c0_i32 = arith.constant 0 : i32
    %c0_i32_0 = arith.constant 0 : i32
    return %arg0, %arg1, %c0_i32 : i32, i32, i32
  }
}

module attributes {stable_mosaic.version = 11 : i64} {
  func.func @_matmul_bn_act_kernel(%arg0: i32, %arg1: i32, %arg2: memref<1x4x384xbf16, #tpu.memory_space<vmem>>, %arg3: memref<384x128xbf16, #tpu.memory_space<vmem>>, %arg4: memref<1x128xf32, #tpu.memory_space<vmem>>, %arg5: memref<1x128xf32, #tpu.memory_space<vmem>>, %arg6: memref<1x4x128xbf16, #tpu.memory_space<vmem>>) attributes {dimension_semantics = [#tpu.dimension_semantics<parallel>, #tpu.dimension_semantics<parallel>], iteration_bounds = array<i64: 2, 1>, scalar_prefetch = 0 : i64, scratch_operands = 0 : i64, tpu.core_type = #tpu.core_type<tc>, window_params = [{transform_indices = @transform_0, window_bounds = array<i64: 1, 4, 384>}, {pipeline_mode = #tpu.pipeline_mode<synchronous>, transform_indices = @transform_1, window_bounds = array<i64: 384, 128>}, {pipeline_mode = #tpu.pipeline_mode<synchronous>, transform_indices = @transform_2, window_bounds = array<i64: 1, 128>}, {pipeline_mode = #tpu.pipeline_mode<synchronous>, transform_indices = @transform_3, window_bounds = array<i64: 1, 128>}, {transform_indices = @transform_4, window_bounds = array<i64: 1, 4, 128>}]} {
    %c0 = arith.constant 0 : index
    %c0_0 = arith.constant 0 : index
    %c0_1 = arith.constant 0 : index
    %0 = vector.load %arg2[%c0, %c0_0, %c0_1] : memref<1x4x384xbf16, #tpu.memory_space<vmem>>, vector<1x4x384xbf16>
    %1 = vector.shape_cast %0 : vector<1x4x384xbf16> to vector<4x384xbf16>
    %c0_2 = arith.constant 0 : index
    %c0_3 = arith.constant 0 : index
    %2 = vector.load %arg3[%c0_2, %c0_3] : memref<384x128xbf16, #tpu.memory_space<vmem>>, vector<384x128xbf16>
    %cst = arith.constant dense<0.000000e+00> : vector<4x128xf32>
    %3 = tpu.matmul %1, %2, %cst {dimension_numbers = #tpu.dot_dimension_numbers<[1], [0], [0], [1], [0, 0, 1, 1], [], []>} : vector<4x384xbf16>, vector<384x128xbf16>, vector<4x128xf32> -> vector<4x128xf32>
    %c0_4 = arith.constant 0 : index
    %c0_5 = arith.constant 0 : index
    %4 = vector.load %arg4[%c0_4, %c0_5] : memref<1x128xf32, #tpu.memory_space<vmem>>, vector<1x128xf32>
    %5 = vector.broadcast %4 : vector<1x128xf32> to vector<4x128xf32>
    %6 = arith.mulf %3, %5 : vector<4x128xf32>
    %c0_6 = arith.constant 0 : index
    %c0_7 = arith.constant 0 : index
    %7 = vector.load %arg5[%c0_6, %c0_7] : memref<1x128xf32, #tpu.memory_space<vmem>>, vector<1x128xf32>
    %8 = vector.broadcast %7 : vector<1x128xf32> to vector<4x128xf32>
    %9 = arith.addf %6, %8 : vector<4x128xf32>
    %cst_8 = arith.constant 0.000000e+00 : f32
    %10 = vector.broadcast %cst_8 : f32 to vector<4x128xf32>
    %11 = arith.maximumf %9, %10 : vector<4x128xf32>
    %12 = arith.truncf %11 : vector<4x128xf32> to vector<4x128xbf16>
    %c0_9 = arith.constant 0 : index
    %c0_10 = arith.constant 0 : index
    %c0_11 = arith.constant 0 : index
    %13 = vector.load %arg6[%c0_9, %c0_10, %c0_11] : memref<1x4x128xbf16, #tpu.memory_space<vmem>>, vector<1x4x128xbf16>
    %14 = vector.shape_cast %13 : vector<1x4x128xbf16> to vector<4x128xbf16>
    %15 = vector.shape_cast %12 : vector<4x128xbf16> to vector<1x4x128xbf16>
    tpu.vector_store %arg6[%c0_9, %c0_10, %c0_11], %15 {strides = array<i32>} : memref<1x4x128xbf16, #tpu.memory_space<vmem>>, vector<1x4x128xbf16>,
    return
  }
  func.func @transform_0(%arg0: i32, %arg1: i32) -> (i32, i32, i32) {
    %c0_i32 = arith.constant 0 : i32
    %c0_i32_0 = arith.constant 0 : i32
    return %arg0, %arg1, %c0_i32 : i32, i32, i32
  }
  func.func @transform_1(%arg0: i32, %arg1: i32) -> (i32, i32) {
    %c0_i32 = arith.constant 0 : i32
    %c0_i32_0 = arith.constant 0 : i32
    %c0_i32_1 = arith.constant 0 : i32
    return %c0_i32, %c0_i32_0 : i32, i32
  }
  func.func @transform_2(%arg0: i32, %arg1: i32) -> (i32, i32) {
    %c0_i32 = arith.constant 0 : i32
    %c0_i32_0 = arith.constant 0 : i32
    %c0_i32_1 = arith.constant 0 : i32
    return %c0_i32, %c0_i32_0 : i32, i32
  }
  func.func @transform_3(%arg0: i32, %arg1: i32) -> (i32, i32) {
    %c0_i32 = arith.constant 0 : i32
    %c0_i32_0 = arith.constant 0 : i32
    %c0_i32_1 = arith.constant 0 : i32
    return %c0_i32, %c0_i32_0 : i32, i32
  }
  func.func @transform_4(%arg0: i32, %arg1: i32) -> (i32, i32, i32) {
    %c0_i32 = arith.constant 0 : i32
    %c0_i32_0 = arith.constant 0 : i32
    return %arg0, %arg1, %c0_i32 : i32, i32, i32
  }
}

module attributes {stable_mosaic.version = 11 : i64} {
  func.func @_aspp_fused_kernel(%arg0: i32, %arg1: memref<1x76x128xbf16, #tpu.memory_space<vmem>>, %arg2: memref<128x256xbf16, #tpu.memory_space<vmem>>, %arg3: memref<3x3x128x256xbf16, #tpu.memory_space<vmem>>, %arg4: memref<128x256xbf16, #tpu.memory_space<vmem>>, %arg5: memref<5x256x256xbf16, #tpu.memory_space<vmem>>, %arg6: memref<5x256xf32, #tpu.memory_space<vmem>>, %arg7: memref<5x256xf32, #tpu.memory_space<vmem>>, %arg8: memref<1x256xf32, #tpu.memory_space<vmem>>, %arg9: memref<1x256xf32, #tpu.memory_space<vmem>>, %arg10: memref<1x4x256xbf16, #tpu.memory_space<vmem>>) attributes {dimension_semantics = [#tpu.dimension_semantics<parallel>], iteration_bounds = array<i64: 2>, scalar_prefetch = 0 : i64, scratch_operands = 0 : i64, tpu.core_type = #tpu.core_type<tc>, window_params = [{transform_indices = @transform_0, window_bounds = array<i64: 1, 76, 128>}, {pipeline_mode = #tpu.pipeline_mode<synchronous>, transform_indices = @transform_1, window_bounds = array<i64: 128, 256>}, {pipeline_mode = #tpu.pipeline_mode<synchronous>, transform_indices = @transform_2, window_bounds = array<i64: 3, 3, 128, 256>}, {pipeline_mode = #tpu.pipeline_mode<synchronous>, transform_indices = @transform_3, window_bounds = array<i64: 128, 256>}, {pipeline_mode = #tpu.pipeline_mode<synchronous>, transform_indices = @transform_4, window_bounds = array<i64: 5, 256, 256>}, {pipeline_mode = #tpu.pipeline_mode<synchronous>, transform_indices = @transform_5, window_bounds = array<i64: 5, 256>}, {pipeline_mode = #tpu.pipeline_mode<synchronous>, transform_indices = @transform_6, window_bounds = array<i64: 5, 256>}, {pipeline_mode = #tpu.pipeline_mode<synchronous>, transform_indices = @transform_7, window_bounds = array<i64: 1, 256>}, {pipeline_mode = #tpu.pipeline_mode<synchronous>, transform_indices = @transform_8, window_bounds = array<i64: 1, 256>}, {transform_indices = @transform_9, window_bounds = array<i64: 1, 4, 256>}]} {
    %c0 = arith.constant 0 : index
    %c0_0 = arith.constant 0 : index
    %c0_1 = arith.constant 0 : index
    %0 = vector.load %arg1[%c0, %c0_0, %c0_1] : memref<1x76x128xbf16, #tpu.memory_space<vmem>>, vector<1x76x128xbf16>
    %1 = vector.shape_cast %0 : vector<1x76x128xbf16> to vector<76x128xbf16>
    %2 = vector.extract_strided_slice %1 {offsets = [36, 0], sizes = [4, 128], strides = [1, 1]} : vector<76x128xbf16> to vector<4x128xbf16>
    %c0_2 = arith.constant 0 : index
    %c0_3 = arith.constant 0 : index
    %c0_4 = arith.constant 0 : index
    %c0_5 = arith.constant 0 : index
    %3 = vector.load %arg3[%c0_2, %c0_3, %c0_4, %c0_5] : memref<3x3x128x256xbf16, #tpu.memory_space<vmem>>, vector<3x3x128x256xbf16>
    %c0_6 = arith.constant 0 : index
    %c0_7 = arith.constant 0 : index
    %c0_8 = arith.constant 0 : index
    %4 = vector.load %arg5[%c0_6, %c0_7, %c0_8] : memref<5x256x256xbf16, #tpu.memory_space<vmem>>, vector<5x256x256xbf16>
    %c0_9 = arith.constant 0 : index
    %c0_10 = arith.constant 0 : index
    %5 = vector.load %arg6[%c0_9, %c0_10] : memref<5x256xf32, #tpu.memory_space<vmem>>, vector<5x256xf32>
    %c0_11 = arith.constant 0 : index
    %c0_12 = arith.constant 0 : index
    %6 = vector.load %arg7[%c0_11, %c0_12] : memref<5x256xf32, #tpu.memory_space<vmem>>, vector<5x256xf32>
    %c0_13 = arith.constant 0 : index
    %c0_14 = arith.constant 0 : index
    %7 = vector.load %arg2[%c0_13, %c0_14] : memref<128x256xbf16, #tpu.memory_space<vmem>>, vector<128x256xbf16>
    %cst = arith.constant dense<0.000000e+00> : vector<4x256xf32>
    %8 = tpu.matmul %2, %7, %cst {dimension_numbers = #tpu.dot_dimension_numbers<[1], [0], [0], [1], [0, 0, 1, 1], [], []>} : vector<4x128xbf16>, vector<128x256xbf16>, vector<4x256xf32> -> vector<4x256xf32>
    %9 = vector.extract_strided_slice %5 {offsets = [0, 0], sizes = [1, 256], strides = [1, 1]} : vector<5x256xf32> to vector<1x256xf32>
    %10 = vector.broadcast %9 : vector<1x256xf32> to vector<4x256xf32>
    %11 = arith.mulf %8, %10 : vector<4x256xf32>
    %12 = vector.extract_strided_slice %6 {offsets = [0, 0], sizes = [1, 256], strides = [1, 1]} : vector<5x256xf32> to vector<1x256xf32>
    %13 = vector.broadcast %12 : vector<1x256xf32> to vector<4x256xf32>
    %14 = arith.addf %11, %13 : vector<4x256xf32>
    %cst_15 = arith.constant 0.000000e+00 : f32
    %15 = vector.broadcast %cst_15 : f32 to vector<4x256xf32>
    %16 = arith.maximumf %14, %15 : vector<4x256xf32>
    %17 = arith.truncf %16 : vector<4x256xf32> to vector<4x256xbf16>
    %18 = vector.extract_strided_slice %4 {offsets = [0, 0, 0], sizes = [1, 256, 256], strides = [1, 1, 1]} : vector<5x256x256xbf16> to vector<1x256x256xbf16>
    %19 = vector.shape_cast %18 : vector<1x256x256xbf16> to vector<256x256xbf16>
    %cst_16 = arith.constant dense<0.000000e+00> : vector<4x256xf32>
    %20 = tpu.matmul %17, %19, %cst_16 {dimension_numbers = #tpu.dot_dimension_numbers<[1], [0], [0], [1], [0, 0, 1, 1], [], []>} : vector<4x256xbf16>, vector<256x256xbf16>, vector<4x256xf32> -> vector<4x256xf32>
    %21 = vector.extract_strided_slice %1 {offsets = [24, 0], sizes = [4, 128], strides = [1, 1]} : vector<76x128xbf16> to vector<4x128xbf16>
    %22 = vector.extract_strided_slice %1 {offsets = [48, 0], sizes = [4, 128], strides = [1, 1]} : vector<76x128xbf16> to vector<4x128xbf16>
    %23 = vector.extract_strided_slice %3 {offsets = [0, 0, 0, 0], sizes = [1, 1, 128, 256], strides = [1, 1, 1, 1]} : vector<3x3x128x256xbf16> to vector<1x1x128x256xbf16>
    %24 = vector.shape_cast %23 : vector<1x1x128x256xbf16> to vector<128x256xbf16>
    %cst_17 = arith.constant dense<0.000000e+00> : vector<4x256xf32>
    %25 = tpu.matmul %21, %24, %cst_17 {dimension_numbers = #tpu.dot_dimension_numbers<[1], [0], [0], [1], [0, 0, 1, 1], [], []>} : vector<4x128xbf16>, vector<128x256xbf16>, vector<4x256xf32> -> vector<4x256xf32>
    %26 = vector.extract_strided_slice %3 {offsets = [0, 1, 0, 0], sizes = [1, 1, 128, 256], strides = [1, 1, 1, 1]} : vector<3x3x128x256xbf16> to vector<1x1x128x256xbf16>
    %27 = vector.shape_cast %26 : vector<1x1x128x256xbf16> to vector<128x256xbf16>
    %cst_18 = arith.constant dense<0.000000e+00> : vector<4x256xf32>
    %28 = tpu.matmul %2, %27, %cst_18 {dimension_numbers = #tpu.dot_dimension_numbers<[1], [0], [0], [1], [0, 0, 1, 1], [], []>} : vector<4x128xbf16>, vector<128x256xbf16>, vector<4x256xf32> -> vector<4x256xf32>
    %29 = arith.addf %25, %28 : vector<4x256xf32>
    %30 = vector.extract_strided_slice %3 {offsets = [0, 2, 0, 0], sizes = [1, 1, 128, 256], strides = [1, 1, 1, 1]} : vector<3x3x128x256xbf16> to vector<1x1x128x256xbf16>
    %31 = vector.shape_cast %30 : vector<1x1x128x256xbf16> to vector<128x256xbf16>
    %cst_19 = arith.constant dense<0.000000e+00> : vector<4x256xf32>
    %32 = tpu.matmul %22, %31, %cst_19 {dimension_numbers = #tpu.dot_dimension_numbers<[1], [0], [0], [1], [0, 0, 1, 1], [], []>} : vector<4x128xbf16>, vector<128x256xbf16>, vector<4x256xf32> -> vector<4x256xf32>
    %33 = arith.addf %29, %32 : vector<4x256xf32>
    %34 = vector.extract_strided_slice %5 {offsets = [1, 0], sizes = [1, 256], strides = [1, 1]} : vector<5x256xf32> to vector<1x256xf32>
    %35 = vector.broadcast %34 : vector<1x256xf32> to vector<4x256xf32>
    %36 = arith.mulf %33, %35 : vector<4x256xf32>
    %37 = vector.extract_strided_slice %6 {offsets = [1, 0], sizes = [1, 256], strides = [1, 1]} : vector<5x256xf32> to vector<1x256xf32>
    %38 = vector.broadcast %37 : vector<1x256xf32> to vector<4x256xf32>
    %39 = arith.addf %36, %38 : vector<4x256xf32>
    %cst_20 = arith.constant 0.000000e+00 : f32
    %40 = vector.broadcast %cst_20 : f32 to vector<4x256xf32>
    %41 = arith.maximumf %39, %40 : vector<4x256xf32>
    %42 = arith.truncf %41 : vector<4x256xf32> to vector<4x256xbf16>
    %43 = vector.extract_strided_slice %4 {offsets = [1, 0, 0], sizes = [1, 256, 256], strides = [1, 1, 1]} : vector<5x256x256xbf16> to vector<1x256x256xbf16>
    %44 = vector.shape_cast %43 : vector<1x256x256xbf16> to vector<256x256xbf16>
    %cst_21 = arith.constant dense<0.000000e+00> : vector<4x256xf32>
    %45 = tpu.matmul %42, %44, %cst_21 {dimension_numbers = #tpu.dot_dimension_numbers<[1], [0], [0], [1], [0, 0, 1, 1], [], []>} : vector<4x256xbf16>, vector<256x256xbf16>, vector<4x256xf32> -> vector<4x256xf32>
    %46 = arith.addf %20, %45 : vector<4x256xf32>
    %47 = vector.extract_strided_slice %1 {offsets = [12, 0], sizes = [4, 128], strides = [1, 1]} : vector<76x128xbf16> to vector<4x128xbf16>
    %48 = vector.extract_strided_slice %1 {offsets = [60, 0], sizes = [4, 128], strides = [1, 1]} : vector<76x128xbf16> to vector<4x128xbf16>
    %49 = vector.extract_strided_slice %3 {offsets = [1, 0, 0, 0], sizes = [1, 1, 128, 256], strides = [1, 1, 1, 1]} : vector<3x3x128x256xbf16> to vector<1x1x128x256xbf16>
    %50 = vector.shape_cast %49 : vector<1x1x128x256xbf16> to vector<128x256xbf16>
    %cst_22 = arith.constant dense<0.000000e+00> : vector<4x256xf32>
    %51 = tpu.matmul %47, %50, %cst_22 {dimension_numbers = #tpu.dot_dimension_numbers<[1], [0], [0], [1], [0, 0, 1, 1], [], []>} : vector<4x128xbf16>, vector<128x256xbf16>, vector<4x256xf32> -> vector<4x256xf32>
    %52 = vector.extract_strided_slice %3 {offsets = [1, 1, 0, 0], sizes = [1, 1, 128, 256], strides = [1, 1, 1, 1]} : vector<3x3x128x256xbf16> to vector<1x1x128x256xbf16>
    %53 = vector.shape_cast %52 : vector<1x1x128x256xbf16> to vector<128x256xbf16>
    %cst_23 = arith.constant dense<0.000000e+00> : vector<4x256xf32>
    %54 = tpu.matmul %2, %53, %cst_23 {dimension_numbers = #tpu.dot_dimension_numbers<[1], [0], [0], [1], [0, 0, 1, 1], [], []>} : vector<4x128xbf16>, vector<128x256xbf16>, vector<4x256xf32> -> vector<4x256xf32>
    %55 = arith.addf %51, %54 : vector<4x256xf32>
    %56 = vector.extract_strided_slice %3 {offsets = [1, 2, 0, 0], sizes = [1, 1, 128, 256], strides = [1, 1, 1, 1]} : vector<3x3x128x256xbf16> to vector<1x1x128x256xbf16>
    %57 = vector.shape_cast %56 : vector<1x1x128x256xbf16> to vector<128x256xbf16>
    %cst_24 = arith.constant dense<0.000000e+00> : vector<4x256xf32>
    %58 = tpu.matmul %48, %57, %cst_24 {dimension_numbers = #tpu.dot_dimension_numbers<[1], [0], [0], [1], [0, 0, 1, 1], [], []>} : vector<4x128xbf16>, vector<128x256xbf16>, vector<4x256xf32> -> vector<4x256xf32>
    %59 = arith.addf %55, %58 : vector<4x256xf32>
    %60 = vector.extract_strided_slice %5 {offsets = [2, 0], sizes = [1, 256], strides = [1, 1]} : vector<5x256xf32> to vector<1x256xf32>
    %61 = vector.broadcast %60 : vector<1x256xf32> to vector<4x256xf32>
    %62 = arith.mulf %59, %61 : vector<4x256xf32>
    %63 = vector.extract_strided_slice %6 {offsets = [2, 0], sizes = [1, 256], strides = [1, 1]} : vector<5x256xf32> to vector<1x256xf32>
    %64 = vector.broadcast %63 : vector<1x256xf32> to vector<4x256xf32>
    %65 = arith.addf %62, %64 : vector<4x256xf32>
    %cst_25 = arith.constant 0.000000e+00 : f32
    %66 = vector.broadcast %cst_25 : f32 to vector<4x256xf32>
    %67 = arith.maximumf %65, %66 : vector<4x256xf32>
    %68 = arith.truncf %67 : vector<4x256xf32> to vector<4x256xbf16>
    %69 = vector.extract_strided_slice %4 {offsets = [2, 0, 0], sizes = [1, 256, 256], strides = [1, 1, 1]} : vector<5x256x256xbf16> to vector<1x256x256xbf16>
    %70 = vector.shape_cast %69 : vector<1x256x256xbf16> to vector<256x256xbf16>
    %cst_26 = arith.constant dense<0.000000e+00> : vector<4x256xf32>
    %71 = tpu.matmul %68, %70, %cst_26 {dimension_numbers = #tpu.dot_dimension_numbers<[1], [0], [0], [1], [0, 0, 1, 1], [], []>} : vector<4x256xbf16>, vector<256x256xbf16>, vector<4x256xf32> -> vector<4x256xf32>
    %72 = arith.addf %46, %71 : vector<4x256xf32>
    %73 = vector.extract_strided_slice %1 {offsets = [0, 0], sizes = [4, 128], strides = [1, 1]} : vector<76x128xbf16> to vector<4x128xbf16>
    %74 = vector.extract_strided_slice %1 {offsets = [72, 0], sizes = [4, 128], strides = [1, 1]} : vector<76x128xbf16> to vector<4x128xbf16>
    %75 = vector.extract_strided_slice %3 {offsets = [2, 0, 0, 0], sizes = [1, 1, 128, 256], strides = [1, 1, 1, 1]} : vector<3x3x128x256xbf16> to vector<1x1x128x256xbf16>
    %76 = vector.shape_cast %75 : vector<1x1x128x256xbf16> to vector<128x256xbf16>
    %cst_27 = arith.constant dense<0.000000e+00> : vector<4x256xf32>
    %77 = tpu.matmul %73, %76, %cst_27 {dimension_numbers = #tpu.dot_dimension_numbers<[1], [0], [0], [1], [0, 0, 1, 1], [], []>} : vector<4x128xbf16>, vector<128x256xbf16>, vector<4x256xf32> -> vector<4x256xf32>
    %78 = vector.extract_strided_slice %3 {offsets = [2, 1, 0, 0], sizes = [1, 1, 128, 256], strides = [1, 1, 1, 1]} : vector<3x3x128x256xbf16> to vector<1x1x128x256xbf16>
    %79 = vector.shape_cast %78 : vector<1x1x128x256xbf16> to vector<128x256xbf16>
    %cst_28 = arith.constant dense<0.000000e+00> : vector<4x256xf32>
    %80 = tpu.matmul %2, %79, %cst_28 {dimension_numbers = #tpu.dot_dimension_numbers<[1], [0], [0], [1], [0, 0, 1, 1], [], []>} : vector<4x128xbf16>, vector<128x256xbf16>, vector<4x256xf32> -> vector<4x256xf32>
    %81 = arith.addf %77, %80 : vector<4x256xf32>
    %82 = vector.extract_strided_slice %3 {offsets = [2, 2, 0, 0], sizes = [1, 1, 128, 256], strides = [1, 1, 1, 1]} : vector<3x3x128x256xbf16> to vector<1x1x128x256xbf16>
    %83 = vector.shape_cast %82 : vector<1x1x128x256xbf16> to vector<128x256xbf16>
    %cst_29 = arith.constant dense<0.000000e+00> : vector<4x256xf32>
    %84 = tpu.matmul %74, %83, %cst_29 {dimension_numbers = #tpu.dot_dimension_numbers<[1], [0], [0], [1], [0, 0, 1, 1], [], []>} : vector<4x128xbf16>, vector<128x256xbf16>, vector<4x256xf32> -> vector<4x256xf32>
    %85 = arith.addf %81, %84 : vector<4x256xf32>
    %86 = vector.extract_strided_slice %5 {offsets = [3, 0], sizes = [1, 256], strides = [1, 1]} : vector<5x256xf32> to vector<1x256xf32>
    %87 = vector.broadcast %86 : vector<1x256xf32> to vector<4x256xf32>
    %88 = arith.mulf %85, %87 : vector<4x256xf32>
    %89 = vector.extract_strided_slice %6 {offsets = [3, 0], sizes = [1, 256], strides = [1, 1]} : vector<5x256xf32> to vector<1x256xf32>
    %90 = vector.broadcast %89 : vector<1x256xf32> to vector<4x256xf32>
    %91 = arith.addf %88, %90 : vector<4x256xf32>
    %cst_30 = arith.constant 0.000000e+00 : f32
    %92 = vector.broadcast %cst_30 : f32 to vector<4x256xf32>
    %93 = arith.maximumf %91, %92 : vector<4x256xf32>
    %94 = arith.truncf %93 : vector<4x256xf32> to vector<4x256xbf16>
    %95 = vector.extract_strided_slice %4 {offsets = [3, 0, 0], sizes = [1, 256, 256], strides = [1, 1, 1]} : vector<5x256x256xbf16> to vector<1x256x256xbf16>
    %96 = vector.shape_cast %95 : vector<1x256x256xbf16> to vector<256x256xbf16>
    %cst_31 = arith.constant dense<0.000000e+00> : vector<4x256xf32>
    %97 = tpu.matmul %94, %96, %cst_31 {dimension_numbers = #tpu.dot_dimension_numbers<[1], [0], [0], [1], [0, 0, 1, 1], [], []>} : vector<4x256xbf16>, vector<256x256xbf16>, vector<4x256xf32> -> vector<4x256xf32>
    %98 = arith.addf %72, %97 : vector<4x256xf32>
    %99 = arith.extf %1 : vector<76x128xbf16> to vector<76x128xf32>
    %cst_32 = arith.constant dense<0.000000e+00> : vector<128xf32>
    %100 = vector.multi_reduction <add>, %99, %cst_32 [0] : vector<76x128xf32> to vector<128xf32>
    %101 = vector.shape_cast %100 : vector<128xf32> to vector<1x128xf32>
    %cst_33 = arith.constant 4.000000e+00 : f32
    %102 = vector.broadcast %cst_33 : f32 to vector<1x128xf32>
    %103 = arith.divf %101, %102 : vector<1x128xf32>
    %104 = arith.truncf %103 : vector<1x128xf32> to vector<1x128xbf16>
    %c0_34 = arith.constant 0 : index
    %c0_35 = arith.constant 0 : index
    %105 = vector.load %arg4[%c0_34, %c0_35] : memref<128x256xbf16, #tpu.memory_space<vmem>>, vector<128x256xbf16>
    %cst_36 = arith.constant dense<0.000000e+00> : vector<1x256xf32>
    %106 = tpu.matmul %104, %105, %cst_36 {dimension_numbers = #tpu.dot_dimension_numbers<[1], [0], [0], [1], [0, 0, 1, 1], [], []>} : vector<1x128xbf16>, vector<128x256xbf16>, vector<1x256xf32> -> vector<1x256xf32>
    %107 = vector.extract_strided_slice %5 {offsets = [4, 0], sizes = [1, 256], strides = [1, 1]} : vector<5x256xf32> to vector<1x256xf32>
    %108 = arith.mulf %106, %107 : vector<1x256xf32>
    %109 = vector.extract_strided_slice %6 {offsets = [4, 0], sizes = [1, 256], strides = [1, 1]} : vector<5x256xf32> to vector<1x256xf32>
    %110 = arith.addf %108, %109 : vector<1x256xf32>
    %cst_37 = arith.constant 0.000000e+00 : f32
    %111 = vector.broadcast %cst_37 : f32 to vector<1x256xf32>
    %112 = arith.maximumf %110, %111 : vector<1x256xf32>
    %113 = arith.truncf %112 : vector<1x256xf32> to vector<1x256xbf16>
    %114 = vector.extract_strided_slice %4 {offsets = [4, 0, 0], sizes = [1, 256, 256], strides = [1, 1, 1]} : vector<5x256x256xbf16> to vector<1x256x256xbf16>
    %115 = vector.shape_cast %114 : vector<1x256x256xbf16> to vector<256x256xbf16>
    %cst_38 = arith.constant dense<0.000000e+00> : vector<1x256xf32>
    %116 = tpu.matmul %113, %115, %cst_38 {dimension_numbers = #tpu.dot_dimension_numbers<[1], [0], [0], [1], [0, 0, 1, 1], [], []>} : vector<1x256xbf16>, vector<256x256xbf16>, vector<1x256xf32> -> vector<1x256xf32>
    %117 = vector.broadcast %116 : vector<1x256xf32> to vector<4x256xf32>
    %118 = arith.addf %98, %117 : vector<4x256xf32>
    %c0_39 = arith.constant 0 : index
    %c0_40 = arith.constant 0 : index
    %119 = vector.load %arg8[%c0_39, %c0_40] : memref<1x256xf32, #tpu.memory_space<vmem>>, vector<1x256xf32>
    %120 = vector.broadcast %119 : vector<1x256xf32> to vector<4x256xf32>
    %121 = arith.mulf %118, %120 : vector<4x256xf32>
    %c0_41 = arith.constant 0 : index
    %c0_42 = arith.constant 0 : index
    %122 = vector.load %arg9[%c0_41, %c0_42] : memref<1x256xf32, #tpu.memory_space<vmem>>, vector<1x256xf32>
    %123 = vector.broadcast %122 : vector<1x256xf32> to vector<4x256xf32>
    %124 = arith.addf %121, %123 : vector<4x256xf32>
    %cst_43 = arith.constant 0.000000e+00 : f32
    %125 = vector.broadcast %cst_43 : f32 to vector<4x256xf32>
    %126 = arith.maximumf %124, %125 : vector<4x256xf32>
    %127 = arith.truncf %126 : vector<4x256xf32> to vector<4x256xbf16>
    %c0_44 = arith.constant 0 : index
    %c0_45 = arith.constant 0 : index
    %c0_46 = arith.constant 0 : index
    %128 = vector.load %arg10[%c0_44, %c0_45, %c0_46] : memref<1x4x256xbf16, #tpu.memory_space<vmem>>, vector<1x4x256xbf16>
    %129 = vector.shape_cast %128 : vector<1x4x256xbf16> to vector<4x256xbf16>
    %130 = vector.shape_cast %127 : vector<4x256xbf16> to vector<1x4x256xbf16>
    tpu.vector_store %arg10[%c0_44, %c0_45, %c0_46], %130 {strides = array<i32>} : memref<1x4x256xbf16, #tpu.memory_space<vmem>>, vector<1x4x256xbf16>,
    return
  }
  func.func @transform_0(%arg0: i32) -> (i32, i32, i32) {
    %c0_i32 = arith.constant 0 : i32
    %c0_i32_0 = arith.constant 0 : i32
    %c0_i32_1 = arith.constant 0 : i32
    return %arg0, %c0_i32, %c0_i32_0 : i32, i32, i32
  }
  func.func @transform_1(%arg0: i32) -> (i32, i32) {
    %c0_i32 = arith.constant 0 : i32
    %c0_i32_0 = arith.constant 0 : i32
    %c0_i32_1 = arith.constant 0 : i32
    return %c0_i32, %c0_i32_0 : i32, i32
  }
  func.func @transform_2(%arg0: i32) -> (i32, i32, i32, i32) {
    %c0_i32 = arith.constant 0 : i32
    %c0_i32_0 = arith.constant 0 : i32
    %c0_i32_1 = arith.constant 0 : i32
    %c0_i32_2 = arith.constant 0 : i32
    %c0_i32_3 = arith.constant 0 : i32
    return %c0_i32, %c0_i32_0, %c0_i32_1, %c0_i32_2 : i32, i32, i32, i32
  }
  func.func @transform_3(%arg0: i32) -> (i32, i32) {
    %c0_i32 = arith.constant 0 : i32
    %c0_i32_0 = arith.constant 0 : i32
    %c0_i32_1 = arith.constant 0 : i32
    return %c0_i32, %c0_i32_0 : i32, i32
  }
  func.func @transform_4(%arg0: i32) -> (i32, i32, i32) {
    %c0_i32 = arith.constant 0 : i32
    %c0_i32_0 = arith.constant 0 : i32
    %c0_i32_1 = arith.constant 0 : i32
    %c0_i32_2 = arith.constant 0 : i32
    return %c0_i32, %c0_i32_0, %c0_i32_1 : i32, i32, i32
  }
  func.func @transform_5(%arg0: i32) -> (i32, i32) {
    %c0_i32 = arith.constant 0 : i32
    %c0_i32_0 = arith.constant 0 : i32
    %c0_i32_1 = arith.constant 0 : i32
    return %c0_i32, %c0_i32_0 : i32, i32
  }
  func.func @transform_6(%arg0: i32) -> (i32, i32) {
    %c0_i32 = arith.constant 0 : i32
    %c0_i32_0 = arith.constant 0 : i32
    %c0_i32_1 = arith.constant 0 : i32
    return %c0_i32, %c0_i32_0 : i32, i32
  }
  func.func @transform_7(%arg0: i32) -> (i32, i32) {
    %c0_i32 = arith.constant 0 : i32
    %c0_i32_0 = arith.constant 0 : i32
    %c0_i32_1 = arith.constant 0 : i32
    return %c0_i32, %c0_i32_0 : i32, i32
  }
  func.func @transform_8(%arg0: i32) -> (i32, i32) {
    %c0_i32 = arith.constant 0 : i32
    %c0_i32_0 = arith.constant 0 : i32
    %c0_i32_1 = arith.constant 0 : i32
    return %c0_i32, %c0_i32_0 : i32, i32
  }
  func.func @transform_9(%arg0: i32) -> (i32, i32, i32) {
    %c0_i32 = arith.constant 0 : i32
    %c0_i32_0 = arith.constant 0 : i32
    %c0_i32_1 = arith.constant 0 : i32
    return %arg0, %c0_i32, %c0_i32_0 : i32, i32, i32
  }
}

module attributes {stable_mosaic.version = 11 : i64} {
  func.func @_lerp_kernel(%arg0: i32, %arg1: i32, %arg2: memref<8x1xf32, #tpu.memory_space<vmem>>, %arg3: memref<1x8x256xbf16, #tpu.memory_space<vmem>>, %arg4: memref<1x8x256xbf16, #tpu.memory_space<vmem>>, %arg5: memref<1x8x256xbf16, #tpu.memory_space<vmem>>) attributes {dimension_semantics = [#tpu.dimension_semantics<parallel>, #tpu.dimension_semantics<parallel>], iteration_bounds = array<i64: 2, 1>, scalar_prefetch = 0 : i64, scratch_operands = 0 : i64, tpu.core_type = #tpu.core_type<tc>, window_params = [{transform_indices = @transform_0, window_bounds = array<i64: 8, 1>}, {transform_indices = @transform_1, window_bounds = array<i64: 1, 8, 256>}, {transform_indices = @transform_2, window_bounds = array<i64: 1, 8, 256>}, {transform_indices = @transform_3, window_bounds = array<i64: 1, 8, 256>}]} {
    %c0 = arith.constant 0 : index
    %c0_0 = arith.constant 0 : index
    %0 = vector.load %arg2[%c0, %c0_0] : memref<8x1xf32, #tpu.memory_space<vmem>>, vector<8x1xf32>
    %c0_1 = arith.constant 0 : index
    %c0_2 = arith.constant 0 : index
    %c0_3 = arith.constant 0 : index
    %1 = vector.load %arg3[%c0_1, %c0_2, %c0_3] : memref<1x8x256xbf16, #tpu.memory_space<vmem>>, vector<1x8x256xbf16>
    %2 = vector.shape_cast %1 : vector<1x8x256xbf16> to vector<8x256xbf16>
    %3 = arith.extf %2 : vector<8x256xbf16> to vector<8x256xf32>
    %c0_4 = arith.constant 0 : index
    %c0_5 = arith.constant 0 : index
    %c0_6 = arith.constant 0 : index
    %4 = vector.load %arg4[%c0_4, %c0_5, %c0_6] : memref<1x8x256xbf16, #tpu.memory_space<vmem>>, vector<1x8x256xbf16>
    %5 = vector.shape_cast %4 : vector<1x8x256xbf16> to vector<8x256xbf16>
    %6 = arith.extf %5 : vector<8x256xbf16> to vector<8x256xf32>
    %7 = arith.subf %6, %3 : vector<8x256xf32>
    %8 = vector.broadcast %0 : vector<8x1xf32> to vector<8x256xf32>
    %9 = arith.mulf %8, %7 : vector<8x256xf32>
    %10 = arith.addf %3, %9 : vector<8x256xf32>
    %11 = arith.truncf %10 : vector<8x256xf32> to vector<8x256xbf16>
    %c0_7 = arith.constant 0 : index
    %c0_8 = arith.constant 0 : index
    %c0_9 = arith.constant 0 : index
    %12 = vector.load %arg5[%c0_7, %c0_8, %c0_9] : memref<1x8x256xbf16, #tpu.memory_space<vmem>>, vector<1x8x256xbf16>
    %13 = vector.shape_cast %12 : vector<1x8x256xbf16> to vector<8x256xbf16>
    %14 = vector.shape_cast %11 : vector<8x256xbf16> to vector<1x8x256xbf16>
    tpu.vector_store %arg5[%c0_7, %c0_8, %c0_9], %14 {strides = array<i32>} : memref<1x8x256xbf16, #tpu.memory_space<vmem>>, vector<1x8x256xbf16>,
    return
  }
  func.func @transform_0(%arg0: i32, %arg1: i32) -> (i32, i32) {
    %c0_i32 = arith.constant 0 : i32
    %c0_i32_0 = arith.constant 0 : i32
    return %arg1, %c0_i32 : i32, i32
  }
  func.func @transform_1(%arg0: i32, %arg1: i32) -> (i32, i32, i32) {
    %c0_i32 = arith.constant 0 : i32
    %c0_i32_0 = arith.constant 0 : i32
    return %arg0, %arg1, %c0_i32 : i32, i32, i32
  }
  func.func @transform_2(%arg0: i32, %arg1: i32) -> (i32, i32, i32) {
    %c0_i32 = arith.constant 0 : i32
    %c0_i32_0 = arith.constant 0 : i32
    return %arg0, %arg1, %c0_i32 : i32, i32, i32
  }
  func.func @transform_3(%arg0: i32, %arg1: i32) -> (i32, i32, i32) {
    %c0_i32 = arith.constant 0 : i32
    %c0_i32_0 = arith.constant 0 : i32
    return %arg0, %arg1, %c0_i32 : i32, i32, i32
  }
}

module attributes {stable_mosaic.version = 11 : i64} {
  func.func @_matmul_bn_act_kernel(%arg0: i32, %arg1: i32, %arg2: memref<1x8x128xbf16, #tpu.memory_space<vmem>>, %arg3: memref<128x128xbf16, #tpu.memory_space<vmem>>, %arg4: memref<1x128xf32, #tpu.memory_space<vmem>>, %arg5: memref<1x128xf32, #tpu.memory_space<vmem>>, %arg6: memref<1x8x128xbf16, #tpu.memory_space<vmem>>) attributes {dimension_semantics = [#tpu.dimension_semantics<parallel>, #tpu.dimension_semantics<parallel>], iteration_bounds = array<i64: 2, 1>, scalar_prefetch = 0 : i64, scratch_operands = 0 : i64, tpu.core_type = #tpu.core_type<tc>, window_params = [{transform_indices = @transform_0, window_bounds = array<i64: 1, 8, 128>}, {pipeline_mode = #tpu.pipeline_mode<synchronous>, transform_indices = @transform_1, window_bounds = array<i64: 128, 128>}, {pipeline_mode = #tpu.pipeline_mode<synchronous>, transform_indices = @transform_2, window_bounds = array<i64: 1, 128>}, {pipeline_mode = #tpu.pipeline_mode<synchronous>, transform_indices = @transform_3, window_bounds = array<i64: 1, 128>}, {transform_indices = @transform_4, window_bounds = array<i64: 1, 8, 128>}]} {
    %c0 = arith.constant 0 : index
    %c0_0 = arith.constant 0 : index
    %c0_1 = arith.constant 0 : index
    %0 = vector.load %arg2[%c0, %c0_0, %c0_1] : memref<1x8x128xbf16, #tpu.memory_space<vmem>>, vector<1x8x128xbf16>
    %1 = vector.shape_cast %0 : vector<1x8x128xbf16> to vector<8x128xbf16>
    %c0_2 = arith.constant 0 : index
    %c0_3 = arith.constant 0 : index
    %2 = vector.load %arg3[%c0_2, %c0_3] : memref<128x128xbf16, #tpu.memory_space<vmem>>, vector<128x128xbf16>
    %cst = arith.constant dense<0.000000e+00> : vector<8x128xf32>
    %3 = tpu.matmul %1, %2, %cst {dimension_numbers = #tpu.dot_dimension_numbers<[1], [0], [0], [1], [0, 0, 1, 1], [], []>} : vector<8x128xbf16>, vector<128x128xbf16>, vector<8x128xf32> -> vector<8x128xf32>
    %c0_4 = arith.constant 0 : index
    %c0_5 = arith.constant 0 : index
    %4 = vector.load %arg4[%c0_4, %c0_5] : memref<1x128xf32, #tpu.memory_space<vmem>>, vector<1x128xf32>
    %5 = vector.broadcast %4 : vector<1x128xf32> to vector<8x128xf32>
    %6 = arith.mulf %3, %5 : vector<8x128xf32>
    %c0_6 = arith.constant 0 : index
    %c0_7 = arith.constant 0 : index
    %7 = vector.load %arg5[%c0_6, %c0_7] : memref<1x128xf32, #tpu.memory_space<vmem>>, vector<1x128xf32>
    %8 = vector.broadcast %7 : vector<1x128xf32> to vector<8x128xf32>
    %9 = arith.addf %6, %8 : vector<8x128xf32>
    %cst_8 = arith.constant 0.000000e+00 : f32
    %10 = vector.broadcast %cst_8 : f32 to vector<8x128xf32>
    %11 = arith.maximumf %9, %10 : vector<8x128xf32>
    %12 = arith.truncf %11 : vector<8x128xf32> to vector<8x128xbf16>
    %c0_9 = arith.constant 0 : index
    %c0_10 = arith.constant 0 : index
    %c0_11 = arith.constant 0 : index
    %13 = vector.load %arg6[%c0_9, %c0_10, %c0_11] : memref<1x8x128xbf16, #tpu.memory_space<vmem>>, vector<1x8x128xbf16>
    %14 = vector.shape_cast %13 : vector<1x8x128xbf16> to vector<8x128xbf16>
    %15 = vector.shape_cast %12 : vector<8x128xbf16> to vector<1x8x128xbf16>
    tpu.vector_store %arg6[%c0_9, %c0_10, %c0_11], %15 {strides = array<i32>} : memref<1x8x128xbf16, #tpu.memory_space<vmem>>, vector<1x8x128xbf16>,
    return
  }
  func.func @transform_0(%arg0: i32, %arg1: i32) -> (i32, i32, i32) {
    %c0_i32 = arith.constant 0 : i32
    %c0_i32_0 = arith.constant 0 : i32
    return %arg0, %arg1, %c0_i32 : i32, i32, i32
  }
  func.func @transform_1(%arg0: i32, %arg1: i32) -> (i32, i32) {
    %c0_i32 = arith.constant 0 : i32
    %c0_i32_0 = arith.constant 0 : i32
    %c0_i32_1 = arith.constant 0 : i32
    return %c0_i32, %c0_i32_0 : i32, i32
  }
  func.func @transform_2(%arg0: i32, %arg1: i32) -> (i32, i32) {
    %c0_i32 = arith.constant 0 : i32
    %c0_i32_0 = arith.constant 0 : i32
    %c0_i32_1 = arith.constant 0 : i32
    return %c0_i32, %c0_i32_0 : i32, i32
  }
  func.func @transform_3(%arg0: i32, %arg1: i32) -> (i32, i32) {
    %c0_i32 = arith.constant 0 : i32
    %c0_i32_0 = arith.constant 0 : i32
    %c0_i32_1 = arith.constant 0 : i32
    return %c0_i32, %c0_i32_0 : i32, i32
  }
  func.func @transform_4(%arg0: i32, %arg1: i32) -> (i32, i32, i32) {
    %c0_i32 = arith.constant 0 : i32
    %c0_i32_0 = arith.constant 0 : i32
    return %arg0, %arg1, %c0_i32 : i32, i32, i32
  }
}

module attributes {stable_mosaic.version = 11 : i64} {
  func.func @_classifier_kernel(%arg0: i32, %arg1: memref<1x10x128xbf16, #tpu.memory_space<vmem>>, %arg2: memref<1x10x256xbf16, #tpu.memory_space<vmem>>, %arg3: memref<3x128x256xbf16, #tpu.memory_space<vmem>>, %arg4: memref<3x256x256xbf16, #tpu.memory_space<vmem>>, %arg5: memref<1x256xf32, #tpu.memory_space<vmem>>, %arg6: memref<1x256xf32, #tpu.memory_space<vmem>>, %arg7: memref<256x128xbf16, #tpu.memory_space<vmem>>, %arg8: memref<1x128xf32, #tpu.memory_space<vmem>>, %arg9: memref<1x8x128xbf16, #tpu.memory_space<vmem>>) attributes {dimension_semantics = [#tpu.dimension_semantics<parallel>], iteration_bounds = array<i64: 2>, scalar_prefetch = 0 : i64, scratch_operands = 0 : i64, tpu.core_type = #tpu.core_type<tc>, window_params = [{transform_indices = @transform_0, window_bounds = array<i64: 1, 10, 128>}, {transform_indices = @transform_1, window_bounds = array<i64: 1, 10, 256>}, {pipeline_mode = #tpu.pipeline_mode<synchronous>, transform_indices = @transform_2, window_bounds = array<i64: 3, 128, 256>}, {pipeline_mode = #tpu.pipeline_mode<synchronous>, transform_indices = @transform_3, window_bounds = array<i64: 3, 256, 256>}, {pipeline_mode = #tpu.pipeline_mode<synchronous>, transform_indices = @transform_4, window_bounds = array<i64: 1, 256>}, {pipeline_mode = #tpu.pipeline_mode<synchronous>, transform_indices = @transform_5, window_bounds = array<i64: 1, 256>}, {pipeline_mode = #tpu.pipeline_mode<synchronous>, transform_indices = @transform_6, window_bounds = array<i64: 256, 128>}, {pipeline_mode = #tpu.pipeline_mode<synchronous>, transform_indices = @transform_7, window_bounds = array<i64: 1, 128>}, {transform_indices = @transform_8, window_bounds = array<i64: 1, 8, 128>}]} {
    %c0 = arith.constant 0 : index
    %c0_0 = arith.constant 0 : index
    %c0_1 = arith.constant 0 : index
    %0 = vector.load %arg1[%c0, %c0_0, %c0_1] : memref<1x10x128xbf16, #tpu.memory_space<vmem>>, vector<1x10x128xbf16>
    %1 = vector.shape_cast %0 : vector<1x10x128xbf16> to vector<10x128xbf16>
    %c0_2 = arith.constant 0 : index
    %c0_3 = arith.constant 0 : index
    %c0_4 = arith.constant 0 : index
    %2 = vector.load %arg2[%c0_2, %c0_3, %c0_4] : memref<1x10x256xbf16, #tpu.memory_space<vmem>>, vector<1x10x256xbf16>
    %3 = vector.shape_cast %2 : vector<1x10x256xbf16> to vector<10x256xbf16>
    %c0_5 = arith.constant 0 : index
    %c0_6 = arith.constant 0 : index
    %c0_7 = arith.constant 0 : index
    %4 = vector.load %arg3[%c0_5, %c0_6, %c0_7] : memref<3x128x256xbf16, #tpu.memory_space<vmem>>, vector<3x128x256xbf16>
    %c0_8 = arith.constant 0 : index
    %c0_9 = arith.constant 0 : index
    %c0_10 = arith.constant 0 : index
    %5 = vector.load %arg4[%c0_8, %c0_9, %c0_10] : memref<3x256x256xbf16, #tpu.memory_space<vmem>>, vector<3x256x256xbf16>
    %cst = arith.constant 0.000000e+00 : f32
    %6 = vector.broadcast %cst : f32 to vector<8x256xf32>
    %7 = vector.extract_strided_slice %1 {offsets = [0, 0], sizes = [8, 128], strides = [1, 1]} : vector<10x128xbf16> to vector<8x128xbf16>
    %8 = vector.extract_strided_slice %4 {offsets = [0, 0, 0], sizes = [1, 128, 256], strides = [1, 1, 1]} : vector<3x128x256xbf16> to vector<1x128x256xbf16>
    %9 = vector.shape_cast %8 : vector<1x128x256xbf16> to vector<128x256xbf16>
    %cst_11 = arith.constant dense<0.000000e+00> : vector<8x256xf32>
    %10 = tpu.matmul %7, %9, %cst_11 {dimension_numbers = #tpu.dot_dimension_numbers<[1], [0], [0], [1], [0, 0, 1, 1], [], []>} : vector<8x128xbf16>, vector<128x256xbf16>, vector<8x256xf32> -> vector<8x256xf32>
    %11 = arith.addf %6, %10 : vector<8x256xf32>
    %12 = vector.extract_strided_slice %3 {offsets = [0, 0], sizes = [8, 256], strides = [1, 1]} : vector<10x256xbf16> to vector<8x256xbf16>
    %13 = vector.extract_strided_slice %5 {offsets = [0, 0, 0], sizes = [1, 256, 256], strides = [1, 1, 1]} : vector<3x256x256xbf16> to vector<1x256x256xbf16>
    %14 = vector.shape_cast %13 : vector<1x256x256xbf16> to vector<256x256xbf16>
    %cst_12 = arith.constant dense<0.000000e+00> : vector<8x256xf32>
    %15 = tpu.matmul %12, %14, %cst_12 {dimension_numbers = #tpu.dot_dimension_numbers<[1], [0], [0], [1], [0, 0, 1, 1], [], []>} : vector<8x256xbf16>, vector<256x256xbf16>, vector<8x256xf32> -> vector<8x256xf32>
    %16 = arith.addf %11, %15 : vector<8x256xf32>
    %17 = vector.extract_strided_slice %1 {offsets = [1, 0], sizes = [8, 128], strides = [1, 1]} : vector<10x128xbf16> to vector<8x128xbf16>
    %18 = vector.extract_strided_slice %4 {offsets = [1, 0, 0], sizes = [1, 128, 256], strides = [1, 1, 1]} : vector<3x128x256xbf16> to vector<1x128x256xbf16>
    %19 = vector.shape_cast %18 : vector<1x128x256xbf16> to vector<128x256xbf16>
    %cst_13 = arith.constant dense<0.000000e+00> : vector<8x256xf32>
    %20 = tpu.matmul %17, %19, %cst_13 {dimension_numbers = #tpu.dot_dimension_numbers<[1], [0], [0], [1], [0, 0, 1, 1], [], []>} : vector<8x128xbf16>, vector<128x256xbf16>, vector<8x256xf32> -> vector<8x256xf32>
    %21 = arith.addf %16, %20 : vector<8x256xf32>
    %22 = vector.extract_strided_slice %3 {offsets = [1, 0], sizes = [8, 256], strides = [1, 1]} : vector<10x256xbf16> to vector<8x256xbf16>
    %23 = vector.extract_strided_slice %5 {offsets = [1, 0, 0], sizes = [1, 256, 256], strides = [1, 1, 1]} : vector<3x256x256xbf16> to vector<1x256x256xbf16>
    %24 = vector.shape_cast %23 : vector<1x256x256xbf16> to vector<256x256xbf16>
    %cst_14 = arith.constant dense<0.000000e+00> : vector<8x256xf32>
    %25 = tpu.matmul %22, %24, %cst_14 {dimension_numbers = #tpu.dot_dimension_numbers<[1], [0], [0], [1], [0, 0, 1, 1], [], []>} : vector<8x256xbf16>, vector<256x256xbf16>, vector<8x256xf32> -> vector<8x256xf32>
    %26 = arith.addf %21, %25 : vector<8x256xf32>
    %27 = vector.extract_strided_slice %1 {offsets = [2, 0], sizes = [8, 128], strides = [1, 1]} : vector<10x128xbf16> to vector<8x128xbf16>
    %28 = vector.extract_strided_slice %4 {offsets = [2, 0, 0], sizes = [1, 128, 256], strides = [1, 1, 1]} : vector<3x128x256xbf16> to vector<1x128x256xbf16>
    %29 = vector.shape_cast %28 : vector<1x128x256xbf16> to vector<128x256xbf16>
    %cst_15 = arith.constant dense<0.000000e+00> : vector<8x256xf32>
    %30 = tpu.matmul %27, %29, %cst_15 {dimension_numbers = #tpu.dot_dimension_numbers<[1], [0], [0], [1], [0, 0, 1, 1], [], []>} : vector<8x128xbf16>, vector<128x256xbf16>, vector<8x256xf32> -> vector<8x256xf32>
    %31 = arith.addf %26, %30 : vector<8x256xf32>
    %32 = vector.extract_strided_slice %3 {offsets = [2, 0], sizes = [8, 256], strides = [1, 1]} : vector<10x256xbf16> to vector<8x256xbf16>
    %33 = vector.extract_strided_slice %5 {offsets = [2, 0, 0], sizes = [1, 256, 256], strides = [1, 1, 1]} : vector<3x256x256xbf16> to vector<1x256x256xbf16>
    %34 = vector.shape_cast %33 : vector<1x256x256xbf16> to vector<256x256xbf16>
    %cst_16 = arith.constant dense<0.000000e+00> : vector<8x256xf32>
    %35 = tpu.matmul %32, %34, %cst_16 {dimension_numbers = #tpu.dot_dimension_numbers<[1], [0], [0], [1], [0, 0, 1, 1], [], []>} : vector<8x256xbf16>, vector<256x256xbf16>, vector<8x256xf32> -> vector<8x256xf32>
    %36 = arith.addf %31, %35 : vector<8x256xf32>
    %c0_17 = arith.constant 0 : index
    %c0_18 = arith.constant 0 : index
    %37 = vector.load %arg5[%c0_17, %c0_18] : memref<1x256xf32, #tpu.memory_space<vmem>>, vector<1x256xf32>
    %38 = vector.broadcast %37 : vector<1x256xf32> to vector<8x256xf32>
    %39 = arith.mulf %36, %38 : vector<8x256xf32>
    %c0_19 = arith.constant 0 : index
    %c0_20 = arith.constant 0 : index
    %40 = vector.load %arg6[%c0_19, %c0_20] : memref<1x256xf32, #tpu.memory_space<vmem>>, vector<1x256xf32>
    %41 = vector.broadcast %40 : vector<1x256xf32> to vector<8x256xf32>
    %42 = arith.addf %39, %41 : vector<8x256xf32>
    %cst_21 = arith.constant 0.000000e+00 : f32
    %43 = vector.broadcast %cst_21 : f32 to vector<8x256xf32>
    %44 = arith.maximumf %42, %43 : vector<8x256xf32>
    %45 = arith.truncf %44 : vector<8x256xf32> to vector<8x256xbf16>
    %c0_22 = arith.constant 0 : index
    %c0_23 = arith.constant 0 : index
    %46 = vector.load %arg7[%c0_22, %c0_23] : memref<256x128xbf16, #tpu.memory_space<vmem>>, vector<256x128xbf16>
    %cst_24 = arith.constant dense<0.000000e+00> : vector<8x128xf32>
    %47 = tpu.matmul %45, %46, %cst_24 {dimension_numbers = #tpu.dot_dimension_numbers<[1], [0], [0], [1], [0, 0, 1, 1], [], []>} : vector<8x256xbf16>, vector<256x128xbf16>, vector<8x128xf32> -> vector<8x128xf32>
    %c0_25 = arith.constant 0 : index
    %c0_26 = arith.constant 0 : index
    %48 = vector.load %arg8[%c0_25, %c0_26] : memref<1x128xf32, #tpu.memory_space<vmem>>, vector<1x128xf32>
    %49 = vector.broadcast %48 : vector<1x128xf32> to vector<8x128xf32>
    %50 = arith.addf %47, %49 : vector<8x128xf32>
    %51 = arith.truncf %50 : vector<8x128xf32> to vector<8x128xbf16>
    %c0_27 = arith.constant 0 : index
    %c0_28 = arith.constant 0 : index
    %c0_29 = arith.constant 0 : index
    %52 = vector.load %arg9[%c0_27, %c0_28, %c0_29] : memref<1x8x128xbf16, #tpu.memory_space<vmem>>, vector<1x8x128xbf16>
    %53 = vector.shape_cast %52 : vector<1x8x128xbf16> to vector<8x128xbf16>
    %54 = vector.shape_cast %51 : vector<8x128xbf16> to vector<1x8x128xbf16>
    tpu.vector_store %arg9[%c0_27, %c0_28, %c0_29], %54 {strides = array<i32>} : memref<1x8x128xbf16, #tpu.memory_space<vmem>>, vector<1x8x128xbf16>,
    return
  }
  func.func @transform_0(%arg0: i32) -> (i32, i32, i32) {
    %c0_i32 = arith.constant 0 : i32
    %c0_i32_0 = arith.constant 0 : i32
    %c0_i32_1 = arith.constant 0 : i32
    return %arg0, %c0_i32, %c0_i32_0 : i32, i32, i32
  }
  func.func @transform_1(%arg0: i32) -> (i32, i32, i32) {
    %c0_i32 = arith.constant 0 : i32
    %c0_i32_0 = arith.constant 0 : i32
    %c0_i32_1 = arith.constant 0 : i32
    return %arg0, %c0_i32, %c0_i32_0 : i32, i32, i32
  }
  func.func @transform_2(%arg0: i32) -> (i32, i32, i32) {
    %c0_i32 = arith.constant 0 : i32
    %c0_i32_0 = arith.constant 0 : i32
    %c0_i32_1 = arith.constant 0 : i32
    %c0_i32_2 = arith.constant 0 : i32
    return %c0_i32, %c0_i32_0, %c0_i32_1 : i32, i32, i32
  }
  func.func @transform_3(%arg0: i32) -> (i32, i32, i32) {
    %c0_i32 = arith.constant 0 : i32
    %c0_i32_0 = arith.constant 0 : i32
    %c0_i32_1 = arith.constant 0 : i32
    %c0_i32_2 = arith.constant 0 : i32
    return %c0_i32, %c0_i32_0, %c0_i32_1 : i32, i32, i32
  }
  func.func @transform_4(%arg0: i32) -> (i32, i32) {
    %c0_i32 = arith.constant 0 : i32
    %c0_i32_0 = arith.constant 0 : i32
    %c0_i32_1 = arith.constant 0 : i32
    return %c0_i32, %c0_i32_0 : i32, i32
  }
  func.func @transform_5(%arg0: i32) -> (i32, i32) {
    %c0_i32 = arith.constant 0 : i32
    %c0_i32_0 = arith.constant 0 : i32
    %c0_i32_1 = arith.constant 0 : i32
    return %c0_i32, %c0_i32_0 : i32, i32
  }
  func.func @transform_6(%arg0: i32) -> (i32, i32) {
    %c0_i32 = arith.constant 0 : i32
    %c0_i32_0 = arith.constant 0 : i32
    %c0_i32_1 = arith.constant 0 : i32
    return %c0_i32, %c0_i32_0 : i32, i32
  }
  func.func @transform_7(%arg0: i32) -> (i32, i32) {
    %c0_i32 = arith.constant 0 : i32
    %c0_i32_0 = arith.constant 0 : i32
    %c0_i32_1 = arith.constant 0 : i32
    return %c0_i32, %c0_i32_0 : i32, i32
  }
  func.func @transform_8(%arg0: i32) -> (i32, i32, i32) {
    %c0_i32 = arith.constant 0 : i32
    %c0_i32_0 = arith.constant 0 : i32
    %c0_i32_1 = arith.constant 0 : i32
    return %arg0, %c0_i32, %c0_i32_0 : i32, i32, i32
  }
}

module attributes {stable_mosaic.version = 11 : i64} {
  func.func @_lerp_kernel(%arg0: i32, %arg1: i32, %arg2: memref<32x1xf32, #tpu.memory_space<vmem>>, %arg3: memref<1x32x128xbf16, #tpu.memory_space<vmem>>, %arg4: memref<1x32x128xbf16, #tpu.memory_space<vmem>>, %arg5: memref<1x32x128xf32, #tpu.memory_space<vmem>>) attributes {dimension_semantics = [#tpu.dimension_semantics<parallel>, #tpu.dimension_semantics<parallel>], iteration_bounds = array<i64: 2, 1>, scalar_prefetch = 0 : i64, scratch_operands = 0 : i64, tpu.core_type = #tpu.core_type<tc>, window_params = [{transform_indices = @transform_0, window_bounds = array<i64: 32, 1>}, {transform_indices = @transform_1, window_bounds = array<i64: 1, 32, 128>}, {transform_indices = @transform_2, window_bounds = array<i64: 1, 32, 128>}, {transform_indices = @transform_3, window_bounds = array<i64: 1, 32, 128>}]} {
    %c0 = arith.constant 0 : index
    %c0_0 = arith.constant 0 : index
    %0 = vector.load %arg2[%c0, %c0_0] : memref<32x1xf32, #tpu.memory_space<vmem>>, vector<32x1xf32>
    %c0_1 = arith.constant 0 : index
    %c0_2 = arith.constant 0 : index
    %c0_3 = arith.constant 0 : index
    %1 = vector.load %arg3[%c0_1, %c0_2, %c0_3] : memref<1x32x128xbf16, #tpu.memory_space<vmem>>, vector<1x32x128xbf16>
    %2 = vector.shape_cast %1 : vector<1x32x128xbf16> to vector<32x128xbf16>
    %3 = arith.extf %2 : vector<32x128xbf16> to vector<32x128xf32>
    %c0_4 = arith.constant 0 : index
    %c0_5 = arith.constant 0 : index
    %c0_6 = arith.constant 0 : index
    %4 = vector.load %arg4[%c0_4, %c0_5, %c0_6] : memref<1x32x128xbf16, #tpu.memory_space<vmem>>, vector<1x32x128xbf16>
    %5 = vector.shape_cast %4 : vector<1x32x128xbf16> to vector<32x128xbf16>
    %6 = arith.extf %5 : vector<32x128xbf16> to vector<32x128xf32>
    %7 = arith.subf %6, %3 : vector<32x128xf32>
    %8 = vector.broadcast %0 : vector<32x1xf32> to vector<32x128xf32>
    %9 = arith.mulf %8, %7 : vector<32x128xf32>
    %10 = arith.addf %3, %9 : vector<32x128xf32>
    %c0_7 = arith.constant 0 : index
    %c0_8 = arith.constant 0 : index
    %c0_9 = arith.constant 0 : index
    %11 = vector.load %arg5[%c0_7, %c0_8, %c0_9] : memref<1x32x128xf32, #tpu.memory_space<vmem>>, vector<1x32x128xf32>
    %12 = vector.shape_cast %11 : vector<1x32x128xf32> to vector<32x128xf32>
    %13 = vector.shape_cast %10 : vector<32x128xf32> to vector<1x32x128xf32>
    tpu.vector_store %arg5[%c0_7, %c0_8, %c0_9], %13 {strides = array<i32>} : memref<1x32x128xf32, #tpu.memory_space<vmem>>, vector<1x32x128xf32>,
    return
  }
  func.func @transform_0(%arg0: i32, %arg1: i32) -> (i32, i32) {
    %c0_i32 = arith.constant 0 : i32
    %c0_i32_0 = arith.constant 0 : i32
    return %arg1, %c0_i32 : i32, i32
  }
  func.func @transform_1(%arg0: i32, %arg1: i32) -> (i32, i32, i32) {
    %c0_i32 = arith.constant 0 : i32
    %c0_i32_0 = arith.constant 0 : i32
    return %arg0, %arg1, %c0_i32 : i32, i32, i32
  }
  func.func @transform_2(%arg0: i32, %arg1: i32) -> (i32, i32, i32) {
    %c0_i32 = arith.constant 0 : i32
    %c0_i32_0 = arith.constant 0 : i32
    return %arg0, %arg1, %c0_i32 : i32, i32, i32
  }
  func.func @transform_3(%arg0: i32, %arg1: i32) -> (i32, i32, i32) {
    %c0_i32 = arith.constant 0 : i32
    %c0_i32_0 = arith.constant 0 : i32
    return %arg0, %arg1, %c0_i32 : i32, i32, i32
  }
}

</mosaic_0001>

<bundles_post_ra>
// kernel: deeplab_net.7
= control target key start
LH: loop header
LB: loop body
LE: loop exit
PB: predicated region body
PF: predicated region fallthrough
CT: control target
= control target key end

     0   :  { %s473_s15 = smov 0   ;;  %s475_s16 = smov 0   ;;  %s515_s0 = inlined_call_operand.vmem [shape: bf16[2,8,12], index: 0, kind: input, shape index: {}]   ;;  %s516_s1 = inlined_call_operand.vmem [shape: bf16[12,128], index: 1, kind: input, shape index: {}]   ;;  %s517_s2 = inlined_call_operand.vmem [shape: f32[1,128], index: 2, kind: input, shape index: {}]   ;;  %s518_s3 = inlined_call_operand.vmem [shape: f32[1,128], index: 3, kind: input, shape index: {}]   ;;  %s519_s4 = inlined_call_operand.vmem [shape: bf16[2,8,128], index: 4, kind: output, shape index: {}]  }
   0x1   :  { %s477_s17 = smov 0  }
   0x2 LB: > { %s26_s18 = sadd.s32 1, %s440_s16  ;;  %p378_p0 = scmp.ge.s32.totalorder %s444_s17, 1  ;;  %s444_s17 = sphi %s477_s17, %s14_s17   ;;  %s440_s16 = sphi %s475_s16, %s521_s16   ;;  %s436_s15 = sphi %s473_s15, %s520_s15  }
   0x3   : > { %p28_p1 = scmp.ge.s32.totalorder %s26_s18, 2  ;;  %p180_p2 = scmp.lt.s32.totalorder %s444_s17, 3 }
   0x5   : > { %s523_s18 = smov (%p28_p1, %s26_s18), 0  ;;  %p181_p3 = pnand %p378_p0, %p180_p2 }
   0x6   : > { %vm237_vm0 = vcmask (!%p181_p3), 1045504   ;;  %v446_v0 = vmov (!%p181_p3), 0.0   ;;  %v421_v1 = vld [vmem:[%s516_s1] sm:$0x3f] (!%p181_p3)   ;;  %p210_p4 = scmp.lt.s32.totalorder (!%p181_p3), %s436_s15, 1  ;;  %vm447_vm1 = vmmov (!%p181_p3), 0  }
   0x7   : > { %184 = sbr.rel (%p181_p3) target bundleno = 239 (0xef), region = 36  ;;  %389 = vmatprep.subr.bf16.mxu0 (!%p181_p3), %v446_v0  ;;  %391 = vmatprep.mubr.msk.bf16.mxu0 (!%p181_p3), %vm447_vm1, %v446_v0  ;;  %v239_v2 = vsel (!%p181_p3), %vm237_vm0, %v421_v1, 0  ;;  %vm233_vm2 = vcmask (!%p181_p3), 97280   ;;  %v383_v4 = vld [vmem:[%s517_s2] ss:$0 sm:$0xff] (!%p181_p3) }
   0x8   : > { %390 = vmatpush3.bf16.msra.mxu0 (!%p181_p3), %v239_v2  ;;  %v384_v6 = vld [vmem:[%s518_s3] ss:$0 sm:$0xff] (!%p181_p3) }
   0xe   : > { %s525_s15 = smov (!%p210_p4, %s436_s15), 1 }
   0xf   : > { %s379_s21 = sshll.u32 %s525_s15, 2 }
  0x10   : > { %s216_s24 = scalar_lea.vmem %s515_s0, %s379_s21  ;;  %s223_s5 = scalar_lea.vmem %s519_s4, %s379_s21 }
  0x11   : > { %v225_v3 = vld [vmem:[%s216_s24] sm:$0xf] }
  0x12   : > { %392 = vmatmul.mubr.msk.bf16.vlgmr.msra.gmra.mrb[0].mxu0 %vm233_vm2, %v225_v3 }
  0xe5   : > { %v275_v5 = vpop.f32.mrb[0].mxu0 }
  0xe6   : > { %v288_v7 = vmul.f32 %v383_v4, %v275_v5  ;;  %v393_v8 = vpop.f32.mrb[1].mxu0 }
  0xe7   : > { %v278_v9 = vpop.f32.mrb[2].mxu0 }
  0xe8   : > { %v296_v10 = vadd.f32 %v384_v6, %v288_v7  ;;  %v394_v11 = vpop.f32.mrb[3].mxu0 }
  0xea   : > { %v297_v12 = vmax.f32 %v296_v10, 0.0 }
  0xec   : > { %v298_v13 = vpack.c.bf16 %v297_v12, %v297_v12 }
  0xee   : > { %299 = vst [vmem:[%s223_s5] sm:$0xf] %v298_v13 }
  0xef PF: > { %s14_s17 = sadd.s32 1, %s444_s17   ;;  %s520_s15 = smov %s440_s16 }
  0xf0   : > { %p11_p5 = scmp.ge.s32.totalorder %s14_s17, 4   ;;  %s521_s16 = smov %s523_s18 }
  0xf2   :  { %13 = sbr.rel (!%p11_p5) target bundleno = 2 (0x2), region = 66 }

// kernel: deeplab_net.8
= control target key start
LH: loop header
LB: loop body
LE: loop exit
PB: predicated region body
PF: predicated region fallthrough
CT: control target
= control target key end

     0   :  { %s814_s15 = smov 0   ;;  %s816_s16 = smov 0   ;;  %s942_s0 = inlined_call_operand.vmem [shape: bf16[2,4,384], index: 0, kind: input, shape index: {}]   ;;  %s943_s1 = inlined_call_operand.vmem [shape: bf16[384,128], index: 1, kind: input, shape index: {}]   ;;  %s944_s2 = inlined_call_operand.vmem [shape: f32[1,128], index: 2, kind: input, shape index: {}]   ;;  %s945_s3 = inlined_call_operand.vmem [shape: f32[1,128], index: 3, kind: input, shape index: {}]   ;;  %s946_s4 = inlined_call_operand.vmem [shape: bf16[2,4,128], index: 4, kind: output, shape index: {}]  }
   0x1   :  { %s818_s17 = smov 0  }
   0x2 LB: > { %s26_s18 = sadd.s32 1, %s780_s16  ;;  %p627_p0 = scmp.ge.s32.totalorder %s784_s17, 1  ;;  %s784_s17 = sphi %s818_s17, %s14_s17   ;;  %s780_s16 = sphi %s816_s16, %s948_s16   ;;  %s776_s15 = sphi %s814_s15, %s947_s15  }
   0x3   : > { %p28_p1 = scmp.ge.s32.totalorder %s26_s18, 2  ;;  %p182_p2 = scmp.lt.s32.totalorder %s784_s17, 3 }
   0x5   : > { %s950_s18 = smov (%p28_p1, %s26_s18), 0  ;;  %p183_p3 = pnand %p627_p0, %p182_p2 }
   0x6   : > { %v737_v0 = vld [vmem:[%s943_s1 + $0x40] sm:$0xff] (!%p183_p3)   ;;  %v786_v1 = vmov (!%p183_p3), 0.0   ;;  %v740_v4 = vld [vmem:[%s943_s1 + $0x48] sm:$0xff] (!%p183_p3)   ;;  %v743_v7 = vld [vmem:[%s943_s1 + $0x50] sm:$0xff] (!%p183_p3)   ;;  %vm787_vm0 = vmmov (!%p183_p3), 0   ;;  %p214_p4 = scmp.lt.s32.totalorder (!%p183_p3), %s776_s15, 1  ;;  %v285_v20 = vlaneseq (!%p183_p3) }
   0x7   : > { %186 = sbr.rel (%p183_p3) target bundleno = 265 (0x109), region = 36  ;;  %689 = vmatprep.subr.bf16.mxu1 (!%p183_p3), %v786_v1  ;;  %v738_v2 = vld [vmem:[%s943_s1] sm:$0xff] (!%p183_p3)   ;;  %658 = vmatprep.subr.bf16.mxu0 (!%p183_p3), %v737_v0  ;;  %v741_v5 = vld [vmem:[%s943_s1 + $0x8] sm:$0xff] (!%p183_p3)   ;;  %v744_v8 = vld [vmem:[%s943_s1 + $0x10] sm:$0xff] (!%p183_p3)   ;;  %v788_v25 = vmov (!%p183_p3), 1983009808  }
   0x8   : > { %v739_v3 = vld [vmem:[%s943_s1 + $0x80] sm:$0xff] (!%p183_p3)   ;;  %659 = vmatpush3.bf16.msra.mxu0 (!%p183_p3), %v738_v2  ;;  %v742_v6 = vld [vmem:[%s943_s1 + $0x88] sm:$0xff] (!%p183_p3)   ;;  %705 = vmatprep.mubr.msk.bf16.mxu1 (!%p183_p3), %vm787_vm0, %v786_v1  ;;  %v745_v9 = vld [vmem:[%s943_s1 + $0x90] sm:$0xff] (!%p183_p3)   ;;  %v283_v26 = vunpack.c.l.s4 (!%p183_p3), %v788_v25  ;;  %v286_v27 = vshrl.u32 (!%p183_p3), %v285_v20, 7 }
   0x9   : > { %690 = vmatpush3.bf16.msra.mxu1 (!%p183_p3), %v739_v3  ;;  %660 = vmatprep.subr.bf16.mxu0 (!%p183_p3), %v740_v4  ;;  %v746_v10 = vld [vmem:[%s943_s1 + $0x58] sm:$0xff] (!%p183_p3)   ;;  %v749_v13 = vld [vmem:[%s943_s1 + $0x60] sm:$0xff] (!%p183_p3)   ;;  %v752_v16 = vld [vmem:[%s943_s1 + $0x68] sm:$0xff] (!%p183_p3)  }
   0xa   : > { %691 = vmatprep.subr.bf16.mxu1 (!%p183_p3), %v786_v1  ;;  %v747_v11 = vld [vmem:[%s943_s1 + $0x18] sm:$0xff] (!%p183_p3)   ;;  %v750_v14 = vld [vmem:[%s943_s1 + $0x20] sm:$0xff] (!%p183_p3)   ;;  %v753_v17 = vld [vmem:[%s943_s1 + $0x28] sm:$0xff] (!%p183_p3)   ;;  %v284_v30 = vunpack.c.0.s8 (!%p183_p3), %v283_v26 }
   0xb   : > { %v748_v12 = vld [vmem:[%s943_s1 + $0x98] sm:$0xff] (!%p183_p3)   ;;  %v751_v15 = vld [vmem:[%s943_s1 + $0xa0] sm:$0xff] (!%p183_p3)   ;;  %v754_v18 = vld [vmem:[%s943_s1 + $0xa8] sm:$0xff] (!%p183_p3)  }
   0xc   : > { %661 = vmatpush3.bf16.msra.mxu0 (!%p183_p3), %v741_v5  ;;  %v755_v19 = vld [vmem:[%s943_s1 + $0x70] sm:$0xff] (!%p183_p3)   ;;  %v758_v23 = vld [vmem:[%s943_s1 + $0x78] sm:$0xff] (!%p183_p3)   ;;  %v287_v32 = vsub.s32 (!%p183_p3), %v284_v30, %v286_v27  ;;  %v654_v44 = vld [vmem:[%s944_s2] ss:$0 sm:$0xff] (!%p183_p3) }
   0xd   : > { %692 = vmatpush3.bf16.msra.mxu1 (!%p183_p3), %v742_v6  ;;  %662 = vmatprep.subr.bf16.mxu0 (!%p183_p3), %v743_v7  ;;  %v756_v21 = vld [vmem:[%s943_s1 + $0x30] sm:$0xff] (!%p183_p3)   ;;  %v759_v28 = vld [vmem:[%s943_s1 + $0x38] sm:$0xff] (!%p183_p3)   ;;  %v655_v47 = vld [vmem:[%s945_s3] ss:$0 sm:$0xff] (!%p183_p3) }
   0xe   : > { %693 = vmatprep.subr.bf16.mxu1 %v786_v1  ;;  %s952_s15 = smov (!%p214_p4, %s776_s15), 1  ;;  %v757_v22 = vld [vmem:[%s943_s1 + $0xb0] sm:$0xff]   ;;  %v760_v31 = vld [vmem:[%s943_s1 + $0xb8] sm:$0xff]  }
   0xf   : > { %s709_s29 = smul.u32 6, %s952_s15  ;;  %s629_s5 = sshll.u32 %s952_s15, 1 }
  0x10   : > { %663 = vmatpush3.bf16.msra.mxu0 %v744_v8  ;;  %s229_s8 = scalar_lea.vmem %s946_s4, %s629_s5 }
  0x11   : > { %694 = vmatpush3.bf16.msra.mxu1 %v745_v9  ;;  %664 = vmatprep.subr.bf16.mxu0 %v746_v10  ;;  %s222_s12 = scalar_lea.vmem %s942_s0, %s709_s29 }
  0x12   : > { %695 = vmatprep.subr.bf16.mxu1 %v786_v1  ;;  %v231_v24 = vld [vmem:[%s222_s12] sm:$0x3f] }
  0x13   : > { %v281_v29 = vcombine.high %v231_v24, %v231_v24  ;;  %v288_v33 = vrot.slane %v231_v24, %v287_v32 }
  0x14   : > { %665 = vmatpush3.bf16.msra.mxu0 %v747_v11 }
  0x15   : > { %696 = vmatpush3.bf16.msra.mxu1 %v748_v12  ;;  %666 = vmatprep.subr.bf16.mxu0 %v749_v13  ;;  %v295_v34 = vrot.slane %v281_v29, %v287_v32  ;;  %v296_v35 = vcombine.high %v288_v33, %v288_v33 }
  0x16   : > { %697 = vmatprep.subr.bf16.mxu1 %v786_v1 }
  0x17   : > { %476 = vmatprep.mubr.bf16.mxu0 %v296_v35 }
  0x18   : > { %667 = vmatpush3.bf16.msra.mxu0 %v750_v14 }
  0x19   : > { %698 = vmatpush3.bf16.msra.mxu1 %v751_v15  ;;  %668 = vmatprep.subr.bf16.mxu0 %v752_v16 }
  0x1a   : > { %699 = vmatprep.subr.bf16.mxu1 %v786_v1 }
  0x1c   : > { %669 = vmatpush3.bf16.msra.mxu0 %v753_v17 }
  0x1d   : > { %700 = vmatpush3.bf16.msra.mxu1 %v754_v18  ;;  %670 = vmatprep.subr.bf16.mxu0 %v755_v19 }
  0x1e   : > { %701 = vmatprep.subr.bf16.mxu1 %v786_v1 }
  0x20   : > { %671 = vmatpush3.bf16.msra.mxu0 %v756_v21 }
  0x21   : > { %702 = vmatpush3.bf16.msra.mxu1 %v757_v22  ;;  %672 = vmatprep.subr.bf16.mxu0 %v758_v23 }
  0x22   : > { %703 = vmatprep.subr.bf16.mxu1 %v786_v1 }
  0x24   : > { %673 = vmatpush3.bf16.msra.mxu0 %v759_v28 }
  0x25   : > { %704 = vmatpush3.bf16.msra.mxu1 %v760_v31 }
  0x27   : > { %477 = vmatmul.mubr.bf16.vlgmr.msra.gmra.mrb[0].mxu0 %v288_v33 }
  0x28   : > { %706 = vmatmul.mubr.bf16.vlgmr.msra.gmra.mrb[0].mxu1 %v295_v34 }
  0xfa   : > { %v674_v37 = vpop.f32.mrb[0].mxu0 }
  0xfb   : > { %v518_v36 = vpop.f32.mrb[0].mxu1  ;;  %v675_v39 = vpop.f32.mrb[1].mxu0 }
  0xfc   : > { %v707_v38 = vpop.f32.mrb[1].mxu1  ;;  %v676_v41 = vadd.f32 %v675_v39, %v674_v37  ;;  %v677_v42 = vpop.f32.mrb[2].mxu0 }
  0xfd   : > { %v521_v40 = vpop.f32.mrb[2].mxu1  ;;  %v678_v45 = vpop.f32.mrb[3].mxu0 }
  0xfe   : > { %v708_v43 = vpop.f32.mrb[3].mxu1  ;;  %v519_v46 = vadd.f32 %v676_v41, %v518_v36 }
 0x100   : > { %v531_v48 = vmul.f32 %v654_v44, %v519_v46 }
 0x102   : > { %v539_v49 = vadd.f32 %v655_v47, %v531_v48 }
 0x104   : > { %v540_v50 = vmax.f32 %v539_v49, 0.0 }
 0x106   : > { %v541_v51 = vpack.c.bf16 %v540_v50, %v540_v50 }
 0x108   : > { %542 = vst [vmem:[%s229_s8] sm:$0x3] %v541_v51 }
 0x109 PF: > { %s14_s17 = sadd.s32 1, %s784_s17   ;;  %s947_s15 = smov %s780_s16 }
 0x10a   : > { %p11_p5 = scmp.ge.s32.totalorder %s14_s17, 4   ;;  %s948_s16 = smov %s950_s18 }
 0x10c   :  { %13 = sbr.rel (!%p11_p5) target bundleno = 2 (0x2), region = 66 }

// kernel: deeplab_net.11
= control target key start
LH: loop header
LB: loop body
LE: loop exit
PB: predicated region body
PF: predicated region fallthrough
CT: control target
= control target key end

     0   :  { %s504_s12 = smov 0   ;;  %s506_s13 = smov 0   ;;  %s543_s0 = inlined_call_operand.vmem [shape: f32[8,1], index: 0, kind: input, shape index: {}]   ;;  %s544_s1 = inlined_call_operand.vmem [shape: bf16[2,8,256], index: 1, kind: input, shape index: {}]   ;;  %s545_s2 = inlined_call_operand.vmem [shape: bf16[2,8,256], index: 2, kind: input, shape index: {}]   ;;  %s546_s3 = inlined_call_operand.vmem [shape: bf16[2,8,256], index: 3, kind: output, shape index: {}]  }
   0x1   :  { %s508_s14 = smov 0  }
   0x2 LB: > { %s25_s15 = sadd.s32 1, %s477_s13  ;;  %p419_p0 = scmp.ge.s32.totalorder %s481_s14, 1  ;;  %s481_s14 = sphi %s508_s14, %s13_s14   ;;  %s477_s13 = sphi %s506_s13, %s548_s13   ;;  %s473_s12 = sphi %s504_s12, %s547_s12  }
   0x3   : > { %p27_p1 = scmp.ge.s32.totalorder %s25_s15, 2  ;;  %p182_p2 = scmp.lt.s32.totalorder %s481_s14, 3 }
   0x5   : > { %s550_s15 = smov (%p27_p1, %s25_s15), 0  ;;  %p183_p3 = pnand %p419_p0, %p182_p2 }
   0x6   : > { %v258_v0 = vld [vmem:[%s543_s0] sm:$0xff] (!%p183_p3)  ;;  %v483_v1 = vmov (!%p183_p3), 0   ;;  %p231_p4 = scmp.lt.s32.totalorder (!%p183_p3), %s473_s12, 1 }
   0x7   : > { %186 = sbr.rel (%p183_p3) target bundleno = 143 (0x8f), region = 32  ;;  %458 = vset.pattern.permute.xlu0 (!%p183_p3), %v483_v1 }
   0x8   : > { %269 = vperm.xlu0 (!%p183_p3), %458, %v258_v0  }
   0xe   : > { %s552_s12 = smov (!%p231_p4, %s473_s12), 1 }
   0xf   : > { %s429_s18 = sshll.u32 %s552_s12, 3 }
  0x10   : > { %s239_s21 = scalar_lea.vmem %s544_s1, %s429_s18  ;;  %s248_s24 = scalar_lea.vmem %s545_s2, %s429_s18 }
  0x11   : > { %v259_v2 = vld [vmem:[%s239_s21] sm:$0xff]  ;;  %s257_s27 = scalar_lea.vmem %s546_s3, %s429_s18 }
  0x12   : > { %v262_v3 = vld [vmem:[%s248_s24] sm:$0xff]  ;;  %v260_v4 = vunpack.c.l.bf16 %v259_v2  ;;  %v261_v5 = vunpack.c.h.bf16 %v259_v2 }
  0x13   : > { %v263_v6 = vunpack.c.l.bf16 %v262_v3  ;;  %v264_v7 = vunpack.c.h.bf16 %v262_v3 }
  0x15   : > { %v265_v8 = vsub.f32 %v263_v6, %v260_v4  ;;  %v266_v9 = vsub.f32 %v264_v7, %v261_v5 }
  0x87   : > { %v270_v10 = vpop.permute.xlu0 %269 }
  0x88   : > { %v272_v11 = vmul.f32 %v270_v10, %v265_v8  ;;  %v273_v12 = vmul.f32 %v270_v10, %v266_v9 }
  0x8a   : > { %v274_v13 = vadd.f32 %v272_v11, %v260_v4  ;;  %v275_v14 = vadd.f32 %v273_v12, %v261_v5 }
  0x8c   : > { %v432_v15 = vpack.c.bf16 %v275_v14, %v274_v13 }
  0x8e   : > { %284 = vst [vmem:[%s257_s27] sm:$0xff] %v432_v15 }
  0x8f PF: > { %s13_s14 = sadd.s32 1, %s481_s14   ;;  %s547_s12 = smov %s477_s13 }
  0x90   : > { %p10_p5 = scmp.ge.s32.totalorder %s13_s14, 4   ;;  %s548_s13 = smov %s550_s15 }
  0x92   :  { %12 = sbr.rel (!%p10_p5) target bundleno = 2 (0x2), region = 68 }

// kernel: deeplab_net.9
= control target key start
LH: loop header
LB: loop body
LE: loop exit
PB: predicated region body
PF: predicated region fallthrough
CT: control target
= control target key end

     0   :  { %s556_s15 = smov 0   ;;  %s558_s16 = smov 0   ;;  %s623_s0 = inlined_call_operand.vmem [shape: bf16[2,8,128], index: 0, kind: input, shape index: {}]   ;;  %s624_s1 = inlined_call_operand.vmem [shape: bf16[128,128], index: 1, kind: input, shape index: {}]   ;;  %s625_s2 = inlined_call_operand.vmem [shape: f32[1,128], index: 2, kind: input, shape index: {}]   ;;  %s626_s3 = inlined_call_operand.vmem [shape: f32[1,128], index: 3, kind: input, shape index: {}]   ;;  %s627_s4 = inlined_call_operand.vmem [shape: bf16[2,8,128], index: 4, kind: output, shape index: {}]  }
   0x1   :  { %s560_s17 = smov 0  }
   0x2 LB: > { %s26_s18 = sadd.s32 1, %s523_s16  ;;  %p427_p0 = scmp.ge.s32.totalorder %s527_s17, 1  ;;  %s527_s17 = sphi %s560_s17, %s14_s17   ;;  %s523_s16 = sphi %s558_s16, %s629_s16   ;;  %s519_s15 = sphi %s556_s15, %s628_s15  }
   0x3   : > { %p28_p1 = scmp.ge.s32.totalorder %s26_s18, 2  ;;  %p180_p2 = scmp.lt.s32.totalorder %s527_s17, 3 }
   0x5   : > { %s631_s18 = smov (%p28_p1, %s26_s18), 0  ;;  %p181_p3 = pnand %p427_p0, %p180_p2 }
   0x6   : > { %v497_v0 = vld [vmem:[%s624_s1] sm:$0xff] (!%p181_p3)   ;;  %v529_v1 = vmov (!%p181_p3), 0.0   ;;  %v498_v2 = vld [vmem:[%s624_s1 + $0x8] sm:$0xff] (!%p181_p3)   ;;  %vm530_vm0 = vmmov (!%p181_p3), 0   ;;  %v499_v3 = vld [vmem:[%s624_s1 + $0x10] sm:$0xff] (!%p181_p3)   ;;  %p210_p4 = scmp.lt.s32.totalorder (!%p181_p3), %s519_s15, 1 }
   0x7   : > { %184 = sbr.rel (%p181_p3) target bundleno = 260 (0x104), region = 36  ;;  %451 = vmatprep.subr.bf16.mxu0 (!%p181_p3), %v529_v1  ;;  %467 = vmatprep.mubr.msk.bf16.mxu0 (!%p181_p3), %vm530_vm0, %v529_v1  ;;  %v500_v4 = vld [vmem:[%s624_s1 + $0x18] sm:$0xff] (!%p181_p3)   ;;  %v501_v5 = vld [vmem:[%s624_s1 + $0x20] sm:$0xff] (!%p181_p3)   ;;  %v502_v6 = vld [vmem:[%s624_s1 + $0x28] sm:$0xff] (!%p181_p3)  }
   0x8   : > { %452 = vmatpush3.bf16.msra.mxu0 (!%p181_p3), %v497_v0  ;;  %v503_v7 = vld [vmem:[%s624_s1 + $0x30] sm:$0xff] (!%p181_p3)   ;;  %v504_v8 = vld [vmem:[%s624_s1 + $0x38] sm:$0xff] (!%p181_p3)   ;;  %v438_v10 = vld [vmem:[%s625_s2] ss:$0 sm:$0xff] (!%p181_p3) }
   0x9   : > { %453 = vmatprep.subr.bf16.mxu0 (!%p181_p3), %v529_v1  ;;  %v439_v12 = vld [vmem:[%s626_s3] ss:$0 sm:$0xff] (!%p181_p3) }
   0xc   : > { %454 = vmatpush3.bf16.msra.mxu0 (!%p181_p3), %v498_v2 }
   0xd   : > { %455 = vmatprep.subr.bf16.mxu0 (!%p181_p3), %v529_v1 }
   0xe   : > { %s633_s15 = smov (!%p210_p4, %s519_s15), 1 }
   0xf   : > { %s428_s7 = sshll.u32 %s633_s15, 2 }
  0x10   : > { %456 = vmatpush3.bf16.msra.mxu0 %v499_v3  ;;  %s216_s12 = scalar_lea.vmem %s623_s0, %s428_s7  ;;  %s223_s22 = scalar_lea.vmem %s627_s4, %s428_s7 }
  0x11   : > { %457 = vmatprep.subr.bf16.mxu0 %v529_v1  ;;  %v225_v9 = vld [vmem:[%s216_s12] sm:$0xf] }
  0x14   : > { %458 = vmatpush3.bf16.msra.mxu0 %v500_v4 }
  0x15   : > { %459 = vmatprep.subr.bf16.mxu0 %v529_v1 }
  0x18   : > { %460 = vmatpush3.bf16.msra.mxu0 %v501_v5 }
  0x19   : > { %461 = vmatprep.subr.bf16.mxu0 %v529_v1 }
  0x1c   : > { %462 = vmatpush3.bf16.msra.mxu0 %v502_v6 }
  0x1d   : > { %463 = vmatprep.subr.bf16.mxu0 %v529_v1 }
  0x20   : > { %464 = vmatpush3.bf16.msra.mxu0 %v503_v7 }
  0x21   : > { %465 = vmatprep.subr.bf16.mxu0 %v529_v1 }
  0x24   : > { %466 = vmatpush3.bf16.msra.mxu0 %v504_v8 }
  0x27   : > { %468 = vmatmul.mubr.bf16.vlgmr.msra.gmra.mrb[0].mxu0 %v225_v9 }
  0xfa   : > { %v324_v11 = vpop.f32.mrb[0].mxu0 }
  0xfb   : > { %v337_v13 = vmul.f32 %v438_v10, %v324_v11  ;;  %v469_v14 = vpop.f32.mrb[1].mxu0 }
  0xfc   : > { %v327_v15 = vpop.f32.mrb[2].mxu0 }
  0xfd   : > { %v345_v16 = vadd.f32 %v439_v12, %v337_v13  ;;  %v470_v17 = vpop.f32.mrb[3].mxu0 }
  0xff   : > { %v346_v18 = vmax.f32 %v345_v16, 0.0 }
 0x101   : > { %v347_v19 = vpack.c.bf16 %v346_v18, %v346_v18 }
 0x103   : > { %348 = vst [vmem:[%s223_s22] sm:$0xf] %v347_v19 }
 0x104 PF: > { %s14_s17 = sadd.s32 1, %s527_s17   ;;  %s628_s15 = smov %s523_s16 }
 0x105   : > { %p11_p5 = scmp.ge.s32.totalorder %s14_s17, 4   ;;  %s629_s16 = smov %s631_s18 }
 0x107   :  { %13 = sbr.rel (!%p11_p5) target bundleno = 2 (0x2), region = 66 }

// kernel: deeplab_net.10
= control target key start
LH: loop header
LB: loop body
LE: loop exit
PB: predicated region body
PF: predicated region fallthrough
CT: control target
= control target key end

     0   :  { %s4252_s30 = smov 0   ;;  %s5420_s0 = inlined_call_operand.vmem [shape: bf16[2,76,128], index: 0, kind: input, shape index: {}]   ;;  %s5421_s1 = inlined_call_operand.vmem [shape: bf16[128,256], index: 1, kind: input, shape index: {}]   ;;  %s5422_s2 = inlined_call_operand.vmem [shape: bf16[3,3,128,256], index: 2, kind: input, shape index: {}]   ;;  %s5423_s3 = inlined_call_operand.vmem [shape: bf16[128,256], index: 3, kind: input, shape index: {}]   ;;  %s5424_s4 = inlined_call_operand.vmem [shape: bf16[5,256,256], index: 4, kind: input, shape index: {}]   ;;  %s5425_s5 = inlined_call_operand.vmem [shape: f32[5,256], index: 5, kind: input, shape index: {}]   ;;  %s5426_s6 = inlined_call_operand.vmem [shape: f32[5,256], index: 6, kind: input, shape index: {}]   ;;  %s5427_s7 = inlined_call_operand.vmem [shape: f32[1,256], index: 7, kind: input, shape index: {}]   ;;  %s5428_s8 = inlined_call_operand.vmem [shape: f32[1,256], index: 8, kind: input, shape index: {}]   ;;  %s5429_s9 = inlined_call_operand.vmem [shape: bf16[2,4,256], index: 9, kind: output, shape index: {}]  }
   0x1 LB: > { %s3300_s10 = sadd.s32 4294967295, %s4199_s30   ;;  %p3304_p0 = scmp.ge.s32.totalorder %s4199_s30, 1  ;;  %s4199_s30 = sphi %s4252_s30, %s19_s30  }
   0x2   : > { %p287_p1 = scmp.lt.s32.totalorder %s4199_s30, 3 }
   0x4   : > { %p288_p2 = pnand %p3304_p0, %p287_p1 }
   0x5   : > { %v3686_v0 = vld [vmem:[%s5422_s2 + $0x84] ss:$8 sps:$4 sm:$0xff] (!%p288_p2)   ;;  %v3688_v1 = vld [vmem:[%s5422_s2 + $0x80] ss:$8 sps:$4 sm:$0xff] (!%p288_p2)   ;;  %v4201_v2 = vmov (!%p288_p2), 0   ;;  %p323_p3 = scmp.lt.s32.totalorder (!%p288_p2), %s3300_s10, 1 }
   0x6   : > { %291 = sbr.rel (%p288_p2) target bundleno = 997 (0x3e5), region = 56  ;;  %930 = vmatprep.mubr.bf16.mxu1 (!%p288_p2), %v4201_v2  ;;  %785 = vmatprep.mubr.bf16.mxu0 (!%p288_p2), %v4201_v2  ;;  %v3689_v3 = vld [vmem:[%s5422_s2 + $0x94] ss:$8 sps:$4 sm:$0xff] (!%p288_p2)   ;;  %v3691_v4 = vld [vmem:[%s5422_s2 + $0x90] ss:$8 sps:$4 sm:$0xff] (!%p288_p2)   ;;  %vm2821_vm0 = vcmask (!%p288_p2), 1043456  }
   0x7   : > { %898 = vmatprep.subr.bf16.mxu1 (!%p288_p2), %v3686_v0  ;;  %v3692_v5 = vld [vmem:[%s5422_s2 + $0xa4] ss:$8 sps:$4 sm:$0xff] (!%p288_p2)   ;;  %v3694_v6 = vld [vmem:[%s5422_s2 + $0xa0] ss:$8 sps:$4 sm:$0xff] (!%p288_p2)   ;;  %v3695_v7 = vld [vmem:[%s5422_s2 + $0xb4] ss:$8 sps:$4 sm:$0xff] (!%p288_p2)  }
   0x8   : > { %899 = vmatpush1.bf16.msra.mxu1 (!%p288_p2), %v3688_v1  ;;  %v3697_v8 = vld [vmem:[%s5422_s2 + $0xb0] ss:$8 sps:$4 sm:$0xff] (!%p288_p2)   ;;  %v3698_v9 = vld [vmem:[%s5422_s2 + $0xc4] ss:$8 sps:$4 sm:$0xff] (!%p288_p2)   ;;  %v3700_v10 = vld [vmem:[%s5422_s2 + $0xc0] ss:$8 sps:$4 sm:$0xff] (!%p288_p2)  }
   0x9   : > { %900 = vmatprep.subr.bf16.mxu1 (!%p288_p2), %v3689_v3  ;;  %v3701_v11 = vld [vmem:[%s5422_s2 + $0xd4] ss:$8 sps:$4 sm:$0xff] (!%p288_p2)   ;;  %v3703_v12 = vld [vmem:[%s5422_s2 + $0xd0] ss:$8 sps:$4 sm:$0xff] (!%p288_p2)   ;;  %v3704_v13 = vld [vmem:[%s5422_s2 + $0xe4] ss:$8 sps:$4 sm:$0xff] (!%p288_p2)  }
   0xa   : > { %v3706_v14 = vld [vmem:[%s5422_s2 + $0xe0] ss:$8 sps:$4 sm:$0xff] (!%p288_p2)   ;;  %v3707_v16 = vld [vmem:[%s5422_s2 + $0xf4] ss:$8 sps:$4 sm:$0xff] (!%p288_p2)   ;;  %v3709_v18 = vld [vmem:[%s5422_s2 + $0xf0] ss:$8 sps:$4 sm:$0xff] (!%p288_p2)  }
   0xb   : > { %v3712_v19 = vld [vmem:[%s5422_s2 + $0x4] ss:$8 sps:$4 sm:$0xff] (!%p288_p2)   ;;  %v3710_v21 = vld [vmem:[%s5422_s2] ss:$8 sps:$4 sm:$0xff] (!%p288_p2)   ;;  %v3716_v22 = vld [vmem:[%s5422_s2 + $0x14] ss:$8 sps:$4 sm:$0xff] (!%p288_p2)  }
   0xc   : > { %901 = vmatpush1.bf16.msra.mxu1 (!%p288_p2), %v3691_v4  ;;  %v3714_v23 = vld [vmem:[%s5422_s2 + $0x10] ss:$8 sps:$4 sm:$0xff] (!%p288_p2)   ;;  %v3719_v24 = vld [vmem:[%s5422_s2 + $0x24] ss:$8 sps:$4 sm:$0xff] (!%p288_p2)   ;;  %v3717_v25 = vld [vmem:[%s5422_s2 + $0x20] ss:$8 sps:$4 sm:$0xff] (!%p288_p2)  }
   0xd   : > { %902 = vmatprep.subr.bf16.mxu1 %v3692_v5  ;;  %s5431_s10 = smov (!%p323_p3, %s3300_s10), 1  ;;  %v3722_v26 = vld [vmem:[%s5422_s2 + $0x34] ss:$8 sps:$4 sm:$0xff]   ;;  %v3720_v27 = vld [vmem:[%s5422_s2 + $0x30] ss:$8 sps:$4 sm:$0xff]  }
   0xe   : > { %s3676_s14 = smul.u32 40, %s5431_s10  ;;  %v3725_v28 = vld [vmem:[%s5422_s2 + $0x44] ss:$8 sps:$4 sm:$0xff]   ;;  %v3785_v30 = vld [vmem:[%s5421_s1] ss:$8 sps:$4 sm:$0xff]   ;;  %s3651_s26 = sshll.u32 %s5431_s10, 2 }
   0xf   : > { %v3783_v29 = vld [vmem:[%s5421_s1 + $0x4] ss:$8 sps:$4 sm:$0xff]   ;;  %v3723_v31 = vld [vmem:[%s5422_s2 + $0x40] ss:$8 sps:$4 sm:$0xff]   ;;  %v3789_v32 = vld [vmem:[%s5421_s1 + $0x14] ss:$8 sps:$4 sm:$0xff]   ;;  %s332_s29 = scalar_lea.vmem %s5429_s9, %s3651_s26 }
  0x10   : > { %903 = vmatpush1.bf16.msra.mxu1 %v3694_v6  ;;  %s4307_s21 = scalar_lea.vmem %s5420_s0, %s3676_s14  ;;  %753 = vmatprep.subr.bf16.mxu0 %v3783_v29  ;;  %v3791_v33 = vld [vmem:[%s5421_s1 + $0x10] ss:$8 sps:$4 sm:$0xff]   ;;  %v3728_v34 = vld [vmem:[%s5422_s2 + $0x54] ss:$8 sps:$4 sm:$0xff]   ;;  %v3795_v35 = vld [vmem:[%s5421_s1 + $0x24] ss:$8 sps:$4 sm:$0xff]  }
  0x11   : > { %904 = vmatprep.subr.bf16.mxu1 %v3695_v7  ;;  %v4313_v15 = vld [vmem:[%s4307_s21 + $0x10] sm:$0xf]  ;;  %754 = vmatpush1.bf16.msra.mxu0 %v3785_v30  ;;  %v3797_v37 = vld [vmem:[%s5421_s1 + $0x20] ss:$8 sps:$4 sm:$0xff]   ;;  %v3731_v38 = vld [vmem:[%s5422_s2 + $0x64] ss:$8 sps:$4 sm:$0xff]  }
  0x12   : > { %v3308_v17 = vcombine.low %v4313_v15, %v4313_v15  ;;  %755 = vmatprep.subr.bf16.mxu0 %v3789_v32  ;;  %v3726_v36 = vld [vmem:[%s5422_s2 + $0x50] ss:$8 sps:$4 sm:$0xff]   ;;  %v3801_v39 = vld [vmem:[%s5421_s1 + $0x34] ss:$8 sps:$4 sm:$0xff]   ;;  %v3729_v40 = vld [vmem:[%s5422_s2 + $0x60] ss:$8 sps:$4 sm:$0xff]  }
  0x13   : > { %v3803_v41 = vld [vmem:[%s5421_s1 + $0x30] ss:$8 sps:$4 sm:$0xff]   ;;  %v3734_v42 = vld [vmem:[%s5422_s2 + $0x74] ss:$8 sps:$4 sm:$0xff]   ;;  %v3807_v43 = vld [vmem:[%s5421_s1 + $0x44] ss:$8 sps:$4 sm:$0xff]  }
  0x14   : > { %905 = vmatpush1.bf16.msra.mxu1 %v3697_v8  ;;  %v4326_v20 = vrot.slane %v3308_v17, 2  ;;  %v3732_v44 = vld [vmem:[%s5422_s2 + $0x70] ss:$8 sps:$4 sm:$0xff]   ;;  %v3809_v45 = vld [vmem:[%s5421_s1 + $0x40] ss:$8 sps:$4 sm:$0xff]  }
  0x15   : > { %906 = vmatprep.subr.bf16.mxu1 %v3698_v9  ;;  %756 = vmatpush1.bf16.msra.mxu0 %v3791_v33  ;;  %v3737_v46 = vld [vmem:[%s5422_s2 + $0x104] ss:$8 sps:$4 sm:$0xff]   ;;  %v3813_v47 = vld [vmem:[%s5421_s1 + $0x54] ss:$8 sps:$4 sm:$0xff]   ;;  %v3735_v48 = vld [vmem:[%s5422_s2 + $0x100] ss:$8 sps:$4 sm:$0xff]  }
  0x16   : > { %757 = vmatprep.subr.bf16.mxu0 %v3795_v35  ;;  %v4415_v49 = vld [vmem:[%s4307_s21 + $0xc] sm:$0xf]  ;;  %v3740_v50 = vld [vmem:[%s5422_s2 + $0x114] ss:$8 sps:$4 sm:$0xff]   ;;  %v3815_v51 = vld [vmem:[%s5421_s1 + $0x50] ss:$8 sps:$4 sm:$0xff]  }
  0x17   : > { %v3819_v52 = vld [vmem:[%s5421_s1 + $0x64] ss:$8 sps:$4 sm:$0xff]   ;;  %v3738_v53 = vld [vmem:[%s5422_s2 + $0x110] ss:$8 sps:$4 sm:$0xff]   ;;  %v3821_v55 = vld [vmem:[%s5421_s1 + $0x60] ss:$8 sps:$4 sm:$0xff]  }
  0x18   : > { %907 = vmatpush1.bf16.msra.mxu1 %v3700_v10  ;;  %v3743_v54 = vld [vmem:[%s5422_s2 + $0x124] ss:$8 sps:$4 sm:$0xff]   ;;  %v3825_v56 = vld [vmem:[%s5421_s1 + $0x74] ss:$8 sps:$4 sm:$0xff]   ;;  %v3741_v57 = vld [vmem:[%s5422_s2 + $0x120] ss:$8 sps:$4 sm:$0xff]  }
  0x19   : > { %908 = vmatprep.subr.bf16.mxu1 %v3701_v11  ;;  %758 = vmatpush1.bf16.msra.mxu0 %v3797_v37  ;;  %v3746_v58 = vld [vmem:[%s5422_s2 + $0x134] ss:$8 sps:$4 sm:$0xff]   ;;  %v3827_v59 = vld [vmem:[%s5421_s1 + $0x70] ss:$8 sps:$4 sm:$0xff]   ;;  %v3749_v61 = vld [vmem:[%s5422_s2 + $0x144] ss:$8 sps:$4 sm:$0xff]  }
  0x1a   : > { %759 = vmatprep.subr.bf16.mxu0 %v3801_v39  ;;  %v3744_v60 = vld [vmem:[%s5422_s2 + $0x130] ss:$8 sps:$4 sm:$0xff]   ;;  %v3747_v62 = vld [vmem:[%s5422_s2 + $0x140] ss:$8 sps:$4 sm:$0xff]   ;;  %v3752_v63 = vld [vmem:[%s5422_s2 + $0x154] ss:$8 sps:$4 sm:$0xff]  }
  0x1b   : > { %v3750_v0 = vld [vmem:[%s5422_s2 + $0x150] ss:$8 sps:$4 sm:$0xff]   ;;  %v3755_v1 = vld [vmem:[%s5422_s2 + $0x164] ss:$8 sps:$4 sm:$0xff]   ;;  %v3753_v3 = vld [vmem:[%s5422_s2 + $0x160] ss:$8 sps:$4 sm:$0xff]  }
  0x1c   : > { %909 = vmatpush1.bf16.msra.mxu1 %v3703_v12  ;;  %v3758_v4 = vld [vmem:[%s5422_s2 + $0x174] ss:$8 sps:$4 sm:$0xff]   ;;  %v3756_v5 = vld [vmem:[%s5422_s2 + $0x170] ss:$8 sps:$4 sm:$0xff]   ;;  %v3761_v6 = vld [vmem:[%s5422_s2 + $0x204] ss:$8 sps:$4 sm:$0xff]  }
  0x1d   : > { %910 = vmatprep.subr.bf16.mxu1 %v3704_v13  ;;  %760 = vmatpush1.bf16.msra.mxu0 %v3803_v41  ;;  %v4481_v7 = vld [vmem:[%s4307_s21 + $0x18] sm:$0xf]  ;;  %v3759_v8 = vld [vmem:[%s5422_s2 + $0x200] ss:$8 sps:$4 sm:$0xff]   ;;  %v3764_v9 = vld [vmem:[%s5422_s2 + $0x214] ss:$8 sps:$4 sm:$0xff]  }
  0x1e   : > { %761 = vmatprep.subr.bf16.mxu0 %v3807_v43  ;;  %v3762_v10 = vld [vmem:[%s5422_s2 + $0x210] ss:$8 sps:$4 sm:$0xff]   ;;  %v3767_v11 = vld [vmem:[%s5422_s2 + $0x224] ss:$8 sps:$4 sm:$0xff]   ;;  %v3765_v12 = vld [vmem:[%s5422_s2 + $0x220] ss:$8 sps:$4 sm:$0xff]  }
  0x1f   : > { %v3770_v13 = vld [vmem:[%s5422_s2 + $0x234] ss:$8 sps:$4 sm:$0xff]   ;;  %v3771_v17 = vld [vmem:[%s5422_s2 + $0x240] ss:$8 sps:$4 sm:$0xff]   ;;  %v4546_v30 = vld [vmem:[%s4307_s21 + $0x4] sm:$0xf] }
  0x20   : > { %911 = vmatpush1.bf16.msra.mxu1 %v3706_v14  ;;  %v3768_v14 = vld [vmem:[%s5422_s2 + $0x230] ss:$8 sps:$4 sm:$0xff]   ;;  %v3794_v29 = vld [vmem:[%s5422_s2 + $0x194] ss:$8 sps:$4 sm:$0xff]   ;;  %v4555_v33 = vld [vmem:[%s4307_s21] sm:$0xf] }
  0x21   : > { %912 = vmatprep.subr.bf16.mxu1 %v3707_v16  ;;  %762 = vmatpush1.bf16.msra.mxu0 %v3809_v45  ;;  %v3773_v16 = vld [vmem:[%s5422_s2 + $0x244] ss:$8 sps:$4 sm:$0xff]   ;;  %v3913_v32 = vld [vmem:[%s5424_s4 + $0x114] ss:$8 sps:$4 sm:$0xff]   ;;  %v2803_v35 = vunpack.c.l.bf16 %v4555_v33 }
  0x22   : > { %763 = vmatprep.subr.bf16.mxu0 %v3813_v47  ;;  %v3800_v39 = vld [vmem:[%s5422_s2 + $0x1a4] ss:$8 sps:$4 sm:$0xff]   ;;  %v3806_v47 = vld [vmem:[%s5422_s2 + $0x1b4] ss:$8 sps:$4 sm:$0xff]  }
  0x23   : > { %v3919_v43 = vld [vmem:[%s5424_s4 + $0x124] ss:$8 sps:$4 sm:$0xff]  }
  0x24   : > { %913 = vmatpush1.bf16.msra.mxu1 %v3709_v18  ;;  %v3776_v18 = vld [vmem:[%s5422_s2 + $0x254] ss:$8 sps:$4 sm:$0xff]  }
  0x25   : > { %1019 = vmatprep.subr.bf16.mxu1 %v3712_v19  ;;  %764 = vmatpush1.bf16.msra.mxu0 %v3815_v51  ;;  %v3774_v19 = vld [vmem:[%s5422_s2 + $0x250] ss:$8 sps:$4 sm:$0xff]  }
  0x26   : > { %765 = vmatprep.subr.bf16.mxu0 %v3819_v52  ;;  %v3804_v51 = vld [vmem:[%s5422_s2 + $0x1b0] ss:$8 sps:$4 sm:$0xff]   ;;  %v3812_v52 = vld [vmem:[%s5422_s2 + $0x1c4] ss:$8 sps:$4 sm:$0xff]  }
  0x27   : > { %931 = vmatmul.mubr.bf16.vlgmr.msra.gmra.mrb[0].mxu1 %v4326_v20 }
  0x28   : > { %1020 = vmatpush1.bf16.msra.mxu1 %v3710_v21  ;;  %1051 = vmatprep.mubr.bf16.mxu1 %v4201_v2  ;;  %v3779_v21 = vld [vmem:[%s5422_s2 + $0x264] ss:$8 sps:$4 sm:$0xff]  }
  0x29   : > { %1021 = vmatprep.subr.bf16.mxu1 %v3716_v22  ;;  %766 = vmatpush1.bf16.msra.mxu0 %v3821_v55  ;;  %v3777_v22 = vld [vmem:[%s5422_s2 + $0x260] ss:$8 sps:$4 sm:$0xff]  }
  0x2a   : > { %767 = vmatprep.subr.bf16.mxu0 %v3825_v56  ;;  %v3810_v55 = vld [vmem:[%s5422_s2 + $0x1c0] ss:$8 sps:$4 sm:$0xff]   ;;  %v3818_v56 = vld [vmem:[%s5422_s2 + $0x1d4] ss:$8 sps:$4 sm:$0xff]  }
  0x2c   : > { %1022 = vmatpush1.bf16.msra.mxu1 %v3714_v23  ;;  %v3782_v23 = vld [vmem:[%s5422_s2 + $0x274] ss:$8 sps:$4 sm:$0xff]  }
  0x2d   : > { %1023 = vmatprep.subr.bf16.mxu1 %v3719_v24  ;;  %768 = vmatpush1.bf16.msra.mxu0 %v3827_v59  ;;  %v3780_v24 = vld [vmem:[%s5422_s2 + $0x270] ss:$8 sps:$4 sm:$0xff]  }
  0x2e   : > { %v3816_v59 = vld [vmem:[%s5422_s2 + $0x1d0] ss:$8 sps:$4 sm:$0xff]  }
  0x30   : > { %1024 = vmatpush1.bf16.msra.mxu1 %v3717_v25  ;;  %786 = vmatmul.mubr.bf16.vlgmr.msra.gmra.mrb[0].mxu0 %v4326_v20  ;;  %v3788_v25 = vld [vmem:[%s5422_s2 + $0x184] ss:$8 sps:$4 sm:$0xff]  }
  0x31   : > { %1025 = vmatprep.subr.bf16.mxu1 %v3722_v26  ;;  %v3905_v26 = vld [vmem:[%s5424_s4 + $0x100] ss:$8 sps:$4 sm:$0xff]  }
  0x34   : > { %1026 = vmatpush1.bf16.msra.mxu1 %v3720_v27  ;;  %v3907_v27 = vld [vmem:[%s5424_s4 + $0x104] ss:$8 sps:$4 sm:$0xff]  }
  0x35   : > { %1027 = vmatprep.subr.bf16.mxu1 %v3725_v28  ;;  %v3786_v28 = vld [vmem:[%s5422_s2 + $0x180] ss:$8 sps:$4 sm:$0xff]   ;;  %1367 = vmatprep.subr.bf16.mxu0 %v3907_v27 }
  0x36   : > { %1368 = vmatpush1.bf16.msra.mxu0 %v3905_v26  ;;  %v3838_v26 = vld [vmem:[%s5422_s2 + $0x2a0] ss:$8 sps:$4 sm:$0xff]  }
  0x37   : > { %1369 = vmatprep.subr.bf16.mxu0 %v3913_v32  ;;  %v3959_v27 = vld [vmem:[%s5424_s4 + $0x1a0] ss:$8 sps:$4 sm:$0xff]   ;;  %v3841_v32 = vld [vmem:[%s5422_s2 + $0x2b0] ss:$8 sps:$4 sm:$0xff]  }
  0x38   : > { %1028 = vmatpush1.bf16.msra.mxu1 %v3723_v31  ;;  %v3911_v31 = vld [vmem:[%s5424_s4 + $0x110] ss:$8 sps:$4 sm:$0xff]  }
  0x39   : > { %1029 = vmatprep.subr.bf16.mxu1 %v3728_v34  ;;  %v4558_v34 = vld [vmem:[%s4307_s21 + $0x8] ss:$12 sps:$4 sm:$0xff]  }
  0x3a   : > { %v2805_v37 = vunpack.c.l.bf16 %v4558_v34  ;;  %1370 = vmatpush1.bf16.msra.mxu0 %v3911_v31  ;;  %v3967_v31 = vld [vmem:[%s5424_s4 + $0x1c4] ss:$8 sps:$4 sm:$0xff]  }
  0x3b   : > { %1371 = vmatprep.subr.bf16.mxu0 %v3919_v43  ;;  %v3971_v43 = vld [vmem:[%s5424_s4 + $0x1e0] ss:$8 sps:$4 sm:$0xff]  }
  0x3c   : > { %1030 = vmatpush1.bf16.msra.mxu1 %v3726_v36  ;;  %v2804_v36 = vunpack.c.l.bf16 %v4546_v30 }
  0x3d   : > { %1031 = vmatprep.subr.bf16.mxu1 %v3731_v38  ;;  %v3792_v38 = vld [vmem:[%s5422_s2 + $0x190] ss:$8 sps:$4 sm:$0xff]  }
  0x3e   : > { %v2813_v41 = vadd.f32 %v2804_v36, %v2803_v35  ;;  %v3965_v35 = vld [vmem:[%s5424_s4 + $0x1c0] ss:$8 sps:$4 sm:$0xff]   ;;  %v3970_v36 = vld [vmem:[%s5424_s4 + $0x1d4] ss:$8 sps:$4 sm:$0xff]  }
  0x40   : > { %1032 = vmatpush1.bf16.msra.mxu1 %v3729_v40  ;;  %v2806_v40 = vunpack.c.l.bf16 %v4415_v49  ;;  %v2814_v45 = vadd.f32 %v2813_v41, %v2805_v37  ;;  %v3844_v37 = vld [vmem:[%s5422_s2 + $0x2c0] ss:$8 sps:$4 sm:$0xff]   ;;  %v3852_v41 = vld [vmem:[%s5422_s2 + $0x2e4] ss:$8 sps:$4 sm:$0xff]  }
  0x41   : > { %1033 = vmatprep.subr.bf16.mxu1 %v3734_v42  ;;  %v3917_v42 = vld [vmem:[%s5424_s4 + $0x120] ss:$8 sps:$4 sm:$0xff]  }
  0x42   : > { %1372 = vmatpush1.bf16.msra.mxu0 %v3917_v42  ;;  %v3973_v42 = vld [vmem:[%s5424_s4 + $0x1e4] ss:$8 sps:$4 sm:$0xff]  }
  0x44   : > { %1034 = vmatpush1.bf16.msra.mxu1 %v3732_v44  ;;  %v2807_v44 = vunpack.c.l.bf16 %v4313_v15  ;;  %v3925_v15 = vld [vmem:[%s5424_s4 + $0x134] ss:$8 sps:$4 sm:$0xff]  }
  0x45   : > { %1140 = vmatprep.subr.bf16.mxu1 %v3737_v46  ;;  %v3798_v46 = vld [vmem:[%s5422_s2 + $0x1a0] ss:$8 sps:$4 sm:$0xff]   ;;  %1373 = vmatprep.subr.bf16.mxu0 %v3925_v15  ;;  %v3859_v15 = vld [vmem:[%s5422_s2 + $0x384] ss:$8 sps:$4 sm:$0xff]  }
  0x47   : > { %1052 = vmatmul.mubr.bf16.vlgmr.msra.gmra.mrb[0].mxu1 %v4415_v49  ;;  %v3923_v49 = vld [vmem:[%s5424_s4 + $0x130] ss:$8 sps:$4 sm:$0xff]  }
  0x48   : > { %1141 = vmatpush1.bf16.msra.mxu1 %v3735_v48  ;;  %1172 = vmatprep.mubr.bf16.mxu1 %v4201_v2  ;;  %v2815_v48 = vadd.f32 %v2814_v45, %v2806_v40  ;;  %v3847_v40 = vld [vmem:[%s5422_s2 + $0x2d0] ss:$8 sps:$4 sm:$0xff]   ;;  %v3855_v45 = vld [vmem:[%s5422_s2 + $0x2f4] ss:$8 sps:$4 sm:$0xff]  }
  0x49   : > { %1142 = vmatprep.subr.bf16.mxu1 %v3740_v50  ;;  %1374 = vmatpush1.bf16.msra.mxu0 %v3923_v49  ;;  %v3853_v49 = vld [vmem:[%s5422_s2 + $0x2f0] ss:$8 sps:$4 sm:$0xff]  }
  0x4a   : > { %v2816_v50 = vadd.f32 %v2815_v48, %v2807_v44  ;;  %v3850_v44 = vld [vmem:[%s5422_s2 + $0x2e0] ss:$8 sps:$4 sm:$0xff]   ;;  %v3974_v48 = vld [vmem:[%s5424_s4 + $0x1f0] ss:$8 sps:$4 sm:$0xff]  }
  0x4c   : > { %1143 = vmatpush1.bf16.msra.mxu1 %v3738_v53  ;;  %v3929_v53 = vld [vmem:[%s5424_s4 + $0x140] ss:$8 sps:$4 sm:$0xff]  }
  0x4d   : > { %1144 = vmatprep.subr.bf16.mxu1 %v3743_v54  ;;  %v3931_v54 = vld [vmem:[%s5424_s4 + $0x144] ss:$8 sps:$4 sm:$0xff]  }
  0x4e   : > { %1375 = vmatprep.subr.bf16.mxu0 %v3931_v54  ;;  %v3860_v54 = vld [vmem:[%s5422_s2 + $0x390] ss:$8 sps:$4 sm:$0xff]  }
  0x4f   : > { %1376 = vmatpush1.bf16.msra.mxu0 %v3929_v53  ;;  %v3862_v53 = vld [vmem:[%s5422_s2 + $0x394] ss:$8 sps:$4 sm:$0xff]  }
  0x50   : > { %1145 = vmatpush1.bf16.msra.mxu1 %v3741_v57  ;;  %v3935_v57 = vld [vmem:[%s5424_s4 + $0x150] ss:$8 sps:$4 sm:$0xff]  }
  0x51   : > { %1146 = vmatprep.subr.bf16.mxu1 %v3746_v58  ;;  %v3937_v58 = vld [vmem:[%s5424_s4 + $0x154] ss:$8 sps:$4 sm:$0xff]  }
  0x52   : > { %1377 = vmatprep.subr.bf16.mxu0 %v3937_v58  ;;  %v3866_v58 = vld [vmem:[%s5422_s2 + $0x3b0] ss:$8 sps:$4 sm:$0xff]  }
  0x53   : > { %1378 = vmatpush1.bf16.msra.mxu0 %v3935_v57  ;;  %v3868_v57 = vld [vmem:[%s5422_s2 + $0x3b4] ss:$8 sps:$4 sm:$0xff]  }
  0x54   : > { %1147 = vmatpush1.bf16.msra.mxu1 %v3744_v60  ;;  %v3824_v60 = vld [vmem:[%s5422_s2 + $0x1e4] ss:$8 sps:$4 sm:$0xff]  }
  0x55   : > { %1148 = vmatprep.subr.bf16.mxu1 %v3749_v61  ;;  %v3941_v61 = vld [vmem:[%s5424_s4 + $0x160] ss:$8 sps:$4 sm:$0xff]  }
  0x58   : > { %1149 = vmatpush1.bf16.msra.mxu1 %v3747_v62  ;;  %v3943_v62 = vld [vmem:[%s5424_s4 + $0x164] ss:$8 sps:$4 sm:$0xff]  }
  0x59   : > { %1150 = vmatprep.subr.bf16.mxu1 %v3752_v63  ;;  %v2808_v63 = vunpack.c.h.bf16 %v4558_v34  ;;  %1379 = vmatprep.subr.bf16.mxu0 %v3943_v62  ;;  %v3846_v34 = vld [vmem:[%s5422_s2 + $0x2c4] ss:$8 sps:$4 sm:$0xff]   ;;  %v3872_v62 = vld [vmem:[%s5422_s2 + $0x3d0] ss:$8 sps:$4 sm:$0xff]  }
  0x5a   : > { %1380 = vmatpush1.bf16.msra.mxu0 %v3941_v61  ;;  %v3874_v61 = vld [vmem:[%s5422_s2 + $0x3d4] ss:$8 sps:$4 sm:$0xff]  }
  0x5c   : > { %1151 = vmatpush1.bf16.msra.mxu1 %v3750_v0  ;;  %v3822_v0 = vld [vmem:[%s5422_s2 + $0x1e0] ss:$8 sps:$4 sm:$0xff]  }
  0x5d   : > { %1152 = vmatprep.subr.bf16.mxu1 %v3755_v1  ;;  %v3830_v1 = vld [vmem:[%s5422_s2 + $0x1f4] ss:$8 sps:$4 sm:$0xff]  }
  0x60   : > { %1153 = vmatpush1.bf16.msra.mxu1 %v3753_v3  ;;  %v3947_v3 = vld [vmem:[%s5424_s4 + $0x170] ss:$8 sps:$4 sm:$0xff]  }
  0x61   : > { %1154 = vmatprep.subr.bf16.mxu1 %v3758_v4  ;;  %v3949_v4 = vld [vmem:[%s5424_s4 + $0x174] ss:$8 sps:$4 sm:$0xff]  }
  0x62   : > { %1381 = vmatprep.subr.bf16.mxu0 %v3949_v4  ;;  %v3883_v4 = vld [vmem:[%s5422_s2 + $0x304] ss:$8 sps:$4 sm:$0xff]  }
  0x63   : > { %1382 = vmatpush1.bf16.msra.mxu0 %v3947_v3  ;;  %v3878_v3 = vld [vmem:[%s5422_s2 + $0x3f0] ss:$8 sps:$4 sm:$0xff]  }
  0x64   : > { %1155 = vmatpush1.bf16.msra.mxu1 %v3756_v5  ;;  %v3828_v5 = vld [vmem:[%s5422_s2 + $0x1f0] ss:$8 sps:$4 sm:$0xff]  }
  0x65   : > { %1689 = vmatprep.subr.bf16.mxu1 %v3761_v6  ;;  %v2809_v6 = vunpack.c.l.bf16 %v4481_v7 }
  0x67   : > { %1173 = vmatmul.mubr.bf16.vlgmr.msra.gmra.mrb[0].mxu1 %v4481_v7  ;;  %v3955_v7 = vld [vmem:[%s5424_s4 + $0x184] ss:$8 sps:$4 sm:$0xff]  }
  0x68   : > { %1690 = vmatpush1.bf16.msra.mxu1 %v3759_v8  ;;  %1721 = vmatprep.mubr.bf16.mxu1 %v4201_v2  ;;  %v3453_v8 = vcombine.low %v4546_v30, %v4546_v30  ;;  %v3962_v30 = vld [vmem:[%s5424_s4 + $0x1b0] ss:$8 sps:$4 sm:$0xff]  }
  0x69   : > { %1691 = vmatprep.subr.bf16.mxu1 %v3764_v9  ;;  %v2817_v9 = vadd.f32 %v2816_v50, %v2808_v63  ;;  %1383 = vmatprep.subr.bf16.mxu0 %v3955_v7  ;;  %v3979_v50 = vld [vmem:[%s5424_s4 + $0x4] ss:$8 sps:$4 sm:$0xff]   ;;  %v3893_v7 = vld [vmem:[%s5422_s2 + $0x340] ss:$8 sps:$4 sm:$0xff]  }
  0x6a   : > { %v3877_v63 = vld [vmem:[%s5422_s2 + $0x3e4] ss:$8 sps:$4 sm:$0xff]  }
  0x6c   : > { %1692 = vmatpush1.bf16.msra.mxu1 %v3762_v10  ;;  %v3833_v10 = vld [vmem:[%s5422_s2 + $0x284] ss:$8 sps:$4 sm:$0xff]  }
  0x6d   : > { %1693 = vmatprep.subr.bf16.mxu1 %v3767_v11  ;;  %v4650_v11 = vld [vmem:[%s4307_s21 + $0x1c] sm:$0xf] }
  0x70   : > { %1694 = vmatpush1.bf16.msra.mxu1 %v3765_v12  ;;  %v3953_v12 = vld [vmem:[%s5424_s4 + $0x180] ss:$8 sps:$4 sm:$0xff]  }
  0x71   : > { %1695 = vmatprep.subr.bf16.mxu1 %v3770_v13  ;;  %v1733_v13 = vrot.slane %v3453_v8, 2  ;;  %1384 = vmatpush1.bf16.msra.mxu0 %v3953_v12  ;;  %v3884_v8 = vld [vmem:[%s5422_s2 + $0x310] ss:$8 sps:$4 sm:$0xff]   ;;  %v3895_v12 = vld [vmem:[%s5422_s2 + $0x344] ss:$8 sps:$4 sm:$0xff]  }
  0x74   : > { %1696 = vmatpush1.bf16.msra.mxu1 %v3768_v14  ;;  %v2810_v14 = vunpack.c.l.bf16 %v4650_v11 }
  0x75   : > { %1697 = vmatprep.subr.bf16.mxu1 %v3773_v16  ;;  %v2818_v16 = vadd.f32 %v2817_v9, %v2809_v6  ;;  %v3886_v6 = vld [vmem:[%s5422_s2 + $0x314] ss:$8 sps:$4 sm:$0xff]   ;;  %v3889_v9 = vld [vmem:[%s5422_s2 + $0x324] ss:$8 sps:$4 sm:$0xff]  }
  0x78   : > { %1698 = vmatpush1.bf16.msra.mxu1 %v3771_v17  ;;  %v3831_v17 = vld [vmem:[%s5422_s2 + $0x280] ss:$8 sps:$4 sm:$0xff]  }
  0x79   : > { %1699 = vmatprep.subr.bf16.mxu1 %v3776_v18  ;;  %v3837_v18 = vld [vmem:[%s5422_s2 + $0x294] ss:$8 sps:$4 sm:$0xff]  }
  0x7c   : > { %1700 = vmatpush1.bf16.msra.mxu1 %v3774_v19  ;;  %v3958_v19 = vld [vmem:[%s5424_s4 + $0x194] ss:$8 sps:$4 sm:$0xff]  }
  0x7d   : > { %1701 = vmatprep.subr.bf16.mxu1 %v3779_v21  ;;  %v4668_v21 = vadd.f32 %v2818_v16, %v2810_v14  ;;  %1385 = vmatprep.subr.bf16.mxu0 %v3958_v19  ;;  %v3896_v14 = vld [vmem:[%s5422_s2 + $0x350] ss:$8 sps:$4 sm:$0xff]   ;;  %v3901_v16 = vld [vmem:[%s5422_s2 + $0x364] ss:$8 sps:$4 sm:$0xff]  }
  0x7e   : > { %v3902_v19 = vld [vmem:[%s5422_s2 + $0x370] ss:$8 sps:$4 sm:$0xff]  }
  0x80   : > { %1702 = vmatpush1.bf16.msra.mxu1 %v3777_v22  ;;  %v3956_v22 = vld [vmem:[%s5424_s4 + $0x190] ss:$8 sps:$4 sm:$0xff]  }
  0x81   : > { %1703 = vmatprep.subr.bf16.mxu1 %v3782_v23  ;;  %v3835_v23 = vld [vmem:[%s5422_s2 + $0x290] ss:$8 sps:$4 sm:$0xff]   ;;  %1386 = vmatpush1.bf16.msra.mxu0 %v3956_v22  ;;  %v3910_v22 = vld [vmem:[%s5422_s2 + $0x404] ss:$8 sps:$4 sm:$0xff]  }
  0x84   : > { %1704 = vmatpush1.bf16.msra.mxu1 %v3780_v24  ;;  %v3961_v24 = vld [vmem:[%s5424_s4 + $0x1a4] ss:$8 sps:$4 sm:$0xff]  }
  0x85   : > { %1815 = vmatprep.subr.bf16.mxu1 %v3788_v25  ;;  %v3840_v25 = vld [vmem:[%s5422_s2 + $0x2a4] ss:$8 sps:$4 sm:$0xff]   ;;  %1387 = vmatprep.subr.bf16.mxu0 %v3961_v24  ;;  %v3916_v24 = vld [vmem:[%s5422_s2 + $0x414] ss:$8 sps:$4 sm:$0xff]  }
  0x86   : > { %1388 = vmatpush1.bf16.msra.mxu0 %v3959_v27  ;;  %v3920_v27 = vld [vmem:[%s5422_s2 + $0x420] ss:$8 sps:$4 sm:$0xff]  }
  0x87   : > { %1722 = vmatmul.mubr.bf16.vlgmr.msra.gmra.mrb[4].mxu1 %v4326_v20 }
  0x88   : > { %1816 = vmatpush1.bf16.msra.mxu1 %v3786_v28  ;;  %1847 = vmatprep.mubr.bf16.mxu1 %v4201_v2  ;;  %v3843_v28 = vld [vmem:[%s5422_s2 + $0x2b4] ss:$8 sps:$4 sm:$0xff]  }
  0x89   : > { %1817 = vmatprep.subr.bf16.mxu1 %v3794_v29  ;;  %v3964_v29 = vld [vmem:[%s5424_s4 + $0x1b4] ss:$8 sps:$4 sm:$0xff]  }
  0x8a   : > { %1389 = vmatprep.subr.bf16.mxu0 %v3964_v29  ;;  %v3934_v29 = vld [vmem:[%s5422_s2 + $0x444] ss:$8 sps:$4 sm:$0xff]  }
  0x8b   : > { %1390 = vmatpush1.bf16.msra.mxu0 %v3962_v30  ;;  %v3932_v30 = vld [vmem:[%s5422_s2 + $0x440] ss:$8 sps:$4 sm:$0xff]  }
  0x8c   : > { %1818 = vmatpush1.bf16.msra.mxu1 %v3792_v38  ;;  %v3849_v38 = vld [vmem:[%s5422_s2 + $0x2d4] ss:$8 sps:$4 sm:$0xff]   ;;  %1391 = vmatprep.subr.bf16.mxu0 %v3967_v31 }
  0x8d   : > { %1819 = vmatprep.subr.bf16.mxu1 %v3800_v39  ;;  %v3968_v39 = vld [vmem:[%s5424_s4 + $0x1d0] ss:$8 sps:$4 sm:$0xff]   ;;  %v3940_v31 = vld [vmem:[%s5422_s2 + $0x454] ss:$8 sps:$4 sm:$0xff]  }
  0x8f   : > { %1392 = vmatpush1.bf16.msra.mxu0 %v3965_v35  ;;  %v3944_v35 = vld [vmem:[%s5422_s2 + $0x460] ss:$8 sps:$4 sm:$0xff]  }
  0x90   : > { %1820 = vmatpush1.bf16.msra.mxu1 %v3798_v46  ;;  %1393 = vmatprep.subr.bf16.mxu0 %v3970_v36  ;;  %v3976_v46 = vld [vmem:[%s5424_s4 + $0x1f4] ss:$8 sps:$4 sm:$0xff]  }
  0x91   : > { %1821 = vmatprep.subr.bf16.mxu1 %v3806_v47  ;;  %v3470_v47 = vcombine.low %v4650_v11, %v4650_v11  ;;  %v3890_v11 = vld [vmem:[%s5422_s2 + $0x330] ss:$8 sps:$4 sm:$0xff]   ;;  %v3952_v36 = vld [vmem:[%s5422_s2 + $0x474] ss:$8 sps:$4 sm:$0xff]  }
  0x93   : > { %1394 = vmatpush1.bf16.msra.mxu0 %v3968_v39 }
  0x94   : > { %1822 = vmatpush1.bf16.msra.mxu1 %v3804_v51  ;;  %1395 = vmatprep.subr.bf16.mxu0 %v3973_v42  ;;  %v1859_v51 = vrot.slane %v3470_v47, 2 }
  0x95   : > { %1823 = vmatprep.subr.bf16.mxu1 %v3812_v52  ;;  %v3857_v52 = vld [vmem:[%s5422_s2 + $0x380] ss:$8 sps:$4 sm:$0xff]  }
  0x97   : > { %1396 = vmatpush1.bf16.msra.mxu0 %v3971_v43 }
  0x98   : > { %1824 = vmatpush1.bf16.msra.mxu1 %v3810_v55  ;;  %1397 = vmatprep.subr.bf16.mxu0 %v3976_v46  ;;  %v3865_v55 = vld [vmem:[%s5422_s2 + $0x3a4] ss:$8 sps:$4 sm:$0xff]  }
  0x99   : > { %1825 = vmatprep.subr.bf16.mxu1 %v3818_v56  ;;  %v3863_v56 = vld [vmem:[%s5422_s2 + $0x3a0] ss:$8 sps:$4 sm:$0xff]  }
  0x9a   : > { %v4917_v46 = vld [vmem:[%s5425_s5 + $0x8] sm:$0x1f] }
  0x9b   : > { %1398 = vmatpush1.bf16.msra.mxu0 %v3974_v48 }
  0x9c   : > { %1826 = vmatpush1.bf16.msra.mxu1 %v3816_v59  ;;  %1568 = vmatprep.subr.bf16.mxu0 %v3979_v50  ;;  %v3871_v59 = vld [vmem:[%s5422_s2 + $0x3c4] ss:$8 sps:$4 sm:$0xff]  }
  0x9d   : > { %1827 = vmatprep.subr.bf16.mxu1 %v3824_v60  ;;  %v3869_v60 = vld [vmem:[%s5422_s2 + $0x3c0] ss:$8 sps:$4 sm:$0xff]  }
  0x9e   : > { %v4937_v50 = vld [vmem:[%s5426_s6] sm:$0x1f] }
  0xa0   : > { %1828 = vmatpush1.bf16.msra.mxu1 %v3822_v0  ;;  %v3875_v0 = vld [vmem:[%s5422_s2 + $0x3e0] ss:$8 sps:$4 sm:$0xff]  }
  0xa1   : > { %1829 = vmatprep.subr.bf16.mxu1 %v3830_v1  ;;  %v3880_v1 = vld [vmem:[%s5422_s2 + $0x3f4] ss:$8 sps:$4 sm:$0xff]  }
  0xa4   : > { %1830 = vmatpush1.bf16.msra.mxu1 %v3828_v5  ;;  %v3881_v5 = vld [vmem:[%s5422_s2 + $0x300] ss:$8 sps:$4 sm:$0xff]  }
  0xa5   : > { %1941 = vmatprep.subr.bf16.mxu1 %v3833_v10  ;;  %v3887_v10 = vld [vmem:[%s5422_s2 + $0x320] ss:$8 sps:$4 sm:$0xff]  }
  0xa7   : > { %1848 = vmatmul.mubr.bf16.vlgmr.msra.gmra.mrb[4].mxu1 %v1733_v13  ;;  %v3898_v13 = vld [vmem:[%s5422_s2 + $0x354] ss:$8 sps:$4 sm:$0xff]  }
  0xa8   : > { %1942 = vmatpush1.bf16.msra.mxu1 %v3831_v17  ;;  %1973 = vmatprep.mubr.bf16.mxu1 %v4201_v2  ;;  %v3899_v17 = vld [vmem:[%s5422_s2 + $0x360] ss:$8 sps:$4 sm:$0xff]  }
  0xa9   : > { %1943 = vmatprep.subr.bf16.mxu1 %v3837_v18  ;;  %v3904_v18 = vld [vmem:[%s5422_s2 + $0x374] ss:$8 sps:$4 sm:$0xff]  }
  0xac   : > { %1944 = vmatpush1.bf16.msra.mxu1 %v3835_v23  ;;  %v3908_v23 = vld [vmem:[%s5422_s2 + $0x400] ss:$8 sps:$4 sm:$0xff]  }
  0xad   : > { %1945 = vmatprep.subr.bf16.mxu1 %v3840_v25  ;;  %v3914_v25 = vld [vmem:[%s5422_s2 + $0x410] ss:$8 sps:$4 sm:$0xff]  }
  0xb0   : > { %1946 = vmatpush1.bf16.msra.mxu1 %v3838_v26  ;;  %v3922_v26 = vld [vmem:[%s5422_s2 + $0x424] ss:$8 sps:$4 sm:$0xff]  }
  0xb1   : > { %1947 = vmatprep.subr.bf16.mxu1 %v3843_v28  ;;  %v3926_v28 = vld [vmem:[%s5422_s2 + $0x430] ss:$8 sps:$4 sm:$0xff]  }
  0xb4   : > { %1948 = vmatpush1.bf16.msra.mxu1 %v3841_v32  ;;  %v3938_v32 = vld [vmem:[%s5422_s2 + $0x450] ss:$8 sps:$4 sm:$0xff]  }
  0xb5   : > { %1949 = vmatprep.subr.bf16.mxu1 %v3846_v34  ;;  %v3946_v34 = vld [vmem:[%s5422_s2 + $0x464] ss:$8 sps:$4 sm:$0xff]  }
  0xb8   : > { %1950 = vmatpush1.bf16.msra.mxu1 %v3844_v37  ;;  %v3950_v37 = vld [vmem:[%s5422_s2 + $0x470] ss:$8 sps:$4 sm:$0xff]  }
  0xb9   : > { %1951 = vmatprep.subr.bf16.mxu1 %v3849_v38  ;;  %v4904_v38 = vld [vmem:[%s4307_s21 + $0x24] sm:$0x3] }
  0xbc   : > { %1952 = vmatpush1.bf16.msra.mxu1 %v3847_v40  ;;  %v794_v40 = vlaneseq }
  0xbd   : > { %1953 = vmatprep.subr.bf16.mxu1 %v3852_v41 }
  0xc0   : > { %1954 = vmatpush1.bf16.msra.mxu1 %v3850_v44  ;;  %v4909_v44 = vshrl.u32 %v794_v40, 7 }
  0xc1   : > { %1955 = vmatprep.subr.bf16.mxu1 %v3855_v45 }
  0xc2   : > { %v4912_v45 = vsub.s32 0, %v4909_v44  ;;  %v4922_v48 = vsub.s32 1, %v4909_v44 }
  0xc4   : > { %1956 = vmatpush1.bf16.msra.mxu1 %v3853_v49  ;;  %v801_v47 = vrot.slane %v4917_v46, %v4912_v45  ;;  %v4927_v49 = vld [vmem:[%s5425_s5] sm:$0x1f] }
  0xc5   : > { %2291 = vmatprep.subr.bf16.mxu1 %v3859_v15  ;;  %v4932_v15 = vld [vmem:[%s5426_s6 + $0x8] sm:$0x1f] }
  0xc7   : > { %1974 = vmatmul.mubr.bf16.vlgmr.msra.gmra.mrb[4].mxu1 %v1859_v51 }
  0xc8   : > { %2292 = vmatpush1.bf16.msra.mxu1 %v3857_v52  ;;  %2323 = vmatprep.mubr.bf16.mxu1 %v4201_v2  ;;  %v811_v52 = vrot.slane %v4932_v15, %v4912_v45 }
  0xc9   : > { %2293 = vmatprep.subr.bf16.mxu1 %v3862_v53  ;;  %v1186_v53 = vrot.slane %v4927_v49, %v4922_v48 }
  0xcc   : > { %2294 = vmatpush1.bf16.msra.mxu1 %v3860_v54  ;;  %v1190_v54 = vrot.slane %v4917_v46, %v4922_v48 }
  0xcd   : > { %2295 = vmatprep.subr.bf16.mxu1 %v3865_v55  ;;  %v1196_v55 = vrot.slane %v4937_v50, %v4922_v48 }
  0xd0   : > { %2296 = vmatpush1.bf16.msra.mxu1 %v3863_v56 }
  0xd1   : > { %2297 = vmatprep.subr.bf16.mxu1 %v3868_v57  ;;  %v1200_v57 = vrot.slane %v4932_v15, %v4922_v48 }
  0xd4   : > { %2298 = vmatpush1.bf16.msra.mxu1 %v3866_v58 }
  0xd5   : > { %2299 = vmatprep.subr.bf16.mxu1 %v3871_v59 }
  0xd8   : > { %2300 = vmatpush1.bf16.msra.mxu1 %v3869_v60 }
  0xd9   : > { %2301 = vmatprep.subr.bf16.mxu1 %v3874_v61 }
  0xdc   : > { %2302 = vmatpush1.bf16.msra.mxu1 %v3872_v62 }
  0xdd   : > { %2303 = vmatprep.subr.bf16.mxu1 %v3877_v63 }
  0xe0   : > { %2304 = vmatpush1.bf16.msra.mxu1 %v3875_v0 }
  0xe1   : > { %2305 = vmatprep.subr.bf16.mxu1 %v3880_v1 }
  0xe4   : > { %2306 = vmatpush1.bf16.msra.mxu1 %v3878_v3 }
  0xe5   : > { %2412 = vmatprep.subr.bf16.mxu1 %v3883_v4 }
  0xe7   : > { %2324 = vmatmul.mubr.bf16.vlgmr.msra.gmra.mrb[8].mxu1 %v4326_v20  ;;  %v3892_v20 = vld [vmem:[%s5422_s2 + $0x334] ss:$8 sps:$4 sm:$0xff]  }
  0xe8   : > { %2413 = vmatpush1.bf16.msra.mxu1 %v3881_v5  ;;  %2444 = vmatprep.mubr.bf16.mxu1 %v4201_v2 }
  0xe9   : > { %2414 = vmatprep.subr.bf16.mxu1 %v3886_v6 }
  0xec   : > { %2415 = vmatpush1.bf16.msra.mxu1 %v3884_v8  ;;  %v3977_v8 = vld [vmem:[%s5424_s4] ss:$8 sps:$4 sm:$0xff]  }
  0xed   : > { %2416 = vmatprep.subr.bf16.mxu1 %v3889_v9 }
  0xf0   : > { %2417 = vmatpush1.bf16.msra.mxu1 %v3887_v10 }
  0xf1   : > { %2418 = vmatprep.subr.bf16.mxu1 %v3892_v20  ;;  %v3982_v20 = vld [vmem:[%s5424_s4 + $0x14] ss:$8 sps:$4 sm:$0xff]  }
  0xf4   : > { %2419 = vmatpush1.bf16.msra.mxu1 %v3890_v11  ;;  %v3980_v11 = vld [vmem:[%s5424_s4 + $0x10] ss:$8 sps:$4 sm:$0xff]  }
  0xf5   : > { %2420 = vmatprep.subr.bf16.mxu1 %v3895_v12  ;;  %v3985_v12 = vld [vmem:[%s5424_s4 + $0x24] ss:$8 sps:$4 sm:$0xff]  }
  0xf8   : > { %2421 = vmatpush1.bf16.msra.mxu1 %v3893_v7  ;;  %v3983_v7 = vld [vmem:[%s5424_s4 + $0x20] ss:$8 sps:$4 sm:$0xff]  }
  0xf9   : > { %2422 = vmatprep.subr.bf16.mxu1 %v3898_v13  ;;  %v3988_v13 = vld [vmem:[%s5424_s4 + $0x34] ss:$8 sps:$4 sm:$0xff]  }
  0xfc   : > { %2423 = vmatpush1.bf16.msra.mxu1 %v3896_v14  ;;  %v3986_v14 = vld [vmem:[%s5424_s4 + $0x30] ss:$8 sps:$4 sm:$0xff]  }
  0xfd   : > { %2424 = vmatprep.subr.bf16.mxu1 %v3901_v16  ;;  %v3991_v16 = vld [vmem:[%s5424_s4 + $0x44] ss:$8 sps:$4 sm:$0xff]  }
 0x100   : > { %2425 = vmatpush1.bf16.msra.mxu1 %v3899_v17  ;;  %v3989_v17 = vld [vmem:[%s5424_s4 + $0x40] ss:$8 sps:$4 sm:$0xff]  }
 0x101   : > { %2426 = vmatprep.subr.bf16.mxu1 %v3904_v18  ;;  %v3994_v18 = vld [vmem:[%s5424_s4 + $0x54] ss:$8 sps:$4 sm:$0xff]  }
 0x103   : > { %v4907_v39 = vpop.f32.mrb[0].mxu0 }
 0x104   : > { %2427 = vmatpush1.bf16.msra.mxu1 %v3902_v19  ;;  %v789_v41 = vpop.f32.mrb[1].mxu0  ;;  %v3992_v19 = vld [vmem:[%s5424_s4 + $0x50] ss:$8 sps:$4 sm:$0xff]  }
 0x105   : > { %2533 = vmatprep.subr.bf16.mxu1 %v3910_v22  ;;  %v791_v42 = vpop.f32.mrb[2].mxu0  ;;  %v803_v51 = vmul.f32 %v801_v47, %v789_v41  ;;  %v3997_v22 = vld [vmem:[%s5424_s4 + $0x64] ss:$8 sps:$4 sm:$0xff]   ;;  %v807_v41 = vrot.slane %v4937_v50, %v4912_v45 }
 0x106   : > { %v792_v43 = vpop.f32.mrb[3].mxu0  ;;  %v4016_v42 = vld [vmem:[%s5424_s4 + $0xd0] ss:$8 sps:$4 sm:$0xff]  }
 0x107   : > { %2445 = vmatmul.mubr.bf16.vlgmr.msra.gmra.mrb[8].mxu1 %v4555_v33  ;;  %v3928_v33 = vld [vmem:[%s5422_s2 + $0x434] ss:$8 sps:$4 sm:$0xff]   ;;  %v813_v58 = vadd.f32 %v811_v52, %v803_v51  ;;  %v4021_v43 = vld [vmem:[%s5424_s4 + $0xe4] ss:$8 sps:$4 sm:$0xff]   ;;  %v4019_v51 = vld [vmem:[%s5424_s4 + $0xe0] ss:$8 sps:$4 sm:$0xff]  }
 0x108   : > { %2534 = vmatpush1.bf16.msra.mxu1 %v3908_v23  ;;  %2565 = vmatprep.mubr.bf16.mxu1 %v4201_v2  ;;  %v3995_v23 = vld [vmem:[%s5424_s4 + $0x60] ss:$8 sps:$4 sm:$0xff]  }
 0x109   : > { %2535 = vmatprep.subr.bf16.mxu1 %v3916_v24  ;;  %v815_v3 = vmax.f32 %v813_v58, 0.0  ;;  %v4000_v24 = vld [vmem:[%s5424_s4 + $0x74] ss:$8 sps:$4 sm:$0xff]   ;;  %v4028_v58 = vld [vmem:[%s5424_s4 + $0x210] ss:$8 sps:$4 sm:$0xff]  }
 0x10b   : > { %v817_v9 = vpack.c.bf16 %v815_v3, %v815_v3  ;;  %v1986_v3 = vsub.s32 2, %v4909_v44 }
 0x10c   : > { %2536 = vmatpush1.bf16.msra.mxu1 %v3914_v25  ;;  %v3998_v25 = vld [vmem:[%s5424_s4 + $0x70] ss:$8 sps:$4 sm:$0xff]  }
 0x10d   : > { %2537 = vmatprep.subr.bf16.mxu1 %v3922_v26  ;;  %v4003_v26 = vld [vmem:[%s5424_s4 + $0x84] ss:$8 sps:$4 sm:$0xff]  }
 0x110   : > { %2538 = vmatpush1.bf16.msra.mxu1 %v3920_v27  ;;  %v4001_v27 = vld [vmem:[%s5424_s4 + $0x80] ss:$8 sps:$4 sm:$0xff]  }
 0x111   : > { %2539 = vmatprep.subr.bf16.mxu1 %v3928_v33  ;;  %v4006_v33 = vld [vmem:[%s5424_s4 + $0x94] ss:$8 sps:$4 sm:$0xff]  }
 0x114   : > { %2540 = vmatpush1.bf16.msra.mxu1 %v3926_v28  ;;  %v4004_v28 = vld [vmem:[%s5424_s4 + $0x90] ss:$8 sps:$4 sm:$0xff]  }
 0x115   : > { %2541 = vmatprep.subr.bf16.mxu1 %v3934_v29  ;;  %v4009_v29 = vld [vmem:[%s5424_s4 + $0xa4] ss:$8 sps:$4 sm:$0xff]  }
 0x118   : > { %2542 = vmatpush1.bf16.msra.mxu1 %v3932_v30  ;;  %v4007_v30 = vld [vmem:[%s5424_s4 + $0xa0] ss:$8 sps:$4 sm:$0xff]  }
 0x119   : > { %2543 = vmatprep.subr.bf16.mxu1 %v3940_v31  ;;  %v4012_v31 = vld [vmem:[%s5424_s4 + $0xb4] ss:$8 sps:$4 sm:$0xff]  }
 0x11c   : > { %2544 = vmatpush1.bf16.msra.mxu1 %v3938_v32  ;;  %v4010_v32 = vld [vmem:[%s5424_s4 + $0xb0] ss:$8 sps:$4 sm:$0xff]  }
 0x11d   : > { %2545 = vmatprep.subr.bf16.mxu1 %v3946_v34  ;;  %v4015_v34 = vld [vmem:[%s5424_s4 + $0xc4] ss:$8 sps:$4 sm:$0xff]  }
 0x120   : > { %2546 = vmatpush1.bf16.msra.mxu1 %v3944_v35  ;;  %v797_v35 = vrot.slane %v4927_v49, %v4912_v45 }
 0x121   : > { %2547 = vmatprep.subr.bf16.mxu1 %v3952_v36  ;;  %v4013_v36 = vld [vmem:[%s5424_s4 + $0xc0] ss:$8 sps:$4 sm:$0xff]  }
 0x122   : > { %v802_v40 = vmul.f32 %v797_v35, %v4907_v39  ;;  %v4024_v39 = vld [vmem:[%s5424_s4 + $0xf4] ss:$8 sps:$4 sm:$0xff]   ;;  %v1997_v35 = vrot.slane %v4937_v50, %v1986_v3 }
 0x124   : > { %2548 = vmatpush1.bf16.msra.mxu1 %v3950_v37  ;;  %v4018_v37 = vld [vmem:[%s5424_s4 + $0xd4] ss:$8 sps:$4 sm:$0xff]   ;;  %v812_v47 = vadd.f32 %v807_v41, %v802_v40 }
 0x125   : > { %v4072_v41 = vld [vmem:[%s5424_s4 + $0x2f4] ss:$8 sps:$4 sm:$0xff]  }
 0x126   : > { %v814_v52 = vmax.f32 %v812_v47, 0.0  ;;  %v4075_v47 = vld [vmem:[%s5424_s4 + $0x304] ss:$8 sps:$4 sm:$0xff]  }
 0x127   : > { %2566 = vmatmul.mubr.bf16.vlgmr.msra.gmra.mrb[8].mxu1 %v4904_v38 }
 0x13a   : > { %v1174_v56 = vpop.f32.mrb[0].mxu1 }
 0x13b   : > { %v1191_v59 = vmul.f32 %v1186_v53, %v1174_v56  ;;  %v1176_v60 = vpop.f32.mrb[1].mxu1  ;;  %v4022_v53 = vld [vmem:[%s5424_s4 + $0xf0] ss:$8 sps:$4 sm:$0xff]   ;;  %v4025_v56 = vld [vmem:[%s5424_s4 + $0x200] ss:$8 sps:$4 sm:$0xff]  }
 0x13c   : > { %v1192_v61 = vmul.f32 %v1190_v54, %v1176_v60  ;;  %v1178_v62 = vpop.f32.mrb[2].mxu1  ;;  %v4027_v54 = vld [vmem:[%s5424_s4 + $0x204] ss:$8 sps:$4 sm:$0xff]   ;;  %v4031_v60 = vld [vmem:[%s5424_s4 + $0x220] ss:$8 sps:$4 sm:$0xff]  }
 0x13d   : > { %v1201_v63 = vadd.f32 %v1196_v55, %v1191_v59  ;;  %v1179_v0 = vpop.f32.mrb[3].mxu1  ;;  %v816_v55 = vpack.c.bf16 %v814_v52, %v814_v52  ;;  %v4033_v59 = vld [vmem:[%s5424_s4 + $0x224] ss:$8 sps:$4 sm:$0xff]   ;;  %v4034_v62 = vld [vmem:[%s5424_s4 + $0x230] ss:$8 sps:$4 sm:$0xff]  }
 0x13e   : > { %v1202_v1 = vadd.f32 %v1200_v57, %v1192_v61  ;;  %v4030_v57 = vld [vmem:[%s5424_s4 + $0x214] ss:$8 sps:$4 sm:$0xff]   ;;  %v4037_v0 = vld [vmem:[%s5424_s4 + $0x240] ss:$8 sps:$4 sm:$0xff]  }
 0x13f   : > { %v1203_v4 = vmax.f32 %v1201_v63, 0.0  ;;  %v4036_v61 = vld [vmem:[%s5424_s4 + $0x234] ss:$8 sps:$4 sm:$0xff]   ;;  %v4039_v63 = vld [vmem:[%s5424_s4 + $0x244] ss:$8 sps:$4 sm:$0xff]  }
 0x140   : > { %v1204_v5 = vmax.f32 %v1202_v1, 0.0  ;;  %v4042_v1 = vld [vmem:[%s5424_s4 + $0x254] ss:$8 sps:$4 sm:$0xff]  }
 0x141   : > { %v1205_v10 = vpack.c.bf16 %v1203_v4, %v1203_v4  ;;  %v4040_v4 = vld [vmem:[%s5424_s4 + $0x250] ss:$8 sps:$4 sm:$0xff]   ;;  %v4078_v52 = vld [vmem:[%s5424_s4 + $0x314] ss:$8 sps:$4 sm:$0xff]  }
 0x142   : > { %v1206_v6 = vpack.c.bf16 %v1204_v5, %v1204_v5  ;;  %v4045_v5 = vld [vmem:[%s5424_s4 + $0x264] ss:$8 sps:$4 sm:$0xff]  }
 0x144   : > { %1399 = vmatprep.mubr.bf16.mxu0 %v1206_v6  ;;  %v1991_v6 = vrot.slane %v4917_v46, %v1986_v3 }
 0x145   : > { %1400 = vmatmul.mubr.bf16.vlgmr.msra.gmra.mrb[4].mxu0 %v1205_v10  ;;  %v4043_v10 = vld [vmem:[%s5424_s4 + $0x260] ss:$8 sps:$4 sm:$0xff]  }
 0x146   : > { %1569 = vmatpush1.bf16.msra.mxu0 %v3977_v8  ;;  %1600 = vmatprep.mubr.bf16.mxu0 %v817_v9  ;;  %v2001_v9 = vrot.slane %v4932_v15, %v1986_v3 }
 0x147   : > { %1570 = vmatprep.subr.bf16.mxu0 %v3982_v20 }
 0x14a   : > { %1571 = vmatpush1.bf16.msra.mxu0 %v3980_v11  ;;  %v4048_v11 = vld [vmem:[%s5424_s4 + $0x274] ss:$8 sps:$4 sm:$0xff]  }
 0x14b   : > { %1572 = vmatprep.subr.bf16.mxu0 %v3985_v12 }
 0x14e   : > { %1573 = vmatpush1.bf16.msra.mxu0 %v3983_v7 }
 0x14f   : > { %1574 = vmatprep.subr.bf16.mxu0 %v3988_v13 }
 0x152   : > { %1575 = vmatpush1.bf16.msra.mxu0 %v3986_v14 }
 0x153   : > { %1576 = vmatprep.subr.bf16.mxu0 %v3991_v16  ;;  %v4046_v16 = vld [vmem:[%s5424_s4 + $0x270] ss:$8 sps:$4 sm:$0xff]  }
 0x156   : > { %1577 = vmatpush1.bf16.msra.mxu0 %v3989_v17  ;;  %v4051_v17 = vld [vmem:[%s5424_s4 + $0x284] ss:$8 sps:$4 sm:$0xff]  }
 0x157   : > { %1578 = vmatprep.subr.bf16.mxu0 %v3994_v18 }
 0x15a   : > { %1579 = vmatpush1.bf16.msra.mxu0 %v3992_v19 }
 0x15b   : > { %1580 = vmatprep.subr.bf16.mxu0 %v3997_v22  ;;  %v4049_v22 = vld [vmem:[%s5424_s4 + $0x280] ss:$8 sps:$4 sm:$0xff]  }
 0x15e   : > { %1581 = vmatpush1.bf16.msra.mxu0 %v3995_v23  ;;  %v4054_v23 = vld [vmem:[%s5424_s4 + $0x294] ss:$8 sps:$4 sm:$0xff]  }
 0x15f   : > { %1582 = vmatprep.subr.bf16.mxu0 %v4000_v24  ;;  %v4052_v24 = vld [vmem:[%s5424_s4 + $0x290] ss:$8 sps:$4 sm:$0xff]  }
 0x162   : > { %1583 = vmatpush1.bf16.msra.mxu0 %v3998_v25  ;;  %v4057_v25 = vld [vmem:[%s5424_s4 + $0x2a4] ss:$8 sps:$4 sm:$0xff]  }
 0x163   : > { %1584 = vmatprep.subr.bf16.mxu0 %v4003_v26  ;;  %v4055_v26 = vld [vmem:[%s5424_s4 + $0x2a0] ss:$8 sps:$4 sm:$0xff]  }
 0x166   : > { %1585 = vmatpush1.bf16.msra.mxu0 %v4001_v27  ;;  %v4060_v27 = vld [vmem:[%s5424_s4 + $0x2b4] ss:$8 sps:$4 sm:$0xff]  }
 0x167   : > { %1586 = vmatprep.subr.bf16.mxu0 %v4006_v33  ;;  %v4058_v33 = vld [vmem:[%s5424_s4 + $0x2b0] ss:$8 sps:$4 sm:$0xff]  }
 0x16a   : > { %1587 = vmatpush1.bf16.msra.mxu0 %v4004_v28  ;;  %v4063_v28 = vld [vmem:[%s5424_s4 + $0x2c4] ss:$8 sps:$4 sm:$0xff]  }
 0x16b   : > { %1588 = vmatprep.subr.bf16.mxu0 %v4009_v29  ;;  %v4061_v29 = vld [vmem:[%s5424_s4 + $0x2c0] ss:$8 sps:$4 sm:$0xff]  }
 0x16e   : > { %1589 = vmatpush1.bf16.msra.mxu0 %v4007_v30  ;;  %v1987_v30 = vrot.slane %v4927_v49, %v1986_v3  ;;  %v4099_v3 = vld [vmem:[%s5424_s4 + $0x384] ss:$8 sps:$4 sm:$0xff]  }
 0x16f   : > { %1590 = vmatprep.subr.bf16.mxu0 %v4012_v31  ;;  %v4066_v31 = vld [vmem:[%s5424_s4 + $0x2d4] ss:$8 sps:$4 sm:$0xff]  }
 0x172   : > { %1591 = vmatpush1.bf16.msra.mxu0 %v4010_v32  ;;  %v4064_v32 = vld [vmem:[%s5424_s4 + $0x2d0] ss:$8 sps:$4 sm:$0xff]  }
 0x173   : > { %1592 = vmatprep.subr.bf16.mxu0 %v4015_v34 }
 0x176   : > { %1593 = vmatpush1.bf16.msra.mxu0 %v4013_v36  ;;  %v4069_v36 = vld [vmem:[%s5424_s4 + $0x2e4] ss:$8 sps:$4 sm:$0xff]  }
 0x177   : > { %1594 = vmatprep.subr.bf16.mxu0 %v4018_v37  ;;  %v4067_v37 = vld [vmem:[%s5424_s4 + $0x2e0] ss:$8 sps:$4 sm:$0xff]  }
 0x17a   : > { %1595 = vmatpush1.bf16.msra.mxu0 %v4016_v42  ;;  %v4070_v42 = vld [vmem:[%s5424_s4 + $0x2f0] ss:$8 sps:$4 sm:$0xff]  }
 0x17b   : > { %1596 = vmatprep.subr.bf16.mxu0 %v4021_v43 }
 0x17e   : > { %1597 = vmatpush1.bf16.msra.mxu0 %v4019_v51  ;;  %v4073_v51 = vld [vmem:[%s5424_s4 + $0x300] ss:$8 sps:$4 sm:$0xff]  }
 0x17f   : > { %1598 = vmatprep.subr.bf16.mxu0 %v4024_v39 }
 0x182   : > { %1599 = vmatpush1.bf16.msra.mxu0 %v4022_v53  ;;  %v4076_v53 = vld [vmem:[%s5424_s4 + $0x310] ss:$8 sps:$4 sm:$0xff]  }
 0x183   : > { %2168 = vmatprep.subr.bf16.mxu0 %v4027_v54  ;;  %v4081_v54 = vld [vmem:[%s5424_s4 + $0x324] ss:$8 sps:$4 sm:$0xff]  }
 0x185   : > { %1601 = vmatmul.mubr.bf16.vlgmr.msra.gmra.mrb[8].mxu0 %v816_v55  ;;  %v4079_v55 = vld [vmem:[%s5424_s4 + $0x320] ss:$8 sps:$4 sm:$0xff]  }
 0x186   : > { %2169 = vmatpush1.bf16.msra.mxu0 %v4025_v56  ;;  %v4084_v56 = vld [vmem:[%s5424_s4 + $0x334] ss:$8 sps:$4 sm:$0xff]  }
 0x187   : > { %2170 = vmatprep.subr.bf16.mxu0 %v4030_v57  ;;  %v4082_v57 = vld [vmem:[%s5424_s4 + $0x330] ss:$8 sps:$4 sm:$0xff]  }
 0x18a   : > { %2171 = vmatpush1.bf16.msra.mxu0 %v4028_v58  ;;  %v4087_v58 = vld [vmem:[%s5424_s4 + $0x344] ss:$8 sps:$4 sm:$0xff]  }
 0x18b   : > { %2172 = vmatprep.subr.bf16.mxu0 %v4033_v59  ;;  %v4085_v59 = vld [vmem:[%s5424_s4 + $0x340] ss:$8 sps:$4 sm:$0xff]  }
 0x18e   : > { %2173 = vmatpush1.bf16.msra.mxu0 %v4031_v60  ;;  %v4090_v60 = vld [vmem:[%s5424_s4 + $0x354] ss:$8 sps:$4 sm:$0xff]  }
 0x18f   : > { %2174 = vmatprep.subr.bf16.mxu0 %v4036_v61  ;;  %v4088_v61 = vld [vmem:[%s5424_s4 + $0x350] ss:$8 sps:$4 sm:$0xff]  }
 0x192   : > { %2175 = vmatpush1.bf16.msra.mxu0 %v4034_v62  ;;  %v4093_v62 = vld [vmem:[%s5424_s4 + $0x364] ss:$8 sps:$4 sm:$0xff]  }
 0x193   : > { %2176 = vmatprep.subr.bf16.mxu0 %v4039_v63  ;;  %v4091_v63 = vld [vmem:[%s5424_s4 + $0x360] ss:$8 sps:$4 sm:$0xff]  }
 0x196   : > { %2177 = vmatpush1.bf16.msra.mxu0 %v4037_v0  ;;  %v4096_v0 = vld [vmem:[%s5424_s4 + $0x374] ss:$8 sps:$4 sm:$0xff]  }
 0x197   : > { %2178 = vmatprep.subr.bf16.mxu0 %v4042_v1  ;;  %v4094_v1 = vld [vmem:[%s5424_s4 + $0x370] ss:$8 sps:$4 sm:$0xff]  }
 0x19a   : > { %2179 = vmatpush1.bf16.msra.mxu0 %v4040_v4  ;;  %v1975_v8 = vpop.f32.mrb[4].mxu1  ;;  %v4097_v4 = vld [vmem:[%s5424_s4 + $0x380] ss:$8 sps:$4 sm:$0xff]  }
 0x19b   : > { %v1977_v20 = vpop.f32.mrb[5].mxu1  ;;  %2180 = vmatprep.subr.bf16.mxu0 %v4045_v5  ;;  %v1992_v34 = vmul.f32 %v1987_v30, %v1975_v8  ;;  %v4102_v5 = vld [vmem:[%s5424_s4 + $0x394] ss:$8 sps:$4 sm:$0xff]   ;;  %v4105_v8 = vld [vmem:[%s5424_s4 + $0x3a4] ss:$8 sps:$4 sm:$0xff]  }
 0x19c   : > { %v1993_v12 = vmul.f32 %v1991_v6, %v1977_v20  ;;  %v1979_v7 = vpop.f32.mrb[6].mxu1  ;;  %v4100_v6 = vld [vmem:[%s5424_s4 + $0x390] ss:$8 sps:$4 sm:$0xff]  }
 0x19d   : > { %v1980_v13 = vpop.f32.mrb[7].mxu1  ;;  %v2002_v40 = vadd.f32 %v1997_v35, %v1992_v34  ;;  %v4106_v20 = vld [vmem:[%s5424_s4 + $0x3b0] ss:$8 sps:$4 sm:$0xff]   ;;  %v4114_v7 = vld [vmem:[%s5424_s4 + $0x3d4] ss:$8 sps:$4 sm:$0xff]  }
 0x19e   : > { %v2003_v14 = vadd.f32 %v2001_v9, %v1993_v12  ;;  %2181 = vmatpush1.bf16.msra.mxu0 %v4043_v10  ;;  %v4103_v9 = vld [vmem:[%s5424_s4 + $0x3a0] ss:$8 sps:$4 sm:$0xff]   ;;  %v4108_v10 = vld [vmem:[%s5424_s4 + $0x3b4] ss:$8 sps:$4 sm:$0xff]   ;;  %v2578_v13 = vsub.s32 3, %v4909_v44  ;;  %v2812_v44 = vunpack.c.l.bf16 %v4904_v38 }
 0x19f   : > { %2182 = vmatprep.subr.bf16.mxu0 %v4048_v11  ;;  %v2004_v43 = vmax.f32 %v2002_v40, 0.0  ;;  %v4111_v11 = vld [vmem:[%s5424_s4 + $0x3c4] ss:$8 sps:$4 sm:$0xff]   ;;  %v4109_v12 = vld [vmem:[%s5424_s4 + $0x3c0] ss:$8 sps:$4 sm:$0xff]  }
 0x1a0   : > { %v2005_v18 = vmax.f32 %v2003_v14, 0.0  ;;  %v342_v14 = vld [vmem:[%s4307_s21 + $0x20] sm:$0xf]  ;;  %v2822_v34 = vsel %vm2821_vm0, %v2812_v44, 0.0  ;;  %v4123_v40 = vld [vmem:[%s5423_s3 + $0x4] ss:$8 sps:$4 sm:$0xff]  }
 0x1a1   : > { %v2006_v39 = vpack.c.bf16 %v2004_v43, %v2004_v43  ;;  %v4162_v44 = vld [vmem:[%s5424_s4 + $0x454] ss:$8 sps:$4 sm:$0xff]  }
 0x1a2   : > { %v2007_v19 = vpack.c.bf16 %v2005_v18, %v2005_v18  ;;  %2183 = vmatpush1.bf16.msra.mxu0 %v4046_v16  ;;  %v4112_v16 = vld [vmem:[%s5424_s4 + $0x3d0] ss:$8 sps:$4 sm:$0xff]   ;;  %v4117_v18 = vld [vmem:[%s5424_s4 + $0x3e4] ss:$8 sps:$4 sm:$0xff]  }
 0x1a3   : > { %2184 = vmatprep.subr.bf16.mxu0 %v4051_v17  ;;  %v2579_v17 = vrot.slane %v4927_v49, %v2578_v13 }
 0x1a4   : > { %2200 = vmatprep.mubr.bf16.mxu0 %v2007_v19  ;;  %v2583_v19 = vrot.slane %v4917_v46, %v2578_v13 }
 0x1a6   : > { %2185 = vmatpush1.bf16.msra.mxu0 %v4049_v22  ;;  %v2811_v22 = vunpack.c.l.bf16 %v342_v14  ;;  %v4153_v14 = vld [vmem:[%s5424_s4 + $0x424] ss:$8 sps:$4 sm:$0xff]  }
 0x1a7   : > { %2186 = vmatprep.subr.bf16.mxu0 %v4054_v23  ;;  %v2589_v23 = vrot.slane %v4937_v50, %v2578_v13 }
 0x1a8   : > { %v2820_v38 = vadd.f32 %v4668_v21, %v2811_v22  ;;  %v4121_v21 = vld [vmem:[%s5423_s3] ss:$8 sps:$4 sm:$0xff]   ;;  %v4159_v22 = vld [vmem:[%s5424_s4 + $0x444] ss:$8 sps:$4 sm:$0xff]  }
 0x1aa   : > { %2187 = vmatpush1.bf16.msra.mxu0 %v4052_v24 }
 0x1ab   : > { %2188 = vmatprep.subr.bf16.mxu0 %v4057_v25  ;;  %v2593_v25 = vrot.slane %v4932_v15, %v2578_v13  ;;  %v4148_v13 = vld [vmem:[%s5424_s4 + $0x410] ss:$8 sps:$4 sm:$0xff]  }
 0x1ae   : > { %2189 = vmatpush1.bf16.msra.mxu0 %v4055_v26  ;;  %v4115_v26 = vld [vmem:[%s5424_s4 + $0x3e0] ss:$8 sps:$4 sm:$0xff]  }
 0x1af   : > { %2190 = vmatprep.subr.bf16.mxu0 %v4060_v27 }
 0x1b2   : > { %2191 = vmatpush1.bf16.msra.mxu0 %v4058_v33 }
 0x1b3   : > { %2192 = vmatprep.subr.bf16.mxu0 %v4063_v28  ;;  %v4120_v28 = vld [vmem:[%s5424_s4 + $0x3f4] ss:$8 sps:$4 sm:$0xff]  }
 0x1b6   : > { %2193 = vmatpush1.bf16.msra.mxu0 %v4061_v29 }
 0x1b7   : > { %2194 = vmatprep.subr.bf16.mxu0 %v4066_v31 }
 0x1ba   : > { %2195 = vmatpush1.bf16.msra.mxu0 %v4064_v32 }
 0x1bb   : > { %2196 = vmatprep.subr.bf16.mxu0 %v4069_v36  ;;  %v4118_v36 = vld [vmem:[%s5424_s4 + $0x3f0] ss:$8 sps:$4 sm:$0xff]  }
 0x1be   : > { %2197 = vmatpush1.bf16.msra.mxu0 %v4067_v37 }
 0x1bf   : > { %2198 = vmatprep.subr.bf16.mxu0 %v4072_v41 }
 0x1c2   : > { %2199 = vmatpush1.bf16.msra.mxu0 %v4070_v42  ;;  %v2823_v42 = vadd.f32 %v2822_v34, %v2820_v38  ;;  %v4171_v34 = vld [vmem:[%s5424_s4 + $0x484] ss:$8 sps:$4 sm:$0xff]  }
 0x1c3   : > { %2760 = vmatprep.subr.bf16.mxu0 %v4075_v47 }
 0x1c5   : > { %2201 = vmatmul.mubr.bf16.vlgmr.msra.gmra.mrb[12].mxu0 %v2006_v39  ;;  %v2824_v39 = vrot.slane %v2823_v42, 4 }
 0x1c6   : > { %2761 = vmatpush1.bf16.msra.mxu0 %v4073_v51  ;;  %v4126_v51 = vld [vmem:[%s5423_s3 + $0x14] ss:$8 sps:$4 sm:$0xff]  }
 0x1c7   : > { %2762 = vmatprep.subr.bf16.mxu0 %v4078_v52  ;;  %v4124_v52 = vld [vmem:[%s5423_s3 + $0x10] ss:$8 sps:$4 sm:$0xff]  }
 0x1ca   : > { %2763 = vmatpush1.bf16.msra.mxu0 %v4076_v53  ;;  %v4129_v53 = vld [vmem:[%s5423_s3 + $0x24] ss:$8 sps:$4 sm:$0xff]  }
 0x1cb   : > { %2764 = vmatprep.subr.bf16.mxu0 %v4081_v54  ;;  %v2825_v54 = vadd.f32 %v2824_v39, %v2823_v42  ;;  %v4180_v42 = vld [vmem:[%s5424_s4 + $0x4b4] ss:$8 sps:$4 sm:$0xff]   ;;  %v4184_v39 = vld [vmem:[%s5424_s4 + $0x4d0] ss:$8 sps:$4 sm:$0xff]  }
 0x1ce   : > { %2765 = vmatpush1.bf16.msra.mxu0 %v4079_v55  ;;  %v4127_v55 = vld [vmem:[%s5423_s3 + $0x20] ss:$8 sps:$4 sm:$0xff]  }
 0x1cf   : > { %2766 = vmatprep.subr.bf16.mxu0 %v4084_v56  ;;  %v4132_v56 = vld [vmem:[%s5423_s3 + $0x34] ss:$8 sps:$4 sm:$0xff]  }
 0x1d2   : > { %2767 = vmatpush1.bf16.msra.mxu0 %v4082_v57  ;;  %v2826_v57 = vrot.slane %v2825_v54, 2 }
 0x1d3   : > { %2768 = vmatprep.subr.bf16.mxu0 %v4087_v58  ;;  %v4135_v58 = vld [vmem:[%s5423_s3 + $0x44] ss:$8 sps:$4 sm:$0xff]  }
 0x1d6   : > { %2769 = vmatpush1.bf16.msra.mxu0 %v4085_v59  ;;  %v2827_v59 = vadd.f32 %v2826_v57, %v2825_v54  ;;  %v4192_v54 = vld [vmem:[%s5424_s4 + $0x4f4] ss:$8 sps:$4 sm:$0xff]  }
 0x1d7   : > { %2770 = vmatprep.subr.bf16.mxu0 %v4090_v60  ;;  %v4133_v60 = vld [vmem:[%s5423_s3 + $0x40] ss:$8 sps:$4 sm:$0xff]  }
 0x1da   : > { %2771 = vmatpush1.bf16.msra.mxu0 %v4088_v61  ;;  %v4138_v61 = vld [vmem:[%s5423_s3 + $0x54] ss:$8 sps:$4 sm:$0xff]  }
 0x1db   : > { %2772 = vmatprep.subr.bf16.mxu0 %v4093_v62  ;;  %v2828_v62 = vrot.slane %v2827_v59, 1 }
 0x1de   : > { %2773 = vmatpush1.bf16.msra.mxu0 %v4091_v63  ;;  %v4136_v63 = vld [vmem:[%s5423_s3 + $0x50] ss:$8 sps:$4 sm:$0xff]  }
 0x1df   : > { %2774 = vmatprep.subr.bf16.mxu0 %v4096_v0  ;;  %v4141_v0 = vld [vmem:[%s5423_s3 + $0x64] ss:$8 sps:$4 sm:$0xff]  }
 0x1e2   : > { %2775 = vmatpush1.bf16.msra.mxu0 %v4094_v1 }
 0x1e3   : > { %2776 = vmatprep.subr.bf16.mxu0 %v4099_v3 }
 0x1e6   : > { %2777 = vmatpush1.bf16.msra.mxu0 %v4097_v4  ;;  %v2829_v4 = vadd.f32 %v2828_v62, %v2827_v59 }
 0x1e7   : > { %2778 = vmatprep.subr.bf16.mxu0 %v4102_v5 }
 0x1ea   : > { %2779 = vmatpush1.bf16.msra.mxu0 %v4100_v6  ;;  %v4139_v6 = vld [vmem:[%s5423_s3 + $0x60] ss:$8 sps:$4 sm:$0xff]  }
 0x1eb   : > { %2780 = vmatprep.subr.bf16.mxu0 %v4105_v8  ;;  %v4144_v8 = vld [vmem:[%s5423_s3 + $0x74] ss:$8 sps:$4 sm:$0xff]  }
 0x1ee   : > { %2781 = vmatpush1.bf16.msra.mxu0 %v4103_v9 }
 0x1ef   : > { %2782 = vmatprep.subr.bf16.mxu0 %v4108_v10  ;;  %v4145_v10 = vld [vmem:[%s5424_s4 + $0x400] ss:$8 sps:$4 sm:$0xff]  }
 0x1f2   : > { %2783 = vmatpush1.bf16.msra.mxu0 %v4106_v20  ;;  %v4147_v20 = vld [vmem:[%s5424_s4 + $0x404] ss:$8 sps:$4 sm:$0xff]  }
 0x1f3   : > { %2784 = vmatprep.subr.bf16.mxu0 %v4111_v11  ;;  %v4150_v11 = vld [vmem:[%s5424_s4 + $0x414] ss:$8 sps:$4 sm:$0xff]   ;;  %3150 = vmatprep.subr.bf16.mxu1 %v4147_v20 }
 0x1f4   : > { %3151 = vmatpush1.bf16.msra.mxu1 %v4145_v10 }
 0x1f5   : > { %3152 = vmatprep.subr.bf16.mxu1 %v4150_v11 }
 0x1f6   : > { %2785 = vmatpush1.bf16.msra.mxu0 %v4109_v12  ;;  %v2831_v12 = vmul.f32 0.25, %v2829_v4  ;;  %v2972_v4 = vrot.slane %v4927_v49, 4 }
 0x1f7   : > { %2786 = vmatprep.subr.bf16.mxu0 %v4114_v7  ;;  %v4142_v7 = vld [vmem:[%s5423_s3 + $0x70] ss:$8 sps:$4 sm:$0xff]  }
 0x1f8   : > { %3153 = vmatpush1.bf16.msra.mxu1 %v4148_v13 }
 0x1f9   : > { %3154 = vmatprep.subr.bf16.mxu1 %v4153_v14 }
 0x1fa   : > { %2787 = vmatpush1.bf16.msra.mxu0 %v4112_v16  ;;  %v2567_v24 = vpop.f32.mrb[8].mxu1  ;;  %v2832_v16 = vpack.c.bf16 %v2831_v12, %v2831_v12 }
 0x1fb   : > { %v2584_v27 = vmul.f32 %v2579_v17, %v2567_v24  ;;  %v2569_v33 = vpop.f32.mrb[9].mxu1  ;;  %2788 = vmatprep.subr.bf16.mxu0 %v4117_v18  ;;  %v4151_v17 = vld [vmem:[%s5424_s4 + $0x420] ss:$8 sps:$4 sm:$0xff]   ;;  %v4156_v18 = vld [vmem:[%s5424_s4 + $0x434] ss:$8 sps:$4 sm:$0xff]  }
 0x1fc   : > { %v2585_v29 = vmul.f32 %v2583_v19, %v2569_v33  ;;  %v2571_v30 = vpop.f32.mrb[10].mxu1  ;;  %3155 = vmatpush1.bf16.msra.mxu1 %v4151_v17  ;;  %v4154_v19 = vld [vmem:[%s5424_s4 + $0x430] ss:$8 sps:$4 sm:$0xff]   ;;  %v4165_v33 = vld [vmem:[%s5424_s4 + $0x464] ss:$8 sps:$4 sm:$0xff]  }
 0x1fd   : > { %v2594_v31 = vadd.f32 %v2589_v23, %v2584_v27  ;;  %v2572_v32 = vpop.f32.mrb[11].mxu1  ;;  %3156 = vmatprep.subr.bf16.mxu1 %v4156_v18  ;;  %v4157_v23 = vld [vmem:[%s5424_s4 + $0x440] ss:$8 sps:$4 sm:$0xff]   ;;  %v4160_v24 = vld [vmem:[%s5424_s4 + $0x450] ss:$8 sps:$4 sm:$0xff]  }
 0x1fe   : > { %v2595_v35 = vadd.f32 %v2593_v25, %v2585_v29  ;;  %2789 = vmatpush1.bf16.msra.mxu0 %v4115_v26  ;;  %v4163_v30 = vld [vmem:[%s5424_s4 + $0x460] ss:$8 sps:$4 sm:$0xff]   ;;  %v4166_v32 = vld [vmem:[%s5424_s4 + $0x470] ss:$8 sps:$4 sm:$0xff]  }
 0x1ff   : > { %v2596_v37 = vmax.f32 %v2594_v31, 0.0  ;;  %2790 = vmatprep.subr.bf16.mxu0 %v4120_v28  ;;  %v4168_v31 = vld [vmem:[%s5424_s4 + $0x474] ss:$8 sps:$4 sm:$0xff]  }
 0x200   : > { %v2597_v41 = vmax.f32 %v2595_v35, 0.0  ;;  %3157 = vmatpush1.bf16.msra.mxu1 %v4154_v19  ;;  %v4169_v35 = vld [vmem:[%s5424_s4 + $0x480] ss:$8 sps:$4 sm:$0xff]  }
 0x201   : > { %v2598_v47 = vpack.c.bf16 %v2596_v37, %v2596_v37  ;;  %3158 = vmatprep.subr.bf16.mxu1 %v4159_v22  ;;  %v4172_v37 = vld [vmem:[%s5424_s4 + $0x490] ss:$8 sps:$4 sm:$0xff]  }
 0x202   : > { %v2599_v43 = vpack.c.bf16 %v2597_v41, %v2597_v41  ;;  %2791 = vmatpush1.bf16.msra.mxu0 %v4118_v36  ;;  %v4174_v36 = vld [vmem:[%s5424_s4 + $0x494] ss:$8 sps:$4 sm:$0xff]   ;;  %v4175_v41 = vld [vmem:[%s5424_s4 + $0x4a0] ss:$8 sps:$4 sm:$0xff]  }
 0x203   : > { %2929 = vmatprep.subr.bf16.mxu0 %v4123_v40  ;;  %v4177_v40 = vld [vmem:[%s5424_s4 + $0x4a4] ss:$8 sps:$4 sm:$0xff]  }
 0x204   : > { %2792 = vmatprep.mubr.bf16.mxu0 %v2599_v43  ;;  %3159 = vmatpush1.bf16.msra.mxu1 %v4157_v23  ;;  %v4178_v43 = vld [vmem:[%s5424_s4 + $0x4b0] ss:$8 sps:$4 sm:$0xff]  }
 0x205   : > { %2793 = vmatmul.mubr.bf16.vlgmr.msra.gmra.mrb[16].mxu0 %v2598_v47  ;;  %3160 = vmatprep.subr.bf16.mxu1 %v4162_v44  ;;  %v4181_v47 = vld [vmem:[%s5424_s4 + $0x4c0] ss:$8 sps:$4 sm:$0xff]  }
 0x206   : > { %2930 = vmatpush1.bf16.msra.mxu0 %v4121_v21  ;;  %2961 = vmatprep.mubr.bf16.mxu0 %v4201_v2  ;;  %v4130_v2 = vld [vmem:[%s5423_s3 + $0x30] ss:$8 sps:$4 sm:$0xff]   ;;  %v4183_v21 = vld [vmem:[%s5424_s4 + $0x4c4] ss:$8 sps:$4 sm:$0xff]  }
 0x207   : > { %2931 = vmatprep.subr.bf16.mxu0 %v4126_v51  ;;  %v4186_v51 = vld [vmem:[%s5424_s4 + $0x4d4] ss:$8 sps:$4 sm:$0xff]  }
 0x208   : > { %3161 = vmatpush1.bf16.msra.mxu1 %v4160_v24 }
 0x209   : > { %3162 = vmatprep.subr.bf16.mxu1 %v4165_v33 }
 0x20a   : > { %2932 = vmatpush1.bf16.msra.mxu0 %v4124_v52  ;;  %v4189_v52 = vld [vmem:[%s5424_s4 + $0x4e4] ss:$8 sps:$4 sm:$0xff]  }
 0x20b   : > { %2933 = vmatprep.subr.bf16.mxu0 %v4129_v53  ;;  %v4187_v53 = vld [vmem:[%s5424_s4 + $0x4e0] ss:$8 sps:$4 sm:$0xff]  }
 0x20c   : > { %3163 = vmatpush1.bf16.msra.mxu1 %v4163_v30 }
 0x20d   : > { %3164 = vmatprep.subr.bf16.mxu1 %v4168_v31 }
 0x20e   : > { %2934 = vmatpush1.bf16.msra.mxu0 %v4127_v55  ;;  %v4190_v55 = vld [vmem:[%s5424_s4 + $0x4f0] ss:$8 sps:$4 sm:$0xff]  }
 0x20f   : > { %2935 = vmatprep.subr.bf16.mxu0 %v4132_v56 }
 0x210   : > { %3165 = vmatpush1.bf16.msra.mxu1 %v4166_v32 }
 0x211   : > { %3166 = vmatprep.subr.bf16.mxu1 %v4171_v34 }
 0x212   : > { %2936 = vmatpush1.bf16.msra.mxu0 %v4130_v2 }
 0x213   : > { %2937 = vmatprep.subr.bf16.mxu0 %v4135_v58 }
 0x214   : > { %3167 = vmatpush1.bf16.msra.mxu1 %v4169_v35 }
 0x215   : > { %3168 = vmatprep.subr.bf16.mxu1 %v4174_v36 }
 0x216   : > { %2938 = vmatpush1.bf16.msra.mxu0 %v4133_v60 }
 0x217   : > { %2939 = vmatprep.subr.bf16.mxu0 %v4138_v61 }
 0x218   : > { %v1401_v1 = vpop.f32.mrb[4].mxu0  ;;  %3169 = vmatpush1.bf16.msra.mxu1 %v4172_v37 }
 0x219   : > { %v1403_v3 = vpop.f32.mrb[5].mxu0  ;;  %3170 = vmatprep.subr.bf16.mxu1 %v4177_v40 }
 0x21a   : > { %2940 = vmatpush1.bf16.msra.mxu0 %v4136_v63  ;;  %v1405_v5 = vpop.f32.mrb[6].mxu0 }
 0x21b   : > { %v1406_v9 = vpop.f32.mrb[7].mxu0  ;;  %2941 = vmatprep.subr.bf16.mxu0 %v4141_v0  ;;  %v2973_v5 = vrot.slane %v4917_v46, 4  ;;  %v3201_v46 = vld [vmem:[%s5427_s7] sm:$0x3] }
 0x21c   : > { %3171 = vmatpush1.bf16.msra.mxu1 %v4175_v41  ;;  %v2981_v9 = vrot.slane %v4932_v15, 4  ;;  %v3215_v15 = vld [vmem:[%s5428_s8] sm:$0x3]  ;;  %v3206_v22 = vrot.slane %v3201_v46, %v4912_v45  ;;  %v3210_v24 = vrot.slane %v3201_v46, %v4922_v48 }
 0x21d   : > { %3172 = vmatprep.subr.bf16.mxu1 %v4180_v42 }
 0x21e   : > { %2942 = vmatpush1.bf16.msra.mxu0 %v4139_v6  ;;  %v2980_v6 = vrot.slane %v4937_v50, 4 }
 0x21f   : > { %2943 = vmatprep.subr.bf16.mxu0 %v4144_v8 }
 0x220   : > { %3173 = vmatpush1.bf16.msra.mxu1 %v4178_v43 }
 0x221   : > { %3174 = vmatprep.subr.bf16.mxu1 %v4183_v21 }
 0x222   : > { %2944 = vmatpush1.bf16.msra.mxu0 %v4142_v7 }
 0x224   : > { %3175 = vmatpush1.bf16.msra.mxu1 %v4181_v47 }
 0x225   : > { %2962 = vmatmul.mubr.bf16.vlgmr.msra.gmra.mrb[20].mxu0 %v2832_v16  ;;  %3176 = vmatprep.subr.bf16.mxu1 %v4186_v51 }
 0x228   : > { %3177 = vmatpush1.bf16.msra.mxu1 %v4184_v39 }
 0x229   : > { %3178 = vmatprep.subr.bf16.mxu1 %v4189_v52 }
 0x22c   : > { %3179 = vmatpush1.bf16.msra.mxu1 %v4187_v53 }
 0x22d   : > { %3180 = vmatprep.subr.bf16.mxu1 %v4192_v54 }
 0x230   : > { %3181 = vmatpush1.bf16.msra.mxu1 %v4190_v55 }
 0x258   : > { %v1602_v25 = vpop.f32.mrb[8].mxu0 }
 0x259   : > { %v1603_v26 = vadd.f32 %v1602_v25, %v1401_v1  ;;  %v1604_v27 = vpop.f32.mrb[9].mxu0 }
 0x25a   : > { %v1605_v28 = vadd.f32 %v1604_v27, %v1403_v3  ;;  %v1606_v29 = vpop.f32.mrb[10].mxu0  ;;  %v3220_v27 = vrot.slane %v3215_v15, %v4912_v45 }
 0x25b   : > { %v1607_v38 = vpop.f32.mrb[11].mxu0  ;;  %v3224_v29 = vrot.slane %v3215_v15, %v4922_v48 }
 0x298   : > { %v2202_v56 = vpop.f32.mrb[12].mxu0 }
 0x299   : > { %v2209_v57 = vadd.f32 %v2202_v56, %v1603_v26  ;;  %v2204_v2 = vpop.f32.mrb[13].mxu0 }
 0x29a   : > { %v2210_v58 = vadd.f32 %v2204_v2, %v1605_v28  ;;  %v2206_v59 = vpop.f32.mrb[14].mxu0 }
 0x29b   : > { %v2207_v60 = vpop.f32.mrb[15].mxu0 }
 0x2d8   : > { %v2794_v61 = vpop.f32.mrb[16].mxu0 }
 0x2d9   : > { %v2801_v62 = vadd.f32 %v2794_v61, %v2209_v57  ;;  %v2796_v63 = vpop.f32.mrb[17].mxu0 }
 0x2da   : > { %v2802_v0 = vadd.f32 %v2796_v63, %v2210_v58  ;;  %v2798_v1 = vpop.f32.mrb[18].mxu0 }
 0x2db   : > { %v2799_v3 = vpop.f32.mrb[19].mxu0 }
 0x2f8   : > { %v2963_v8 = vpop.f32.mrb[20].mxu0 }
 0x2f9   : > { %v2976_v10 = vmul.f32 %v2972_v4, %v2963_v8  ;;  %v2965_v20 = vpop.f32.mrb[21].mxu0 }
 0x2fa   : > { %v2977_v11 = vmul.f32 %v2973_v5, %v2965_v20  ;;  %v2967_v12 = vpop.f32.mrb[22].mxu0 }
 0x2fb   : > { %v2984_v7 = vadd.f32 %v2980_v6, %v2976_v10  ;;  %v2968_v13 = vpop.f32.mrb[23].mxu0 }
 0x2fc   : > { %v2985_v14 = vadd.f32 %v2981_v9, %v2977_v11 }
 0x2fd   : > { %v2986_v16 = vmax.f32 %v2984_v7, 0.0 }
 0x2fe   : > { %v2987_v17 = vmax.f32 %v2985_v14, 0.0 }
 0x2ff   : > { %v2988_v19 = vpack.c.bf16 %v2986_v16, %v2986_v16 }
 0x300   : > { %v2989_v18 = vpack.c.bf16 %v2987_v17, %v2987_v17 }
 0x302   : > { %3182 = vmatprep.mubr.bf16.mxu1 %v2989_v18 }
 0x303   : > { %3183 = vmatmul.mubr.bf16.vlgmr.msra.gmra.mrb[12].mxu1 %v2988_v19 }
 0x3d6   : > { %v3184_v49 = vpop.f32.mrb[12].mxu1 }
 0x3d7   : > { %v3194_v50 = vrot.slane %v3184_v49, %v4912_v45  ;;  %v3186_v23 = vpop.f32.mrb[13].mxu1 }
 0x3d8   : > { %v3198_v44 = vrot.slane %v3186_v23, %v4912_v45  ;;  %v3188_v25 = vpop.f32.mrb[14].mxu1 }
 0x3d9   : > { %v3199_v26 = vadd.f32 %v3194_v50, %v2801_v62  ;;  %v3189_v33 = vpop.f32.mrb[15].mxu1 }
 0x3da   : > { %v3200_v28 = vadd.f32 %v3198_v44, %v2802_v0 }
 0x3db   : > { %v3213_v30 = vmul.f32 %v3206_v22, %v3199_v26 }
 0x3dc   : > { %v3214_v38 = vmul.f32 %v3210_v24, %v3200_v28 }
 0x3dd   : > { %v3227_v31 = vadd.f32 %v3220_v27, %v3213_v30 }
 0x3de   : > { %v3228_v32 = vadd.f32 %v3224_v29, %v3214_v38 }
 0x3df   : > { %v3229_v34 = vmax.f32 %v3227_v31, 0.0 }
 0x3e0   : > { %v3230_v35 = vmax.f32 %v3228_v32, 0.0 }
 0x3e2   : > { %v3647_v36 = vpack.c.bf16 %v3230_v35, %v3229_v34 }
 0x3e4   : > { %3648 = vst.sshfl [vmem:[%s332_s29] sm:$0x33 pattern:$0x76325410] %v3647_v36 }
 0x3e5 PF: > { %s19_s30 = sadd.s32 1, %s4199_s30  }
 0x3e6   : > { %p16_p4 = scmp.ge.s32.totalorder %s19_s30, 4  }
 0x3e8   :  { %18 = sbr.rel (!%p16_p4) target bundleno = 1 (0x1), region = 86 }

// kernel: deeplab_net.13
= control target key start
LH: loop header
LB: loop body
LE: loop exit
PB: predicated region body
PF: predicated region fallthrough
CT: control target
= control target key end

     0   :  { %s551_s12 = smov 0   ;;  %s553_s13 = smov 0   ;;  %s599_s0 = inlined_call_operand.vmem [shape: f32[32,1], index: 0, kind: input, shape index: {}]   ;;  %s600_s1 = inlined_call_operand.vmem [shape: bf16[2,32,128], index: 1, kind: input, shape index: {}]   ;;  %s601_s2 = inlined_call_operand.vmem [shape: bf16[2,32,128], index: 2, kind: input, shape index: {}]   ;;  %s602_s3 = inlined_call_operand.vmem [shape: f32[2,32,128], index: 3, kind: output, shape index: {}]  }
   0x1   :  { %s555_s14 = smov 0  }
   0x2 LB: > { %s25_s15 = sadd.s32 1, %s524_s13  ;;  %p449_p0 = scmp.ge.s32.totalorder %s528_s14, 1  ;;  %s528_s14 = sphi %s555_s14, %s13_s14   ;;  %s524_s13 = sphi %s553_s13, %s604_s13   ;;  %s520_s12 = sphi %s551_s12, %s603_s12  }
   0x3   : > { %p27_p1 = scmp.ge.s32.totalorder %s25_s15, 2  ;;  %p186_p2 = scmp.lt.s32.totalorder %s528_s14, 3 }
   0x5   : > { %s606_s15 = smov (%p27_p1, %s25_s15), 0  ;;  %p187_p3 = pnand %p449_p0, %p186_p2 }
   0x6   : > { %v270_v0 = vld [vmem:[%s599_s0 + $0x10] sm:$0xff] (!%p187_p3)  ;;  %v268_v1 = vld [vmem:[%s599_s0] sm:$0xff] (!%p187_p3)  ;;  %v530_v2 = vmov (!%p187_p3), 0   ;;  %v271_v3 = vld [vmem:[%s599_s0 + $0x18] sm:$0xff] (!%p187_p3)  ;;  %p239_p4 = scmp.lt.s32.totalorder (!%p187_p3), %s520_s12, 1 }
   0x7   : > { %190 = sbr.rel (%p187_p3) target bundleno = 145 (0x91), region = 32  ;;  %505 = vset.pattern.permute.xlu1 (!%p187_p3), %v530_v2  ;;  %504 = vset.pattern.permute.xlu0 (!%p187_p3), %v530_v2  ;;  %v269_v4 = vld [vmem:[%s599_s0 + $0x8] sm:$0xff] (!%p187_p3) }
   0x8   : > { %304 = vperm.xlu1 (!%p187_p3), %505, %v270_v0   ;;  %294 = vperm.xlu0 (!%p187_p3), %504, %v268_v1  }
   0xc   : > { %309 = vperm.xlu1 (!%p187_p3), %505, %v271_v3   ;;  %299 = vperm.xlu0 (!%p187_p3), %504, %v269_v4  }
   0xe   : > { %s608_s12 = smov (!%p239_p4, %s520_s12), 1 }
   0xf   : > { %s458_s24 = sshll.u32 %s608_s12, 4  ;;  %s460_s4 = sshll.u32 %s608_s12, 5 }
  0x10   : > { %s246_s27 = scalar_lea.vmem %s600_s1, %s458_s24  ;;  %s256_s30 = scalar_lea.vmem %s601_s2, %s458_s24 }
  0x11   : > { %v477_v5 = vld [vmem:[%s246_s27 + $0x8] sm:$0xff]   ;;  %v462_v7 = vld [vmem:[%s246_s27] sm:$0xff]   ;;  %s266_s7 = scalar_lea.vmem %s602_s3, %s460_s4 }
  0x12   : > { %v478_v6 = vld [vmem:[%s256_s30 + $0x8] sm:$0xff]   ;;  %v470_v8 = vld [vmem:[%s256_s30] sm:$0xff]   ;;  %v467_v9 = vunpack.c.l.bf16 %v477_v5  ;;  %v463_v11 = vunpack.c.l.bf16 %v462_v7  ;;  %v468_v13 = vunpack.c.h.bf16 %v477_v5  ;;  %v464_v17 = vunpack.c.h.bf16 %v462_v7 }
  0x13   : > { %v475_v10 = vunpack.c.l.bf16 %v478_v6  ;;  %v471_v12 = vunpack.c.l.bf16 %v470_v8  ;;  %v476_v14 = vunpack.c.h.bf16 %v478_v6  ;;  %v472_v18 = vunpack.c.h.bf16 %v470_v8 }
  0x15   : > { %v290_v15 = vsub.f32 %v475_v10, %v467_v9  ;;  %v288_v16 = vsub.f32 %v471_v12, %v463_v11  ;;  %v291_v23 = vsub.f32 %v476_v14, %v468_v13  ;;  %v289_v24 = vsub.f32 %v472_v18, %v464_v17 }
  0x87   : > { %v305_v19 = vpop.permute.xlu1 %304  ;;  %v295_v20 = vpop.permute.xlu0 %294 }
  0x88   : > { %v314_v21 = vmul.f32 %v305_v19, %v290_v15  ;;  %v312_v22 = vmul.f32 %v295_v20, %v288_v16 }
  0x8a   : > { %v318_v25 = vadd.f32 %v467_v9, %v314_v21  ;;  %v316_v26 = vadd.f32 %v463_v11, %v312_v22 }
  0x8b   : > { %v310_v27 = vpop.permute.xlu1 %309  ;;  %v300_v28 = vpop.permute.xlu0 %299 }
  0x8c   : > { %322 = vst [vmem:[%s266_s7 + $0x10] sm:$0xff] %v318_v25  ;;  %320 = vst [vmem:[%s266_s7] sm:$0xff] %v316_v26  ;;  %v315_v29 = vmul.f32 %v310_v27, %v291_v23  ;;  %v313_v30 = vmul.f32 %v300_v28, %v289_v24 }
  0x8e   : > { %v319_v31 = vadd.f32 %v468_v13, %v315_v29  ;;  %v317_v32 = vadd.f32 %v464_v17, %v313_v30 }
  0x90   : > { %323 = vst [vmem:[%s266_s7 + $0x18] sm:$0xff] %v319_v31  ;;  %321 = vst [vmem:[%s266_s7 + $0x8] sm:$0xff] %v317_v32 }
  0x91 PF: > { %s13_s14 = sadd.s32 1, %s528_s14   ;;  %s603_s12 = smov %s524_s13 }
  0x92   : > { %p10_p5 = scmp.ge.s32.totalorder %s13_s14, 4   ;;  %s604_s13 = smov %s606_s15 }
  0x94   :  { %12 = sbr.rel (!%p10_p5) target bundleno = 2 (0x2), region = 68 }

// kernel: deeplab_net.12
= control target key start
LH: loop header
LB: loop body
LE: loop exit
PB: predicated region body
PF: predicated region fallthrough
CT: control target
= control target key end

     0   :  { %s2284_s27 = smov 0   ;;  %s2836_s0 = inlined_call_operand.vmem [shape: bf16[2,10,128], index: 0, kind: input, shape index: {}]   ;;  %s2837_s1 = inlined_call_operand.vmem [shape: bf16[2,10,256], index: 1, kind: input, shape index: {}]   ;;  %s2838_s2 = inlined_call_operand.vmem [shape: bf16[3,128,256], index: 2, kind: input, shape index: {}]   ;;  %s2839_s3 = inlined_call_operand.vmem [shape: bf16[3,256,256], index: 3, kind: input, shape index: {}]   ;;  %s2840_s4 = inlined_call_operand.vmem [shape: f32[1,256], index: 4, kind: input, shape index: {}]   ;;  %s2841_s5 = inlined_call_operand.vmem [shape: f32[1,256], index: 5, kind: input, shape index: {}]   ;;  %s2842_s6 = inlined_call_operand.vmem [shape: bf16[256,128], index: 6, kind: input, shape index: {}]   ;;  %s2843_s7 = inlined_call_operand.vmem [shape: f32[1,128], index: 7, kind: input, shape index: {}]   ;;  %s2844_s8 = inlined_call_operand.vmem [shape: bf16[2,8,128], index: 8, kind: output, shape index: {}]  }
   0x1 LB: > { %s1768_s28 = sadd.s32 4294967295, %s2236_s27   ;;  %p1772_p0 = scmp.ge.s32.totalorder %s2236_s27, 1  ;;  %s2236_s27 = sphi %s2284_s27, %s18_s27  }
   0x2   : > { %p272_p1 = scmp.lt.s32.totalorder %s2236_s27, 3 }
   0x4   : > { %p273_p2 = pnand %p1772_p0, %p272_p1 }
   0x5   : > { %v1993_v0 = vld [vmem:[%s2839_s3 + $0x4] ss:$8 sps:$4 sm:$0xff] (!%p273_p2)   ;;  %v2238_v2 = vmov (!%p273_p2), 0   ;;  %v1997_v3 = vld [vmem:[%s2839_s3] ss:$8 sps:$4 sm:$0xff] (!%p273_p2)   ;;  %p310_p3 = scmp.lt.s32.totalorder (!%p273_p2), %s1768_s28, 1 }
   0x6   : > { %276 = sbr.rel (%p273_p2) target bundleno = 611 (0x263), region = 52  ;;  %v1995_v1 = vld [vmem:[%s2838_s2 + $0x4] ss:$8 sps:$4 sm:$0xff] (!%p273_p2)   ;;  %793 = vmatprep.mubr.bf16.mxu0 (!%p273_p2), %v2238_v2  ;;  %640 = vmatprep.subr.bf16.mxu1 (!%p273_p2), %v1993_v0  ;;  %v1998_v4 = vld [vmem:[%s2838_s2] ss:$8 sps:$4 sm:$0xff] (!%p273_p2)  }
   0x7   : > { %761 = vmatprep.subr.bf16.mxu0 (!%p273_p2), %v1995_v1  ;;  %v1999_v5 = vld [vmem:[%s2839_s3 + $0x14] ss:$8 sps:$4 sm:$0xff] (!%p273_p2)   ;;  %641 = vmatpush1.bf16.msra.mxu1 (!%p273_p2), %v1997_v3  ;;  %v2003_v7 = vld [vmem:[%s2839_s3 + $0x10] ss:$8 sps:$4 sm:$0xff] (!%p273_p2)   ;;  %v2005_v9 = vld [vmem:[%s2839_s3 + $0x24] ss:$8 sps:$4 sm:$0xff] (!%p273_p2)  }
   0x8   : > { %762 = vmatpush1.bf16.msra.mxu0 (!%p273_p2), %v1998_v4  ;;  %v2001_v6 = vld [vmem:[%s2838_s2 + $0x14] ss:$8 sps:$4 sm:$0xff] (!%p273_p2)   ;;  %642 = vmatprep.subr.bf16.mxu1 (!%p273_p2), %v1999_v5  ;;  %v2004_v8 = vld [vmem:[%s2838_s2 + $0x10] ss:$8 sps:$4 sm:$0xff] (!%p273_p2)   ;;  %v2007_v10 = vld [vmem:[%s2838_s2 + $0x24] ss:$8 sps:$4 sm:$0xff] (!%p273_p2)  }
   0x9   : > { %763 = vmatprep.subr.bf16.mxu0 (!%p273_p2), %v2001_v6  ;;  %v2009_v11 = vld [vmem:[%s2839_s3 + $0x20] ss:$8 sps:$4 sm:$0xff] (!%p273_p2)   ;;  %v2011_v13 = vld [vmem:[%s2839_s3 + $0x34] ss:$8 sps:$4 sm:$0xff] (!%p273_p2)   ;;  %v2015_v15 = vld [vmem:[%s2839_s3 + $0x30] ss:$8 sps:$4 sm:$0xff] (!%p273_p2)  }
   0xa   : > { %v2010_v12 = vld [vmem:[%s2838_s2 + $0x20] ss:$8 sps:$4 sm:$0xff] (!%p273_p2)   ;;  %v2013_v14 = vld [vmem:[%s2838_s2 + $0x34] ss:$8 sps:$4 sm:$0xff] (!%p273_p2)   ;;  %v2016_v16 = vld [vmem:[%s2838_s2 + $0x30] ss:$8 sps:$4 sm:$0xff] (!%p273_p2)  }
   0xb   : > { %643 = vmatpush1.bf16.msra.mxu1 (!%p273_p2), %v2003_v7  ;;  %v2017_v17 = vld [vmem:[%s2839_s3 + $0x44] ss:$8 sps:$4 sm:$0xff] (!%p273_p2)   ;;  %v2021_v19 = vld [vmem:[%s2839_s3 + $0x40] ss:$8 sps:$4 sm:$0xff] (!%p273_p2)   ;;  %v2023_v21 = vld [vmem:[%s2839_s3 + $0x54] ss:$8 sps:$4 sm:$0xff] (!%p273_p2)  }
   0xc   : > { %764 = vmatpush1.bf16.msra.mxu0 (!%p273_p2), %v2004_v8  ;;  %644 = vmatprep.subr.bf16.mxu1 (!%p273_p2), %v2005_v9  ;;  %v2019_v18 = vld [vmem:[%s2838_s2 + $0x44] ss:$8 sps:$4 sm:$0xff] (!%p273_p2)   ;;  %v2022_v20 = vld [vmem:[%s2838_s2 + $0x40] ss:$8 sps:$4 sm:$0xff] (!%p273_p2)   ;;  %v2025_v22 = vld [vmem:[%s2838_s2 + $0x54] ss:$8 sps:$4 sm:$0xff] (!%p273_p2)  }
   0xd   : > { %765 = vmatprep.subr.bf16.mxu0 %v2007_v10  ;;  %v2027_v23 = vld [vmem:[%s2839_s3 + $0x50] ss:$8 sps:$4 sm:$0xff]   ;;  %v2029_v25 = vld [vmem:[%s2839_s3 + $0x64] ss:$8 sps:$4 sm:$0xff]   ;;  %s2846_s28 = smov (!%p310_p3, %s1768_s28), 1 }
   0xe   : > { %v2028_v24 = vld [vmem:[%s2838_s2 + $0x50] ss:$8 sps:$4 sm:$0xff]   ;;  %v2031_v26 = vld [vmem:[%s2838_s2 + $0x64] ss:$8 sps:$4 sm:$0xff]   ;;  %v2033_v27 = vld [vmem:[%s2839_s3 + $0x60] ss:$8 sps:$4 sm:$0xff]  }
   0xf   : > { %645 = vmatpush1.bf16.msra.mxu1 %v2009_v11  ;;  %v2034_v28 = vld [vmem:[%s2838_s2 + $0x60] ss:$8 sps:$4 sm:$0xff]   ;;  %v2035_v29 = vld [vmem:[%s2839_s3 + $0x74] ss:$8 sps:$4 sm:$0xff]   ;;  %s1946_s29 = sshll.u32 %s2846_s28, 3  ;;  %s1947_s15 = sshll.u32 %s2846_s28, 4 }
  0x10   : > { %766 = vmatpush1.bf16.msra.mxu0 %v2010_v12  ;;  %646 = vmatprep.subr.bf16.mxu1 %v2011_v13  ;;  %v2037_v30 = vld [vmem:[%s2838_s2 + $0x74] ss:$8 sps:$4 sm:$0xff]   ;;  %v2039_v31 = vld [vmem:[%s2839_s3 + $0x70] ss:$8 sps:$4 sm:$0xff]   ;;  %v2041_v33 = vld [vmem:[%s2839_s3 + $0x84] ss:$8 sps:$4 sm:$0xff]   ;;  %s2405_s18 = scalar_lea.vmem %s2836_s0, %s1946_s29  ;;  %s319_s25 = scalar_lea.vmem %s2837_s1, %s1947_s15 }
  0x11   : > { %767 = vmatprep.subr.bf16.mxu0 %v2013_v14  ;;  %v2040_v32 = vld [vmem:[%s2838_s2 + $0x70] ss:$8 sps:$4 sm:$0xff]   ;;  %v2045_v34 = vld [vmem:[%s2838_s2 + $0x84] ss:$8 sps:$4 sm:$0xff]   ;;  %v2043_v35 = vld [vmem:[%s2838_s2 + $0x80] ss:$8 sps:$4 sm:$0xff]  }
  0x12   : > { %v2046_v36 = vld [vmem:[%s2839_s3 + $0x80] ss:$8 sps:$4 sm:$0xff]   ;;  %v2048_v38 = vld [vmem:[%s2839_s3 + $0x94] ss:$8 sps:$4 sm:$0xff]   ;;  %v2050_v40 = vld [vmem:[%s2838_s2 + $0x90] ss:$8 sps:$4 sm:$0xff]  }
  0x13   : > { %647 = vmatpush1.bf16.msra.mxu1 %v2015_v15  ;;  %v325_v37 = vld [vmem:[%s2405_s18] sm:$0xf]  ;;  %v2052_v39 = vld [vmem:[%s2838_s2 + $0x94] ss:$8 sps:$4 sm:$0xff]   ;;  %v2053_v41 = vld [vmem:[%s2839_s3 + $0x90] ss:$8 sps:$4 sm:$0xff]  }
  0x14   : > { %768 = vmatpush1.bf16.msra.mxu0 %v2016_v16  ;;  %648 = vmatprep.subr.bf16.mxu1 %v2017_v17  ;;  %v2054_v42 = vld [vmem:[%s2839_s3 + $0xa4] ss:$8 sps:$4 sm:$0xff]   ;;  %v2056_v44 = vld [vmem:[%s2838_s2 + $0xa0] ss:$8 sps:$4 sm:$0xff]   ;;  %v2060_v46 = vld [vmem:[%s2839_s3 + $0xb4] ss:$8 sps:$4 sm:$0xff]  }
  0x15   : > { %769 = vmatprep.subr.bf16.mxu0 %v2019_v18  ;;  %v2058_v43 = vld [vmem:[%s2838_s2 + $0xa4] ss:$8 sps:$4 sm:$0xff]   ;;  %v2059_v45 = vld [vmem:[%s2839_s3 + $0xa0] ss:$8 sps:$4 sm:$0xff]   ;;  %v2064_v47 = vld [vmem:[%s2838_s2 + $0xb4] ss:$8 sps:$4 sm:$0xff]  }
  0x16   : > { %v2062_v48 = vld [vmem:[%s2838_s2 + $0xb0] ss:$8 sps:$4 sm:$0xff]   ;;  %v2452_v49 = vld [vmem:[%s319_s25] sm:$0xff]  ;;  %v2072_v57 = vld [vmem:[%s2839_s3 + $0xd4] ss:$8 sps:$4 sm:$0xff]   ;;  %s1777_s23 = sshll.u32 %s2846_s28, 2 }
  0x17   : > { %649 = vmatpush1.bf16.msra.mxu1 %v2021_v19  ;;  %v2065_v50 = vld [vmem:[%s2839_s3 + $0xb0] ss:$8 sps:$4 sm:$0xff]   ;;  %v1779_v51 = vcombine.high %v2452_v49, %v2452_v49  ;;  %v2066_v52 = vld [vmem:[%s2839_s3 + $0xc4] ss:$8 sps:$4 sm:$0xff]   ;;  %v2068_v55 = vld [vmem:[%s2838_s2 + $0xc0] ss:$8 sps:$4 sm:$0xff]   ;;  %v1778_v17 = vcombine.low %v2452_v49, %v2452_v49  ;;  %s323_s26 = scalar_lea.vmem %s2844_s8, %s1777_s23 }
  0x18   : > { %770 = vmatpush1.bf16.msra.mxu0 %v2022_v20  ;;  %650 = vmatprep.subr.bf16.mxu1 %v2023_v21  ;;  %v2070_v53 = vld [vmem:[%s2838_s2 + $0xc4] ss:$8 sps:$4 sm:$0xff]   ;;  %v2071_v56 = vld [vmem:[%s2839_s3 + $0xc0] ss:$8 sps:$4 sm:$0xff]   ;;  %v2076_v58 = vld [vmem:[%s2838_s2 + $0xd4] ss:$8 sps:$4 sm:$0xff]  }
  0x19   : > { %771 = vmatprep.subr.bf16.mxu0 %v2025_v22  ;;  %v326_v54 = vld [vmem:[%s2405_s18 + $0x4] sm:$0x1]  ;;  %672 = vmatprep.mubr.bf16.mxu1 %v1779_v51  ;;  %v2074_v59 = vld [vmem:[%s2838_s2 + $0xd0] ss:$8 sps:$4 sm:$0xff]   ;;  %v2483_v61 = vld [vmem:[%s319_s25 + $0x8] sm:$0x11] }
  0x1a   : > { %v2481_v60 = vcombine.low %v325_v37, %v326_v54  ;;  %v2077_v62 = vld [vmem:[%s2839_s3 + $0xd0] ss:$8 sps:$4 sm:$0xff]   ;;  %v2078_v63 = vld [vmem:[%s2839_s3 + $0xe4] ss:$8 sps:$4 sm:$0xff]   ;;  %v2496_v1 = vcombine.high %v2452_v49, %v2483_v61  ;;  %v2080_v4 = vld [vmem:[%s2838_s2 + $0xe0] ss:$8 sps:$4 sm:$0xff]  }
  0x1b   : > { %651 = vmatpush1.bf16.msra.mxu1 %v2027_v23  ;;  %v2082_v0 = vld [vmem:[%s2838_s2 + $0xe4] ss:$8 sps:$4 sm:$0xff]   ;;  %v2083_v5 = vld [vmem:[%s2839_s3 + $0xe0] ss:$8 sps:$4 sm:$0xff]   ;;  %v2084_v6 = vld [vmem:[%s2839_s3 + $0xf4] ss:$8 sps:$4 sm:$0xff]  }
  0x1c   : > { %772 = vmatpush1.bf16.msra.mxu0 %v2028_v24  ;;  %652 = vmatprep.subr.bf16.mxu1 %v2029_v25  ;;  %v810_v3 = vshll.u32 %v2481_v60, 16  ;;  %v2088_v7 = vld [vmem:[%s2838_s2 + $0xf4] ss:$8 sps:$4 sm:$0xff]   ;;  %v953_v8 = vshll.u32 %v2496_v1, 16  ;;  %v808_v9 = vshrl.u32 %v2481_v60, 16  ;;  %v951_v15 = vshrl.u32 %v2496_v1, 16 }
  0x1d   : > { %773 = vmatprep.subr.bf16.mxu0 %v2031_v26  ;;  %v2086_v11 = vld [vmem:[%s2838_s2 + $0xf0] ss:$8 sps:$4 sm:$0xff]   ;;  %v2096_v13 = vld [vmem:[%s2839_s3 + $0x104] ss:$8 sps:$4 sm:$0xff]   ;;  %v2094_v19 = vld [vmem:[%s2839_s3 + $0x100] ss:$8 sps:$4 sm:$0xff]  }
  0x1e   : > { %v812_v10 = vrot.slane %v810_v3, 1  ;;  %v2089_v12 = vld [vmem:[%s2839_s3 + $0xf0] ss:$8 sps:$4 sm:$0xff]   ;;  %v2099_v14 = vld [vmem:[%s2838_s2 + $0x104] ss:$8 sps:$4 sm:$0xff]   ;;  %v955_v16 = vrot.slane %v953_v8, 1 }
  0x1f   : > { %653 = vmatpush1.bf16.msra.mxu1 %v2033_v27  ;;  %v2097_v20 = vld [vmem:[%s2838_s2 + $0x100] ss:$8 sps:$4 sm:$0xff]   ;;  %v2102_v21 = vld [vmem:[%s2839_s3 + $0x114] ss:$8 sps:$4 sm:$0xff]   ;;  %v2100_v24 = vld [vmem:[%s2839_s3 + $0x110] ss:$8 sps:$4 sm:$0xff]  }
  0x20   : > { %774 = vmatpush1.bf16.msra.mxu0 %v2034_v28  ;;  %654 = vmatprep.subr.bf16.mxu1 %v2035_v29  ;;  %v813_v18 = vor.u32 %v812_v10, %v808_v9  ;;  %v2105_v22 = vld [vmem:[%s2838_s2 + $0x114] ss:$8 sps:$4 sm:$0xff]   ;;  %v956_v23 = vor.u32 %v955_v16, %v951_v15  ;;  %v2103_v25 = vld [vmem:[%s2838_s2 + $0x110] ss:$8 sps:$4 sm:$0xff]   ;;  %v2108_v26 = vld [vmem:[%s2839_s3 + $0x124] ss:$8 sps:$4 sm:$0xff]  }
  0x21   : > { %775 = vmatprep.subr.bf16.mxu0 %v2037_v30  ;;  %v2111_v27 = vld [vmem:[%s2838_s2 + $0x124] ss:$8 sps:$4 sm:$0xff]   ;;  %v2106_v28 = vld [vmem:[%s2839_s3 + $0x120] ss:$8 sps:$4 sm:$0xff]   ;;  %v2114_v30 = vld [vmem:[%s2839_s3 + $0x134] ss:$8 sps:$4 sm:$0xff]  }
  0x22   : > { %v2109_v29 = vld [vmem:[%s2838_s2 + $0x120] ss:$8 sps:$4 sm:$0xff]   ;;  %v2147_v51 = vld [vmem:[%s2839_s3 + $0x204] ss:$8 sps:$4 sm:$0xff]   ;;  %v2165_v3 = vld [vmem:[%s2839_s3 + $0x234] ss:$8 sps:$4 sm:$0xff]  }
  0x23   : > { %655 = vmatpush1.bf16.msra.mxu1 %v2039_v31  ;;  %v2112_v31 = vld [vmem:[%s2839_s3 + $0x130] ss:$8 sps:$4 sm:$0xff]   ;;  %v2145_v54 = vld [vmem:[%s2839_s3 + $0x200] ss:$8 sps:$4 sm:$0xff]   ;;  %v2174_v10 = vld [vmem:[%s2839_s3 + $0x1d4] ss:$8 sps:$4 sm:$0xff]  }
  0x24   : > { %776 = vmatpush1.bf16.msra.mxu0 %v2040_v32  ;;  %656 = vmatprep.subr.bf16.mxu1 %v2041_v33  ;;  %v2115_v32 = vld [vmem:[%s2838_s2 + $0x130] ss:$8 sps:$4 sm:$0xff]   ;;  %v2120_v33 = vld [vmem:[%s2839_s3 + $0x144] ss:$8 sps:$4 sm:$0xff]   ;;  %v2166_v8 = vld [vmem:[%s2839_s3 + $0x1c0] ss:$8 sps:$4 sm:$0xff]  }
  0x25   : > { %895 = vmatprep.subr.bf16.mxu0 %v2045_v34  ;;  %v2123_v34 = vld [vmem:[%s2838_s2 + $0x144] ss:$8 sps:$4 sm:$0xff]   ;;  %v2169_v9 = vld [vmem:[%s2839_s3 + $0x240] ss:$8 sps:$4 sm:$0xff]  }
  0x26   : > { %v2180_v15 = vld [vmem:[%s2839_s3 + $0x1e4] ss:$8 sps:$4 sm:$0xff]   ;;  %v2178_v16 = vld [vmem:[%s2839_s3 + $0x1e0] ss:$8 sps:$4 sm:$0xff]  }
  0x27   : > { %794 = vmatmul.mubr.bf16.vlgmr.msra.gmra.mrb[0].mxu0 %v325_v37  ;;  %657 = vmatpush1.bf16.msra.mxu1 %v2046_v36  ;;  %v2121_v36 = vld [vmem:[%s2838_s2 + $0x140] ss:$8 sps:$4 sm:$0xff]   ;;  %v2126_v37 = vld [vmem:[%s2839_s3 + $0x154] ss:$8 sps:$4 sm:$0xff]  }
  0x28   : > { %896 = vmatpush1.bf16.msra.mxu0 %v2043_v35  ;;  %658 = vmatprep.subr.bf16.mxu1 %v2048_v38  ;;  %v2118_v35 = vld [vmem:[%s2839_s3 + $0x140] ss:$8 sps:$4 sm:$0xff]   ;;  %v2129_v38 = vld [vmem:[%s2838_s2 + $0x154] ss:$8 sps:$4 sm:$0xff]  }
  0x29   : > { %897 = vmatprep.subr.bf16.mxu0 %v2052_v39  ;;  %927 = vmatprep.mubr.bf16.mxu0 %v2238_v2  ;;  %v2124_v39 = vld [vmem:[%s2839_s3 + $0x150] ss:$8 sps:$4 sm:$0xff]  }
  0x2b   : > { %659 = vmatpush1.bf16.msra.mxu1 %v2053_v41  ;;  %v2132_v41 = vld [vmem:[%s2839_s3 + $0x164] ss:$8 sps:$4 sm:$0xff]  }
  0x2c   : > { %898 = vmatpush1.bf16.msra.mxu0 %v2050_v40  ;;  %660 = vmatprep.subr.bf16.mxu1 %v2054_v42  ;;  %v2127_v40 = vld [vmem:[%s2838_s2 + $0x150] ss:$8 sps:$4 sm:$0xff]   ;;  %v2135_v42 = vld [vmem:[%s2838_s2 + $0x164] ss:$8 sps:$4 sm:$0xff]  }
  0x2d   : > { %899 = vmatprep.subr.bf16.mxu0 %v2058_v43  ;;  %v2130_v43 = vld [vmem:[%s2839_s3 + $0x160] ss:$8 sps:$4 sm:$0xff]  }
  0x2f   : > { %661 = vmatpush1.bf16.msra.mxu1 %v2059_v45  ;;  %v2138_v45 = vld [vmem:[%s2839_s3 + $0x174] ss:$8 sps:$4 sm:$0xff]  }
  0x30   : > { %900 = vmatpush1.bf16.msra.mxu0 %v2056_v44  ;;  %662 = vmatprep.subr.bf16.mxu1 %v2060_v46  ;;  %v2133_v44 = vld [vmem:[%s2838_s2 + $0x160] ss:$8 sps:$4 sm:$0xff]   ;;  %v2141_v46 = vld [vmem:[%s2838_s2 + $0x174] ss:$8 sps:$4 sm:$0xff]  }
  0x31   : > { %901 = vmatprep.subr.bf16.mxu0 %v2064_v47  ;;  %v2136_v47 = vld [vmem:[%s2839_s3 + $0x170] ss:$8 sps:$4 sm:$0xff]  }
  0x33   : > { %663 = vmatpush1.bf16.msra.mxu1 %v2065_v50  ;;  %v2144_v50 = vld [vmem:[%s2839_s3 + $0x184] ss:$8 sps:$4 sm:$0xff]  }
  0x34   : > { %902 = vmatpush1.bf16.msra.mxu0 %v2062_v48  ;;  %664 = vmatprep.subr.bf16.mxu1 %v2066_v52  ;;  %v2139_v48 = vld [vmem:[%s2838_s2 + $0x170] ss:$8 sps:$4 sm:$0xff]   ;;  %v1162_v52 = vrot.slane %v2481_v60, 1  ;;  %v2156_v60 = vld [vmem:[%s2839_s3 + $0x1a4] ss:$8 sps:$4 sm:$0xff]  }
  0x35   : > { %903 = vmatprep.subr.bf16.mxu0 %v2070_v53  ;;  %v2142_v53 = vld [vmem:[%s2839_s3 + $0x180] ss:$8 sps:$4 sm:$0xff]  }
  0x37   : > { %665 = vmatpush1.bf16.msra.mxu1 %v2071_v56  ;;  %v2150_v56 = vld [vmem:[%s2839_s3 + $0x194] ss:$8 sps:$4 sm:$0xff]  }
  0x38   : > { %904 = vmatpush1.bf16.msra.mxu0 %v2068_v55  ;;  %666 = vmatprep.subr.bf16.mxu1 %v2072_v57  ;;  %v1288_v55 = vrot.slane %v2496_v1, 1  ;;  %v2153_v57 = vld [vmem:[%s2839_s3 + $0x214] ss:$8 sps:$4 sm:$0xff]  }
  0x39   : > { %905 = vmatprep.subr.bf16.mxu0 %v2076_v58  ;;  %v2148_v58 = vld [vmem:[%s2839_s3 + $0x190] ss:$8 sps:$4 sm:$0xff]   ;;  %v2162_v1 = vld [vmem:[%s2839_s3 + $0x1b4] ss:$8 sps:$4 sm:$0xff]  }
  0x3b   : > { %667 = vmatpush1.bf16.msra.mxu1 %v2077_v62  ;;  %v2159_v62 = vld [vmem:[%s2839_s3 + $0x224] ss:$8 sps:$4 sm:$0xff]  }
  0x3c   : > { %906 = vmatpush1.bf16.msra.mxu0 %v2074_v59  ;;  %668 = vmatprep.subr.bf16.mxu1 %v2078_v63  ;;  %v2151_v59 = vld [vmem:[%s2839_s3 + $0x210] ss:$8 sps:$4 sm:$0xff]   ;;  %v2154_v63 = vld [vmem:[%s2839_s3 + $0x1a0] ss:$8 sps:$4 sm:$0xff]  }
  0x3d   : > { %907 = vmatprep.subr.bf16.mxu0 %v2082_v0  ;;  %v2157_v0 = vld [vmem:[%s2839_s3 + $0x220] ss:$8 sps:$4 sm:$0xff]  }
  0x3f   : > { %669 = vmatpush1.bf16.msra.mxu1 %v2083_v5  ;;  %v2163_v5 = vld [vmem:[%s2839_s3 + $0x230] ss:$8 sps:$4 sm:$0xff]  }
  0x40   : > { %908 = vmatpush1.bf16.msra.mxu0 %v2080_v4  ;;  %670 = vmatprep.subr.bf16.mxu1 %v2084_v6  ;;  %v2160_v4 = vld [vmem:[%s2839_s3 + $0x1b0] ss:$8 sps:$4 sm:$0xff]   ;;  %v2168_v6 = vld [vmem:[%s2839_s3 + $0x1c4] ss:$8 sps:$4 sm:$0xff]  }
  0x41   : > { %909 = vmatprep.subr.bf16.mxu0 %v2088_v7  ;;  %v2171_v7 = vld [vmem:[%s2839_s3 + $0x244] ss:$8 sps:$4 sm:$0xff]  }
  0x43   : > { %671 = vmatpush1.bf16.msra.mxu1 %v2089_v12  ;;  %v2689_v12 = vcombine.low %v2452_v49, %v2483_v61  ;;  %v2183_v49 = vld [vmem:[%s2839_s3 + $0x264] ss:$8 sps:$4 sm:$0xff]  }
  0x44   : > { %910 = vmatpush1.bf16.msra.mxu0 %v2086_v11  ;;  %1119 = vmatprep.subr.bf16.mxu1 %v2096_v13  ;;  %v2177_v11 = vld [vmem:[%s2839_s3 + $0x254] ss:$8 sps:$4 sm:$0xff]   ;;  %v2172_v13 = vld [vmem:[%s2839_s3 + $0x1d0] ss:$8 sps:$4 sm:$0xff]  }
  0x45   : > { %1244 = vmatprep.subr.bf16.mxu0 %v2099_v14  ;;  %v2175_v14 = vld [vmem:[%s2839_s3 + $0x250] ss:$8 sps:$4 sm:$0xff]   ;;  %v946_v61 = vshll.u32 %v2689_v12, 16 }
  0x46   : > { %673 = vmatmul.mubr.bf16.vlgmr.msra.gmra.mrb[0].mxu1 %v1778_v17  ;;  %v2181_v17 = vld [vmem:[%s2839_s3 + $0x260] ss:$8 sps:$4 sm:$0xff]  }
  0x47   : > { %928 = vmatmul.mubr.bf16.vlgmr.msra.gmra.mrb[0].mxu0 %v813_v18  ;;  %1120 = vmatpush1.bf16.msra.mxu1 %v2094_v19  ;;  %v2186_v18 = vld [vmem:[%s2839_s3 + $0x1f4] ss:$8 sps:$4 sm:$0xff]  }
  0x48   : > { %1245 = vmatpush1.bf16.msra.mxu0 %v2097_v20  ;;  %1121 = vmatprep.subr.bf16.mxu1 %v2102_v21  ;;  %v2189_v19 = vld [vmem:[%s2839_s3 + $0x274] ss:$8 sps:$4 sm:$0xff]   ;;  %v944_v20 = vshrl.u32 %v2689_v12, 16  ;;  %v948_v21 = vrot.slane %v946_v61, 1  ;;  %v1508_v61 = vld [vmem:[%s2841_s5] sm:$0x3] }
  0x49   : > { %1246 = vmatprep.subr.bf16.mxu0 %v2105_v22  ;;  %1276 = vmatprep.mubr.bf16.mxu0 %v2238_v2  ;;  %v2117_v2 = vld [vmem:[%s2838_s2 + $0x134] ss:$8 sps:$4 sm:$0xff]   ;;  %v2184_v22 = vld [vmem:[%s2839_s3 + $0x1f0] ss:$8 sps:$4 sm:$0xff]  }
  0x4a   : > { %1151 = vmatprep.mubr.bf16.mxu1 %v956_v23  ;;  %v2187_v23 = vld [vmem:[%s2839_s3 + $0x270] ss:$8 sps:$4 sm:$0xff]  }
  0x4b   : > { %1122 = vmatpush1.bf16.msra.mxu1 %v2100_v24  ;;  %v2192_v24 = vld [vmem:[%s2839_s3 + $0x284] ss:$8 sps:$4 sm:$0xff]  }
  0x4c   : > { %1247 = vmatpush1.bf16.msra.mxu0 %v2103_v25  ;;  %1123 = vmatprep.subr.bf16.mxu1 %v2108_v26  ;;  %v949_v25 = vor.u32 %v948_v21, %v944_v20  ;;  %v2190_v26 = vld [vmem:[%s2839_s3 + $0x280] ss:$8 sps:$4 sm:$0xff]  }
  0x4d   : > { %1248 = vmatprep.subr.bf16.mxu0 %v2111_v27  ;;  %v2195_v27 = vld [vmem:[%s2839_s3 + $0x294] ss:$8 sps:$4 sm:$0xff]  }
  0x4f   : > { %1124 = vmatpush1.bf16.msra.mxu1 %v2106_v28  ;;  %v2193_v28 = vld [vmem:[%s2839_s3 + $0x290] ss:$8 sps:$4 sm:$0xff]  }
  0x50   : > { %1249 = vmatpush1.bf16.msra.mxu0 %v2109_v29  ;;  %1125 = vmatprep.subr.bf16.mxu1 %v2114_v30  ;;  %v2198_v29 = vld [vmem:[%s2839_s3 + $0x2a4] ss:$8 sps:$4 sm:$0xff]   ;;  %v2196_v30 = vld [vmem:[%s2839_s3 + $0x2a0] ss:$8 sps:$4 sm:$0xff]  }
  0x51   : > { %1250 = vmatprep.subr.bf16.mxu0 %v2117_v2  ;;  %v2201_v2 = vld [vmem:[%s2839_s3 + $0x2b4] ss:$8 sps:$4 sm:$0xff]  }
  0x53   : > { %1126 = vmatpush1.bf16.msra.mxu1 %v2112_v31  ;;  %v2199_v31 = vld [vmem:[%s2839_s3 + $0x2b0] ss:$8 sps:$4 sm:$0xff]  }
  0x54   : > { %1251 = vmatpush1.bf16.msra.mxu0 %v2115_v32  ;;  %1127 = vmatprep.subr.bf16.mxu1 %v2120_v33  ;;  %v2204_v32 = vld [vmem:[%s2839_s3 + $0x2c4] ss:$8 sps:$4 sm:$0xff]   ;;  %v2202_v33 = vld [vmem:[%s2839_s3 + $0x2c0] ss:$8 sps:$4 sm:$0xff]  }
  0x55   : > { %1252 = vmatprep.subr.bf16.mxu0 %v2123_v34  ;;  %v2207_v34 = vld [vmem:[%s2839_s3 + $0x2d4] ss:$8 sps:$4 sm:$0xff]  }
  0x57   : > { %1128 = vmatpush1.bf16.msra.mxu1 %v2118_v35  ;;  %v2205_v35 = vld [vmem:[%s2839_s3 + $0x2d0] ss:$8 sps:$4 sm:$0xff]  }
  0x58   : > { %1253 = vmatpush1.bf16.msra.mxu0 %v2121_v36  ;;  %1129 = vmatprep.subr.bf16.mxu1 %v2126_v37  ;;  %v2210_v36 = vld [vmem:[%s2839_s3 + $0x2e4] ss:$8 sps:$4 sm:$0xff]   ;;  %v2208_v37 = vld [vmem:[%s2839_s3 + $0x2e0] ss:$8 sps:$4 sm:$0xff]  }
  0x59   : > { %1254 = vmatprep.subr.bf16.mxu0 %v2129_v38  ;;  %v2213_v38 = vld [vmem:[%s2839_s3 + $0x2f4] ss:$8 sps:$4 sm:$0xff]  }
  0x5b   : > { %1130 = vmatpush1.bf16.msra.mxu1 %v2124_v39  ;;  %v2211_v39 = vld [vmem:[%s2839_s3 + $0x2f0] ss:$8 sps:$4 sm:$0xff]  }
  0x5c   : > { %1255 = vmatpush1.bf16.msra.mxu0 %v2127_v40  ;;  %1131 = vmatprep.subr.bf16.mxu1 %v2132_v41  ;;  %v1287_v40 = vrot.slane %v2689_v12, 1  ;;  %v2214_v41 = vld [vmem:[%s2842_s6 + $0x40] sm:$0xff]   ;;  %v1496_v12 = vlaneseq }
  0x5d   : > { %1256 = vmatprep.subr.bf16.mxu0 %v2135_v42  ;;  %v2215_v42 = vld [vmem:[%s2842_s6] sm:$0xff]  }
  0x5f   : > { %1132 = vmatpush1.bf16.msra.mxu1 %v2130_v43  ;;  %v2216_v43 = vld [vmem:[%s2842_s6 + $0x48] sm:$0xff]  }
  0x60   : > { %1257 = vmatpush1.bf16.msra.mxu0 %v2133_v44  ;;  %1133 = vmatprep.subr.bf16.mxu1 %v2138_v45  ;;  %v2217_v44 = vld [vmem:[%s2842_s6 + $0x8] sm:$0xff]   ;;  %v2218_v45 = vld [vmem:[%s2842_s6 + $0x50] sm:$0xff]  }
  0x61   : > { %1258 = vmatprep.subr.bf16.mxu0 %v2141_v46  ;;  %v2219_v46 = vld [vmem:[%s2842_s6 + $0x10] sm:$0xff]  }
  0x63   : > { %1134 = vmatpush1.bf16.msra.mxu1 %v2136_v47  ;;  %v2220_v47 = vld [vmem:[%s2842_s6 + $0x58] sm:$0xff]  }
  0x64   : > { %1259 = vmatpush1.bf16.msra.mxu0 %v2139_v48  ;;  %1135 = vmatprep.subr.bf16.mxu1 %v2144_v50  ;;  %v2221_v48 = vld [vmem:[%s2842_s6 + $0x18] sm:$0xff]   ;;  %v2222_v50 = vld [vmem:[%s2842_s6 + $0x60] sm:$0xff]  }
  0x65   : > { %1451 = vmatprep.subr.bf16.mxu0 %v2147_v51  ;;  %v2223_v51 = vld [vmem:[%s2842_s6 + $0x20] sm:$0xff]  }
  0x67   : > { %1277 = vmatmul.mubr.bf16.vlgmr.msra.gmra.mrb[4].mxu0 %v1162_v52  ;;  %1136 = vmatpush1.bf16.msra.mxu1 %v2142_v53  ;;  %v2224_v52 = vld [vmem:[%s2842_s6 + $0x68] sm:$0xff]  }
  0x68   : > { %1452 = vmatpush1.bf16.msra.mxu0 %v2145_v54  ;;  %1137 = vmatprep.subr.bf16.mxu1 %v2150_v56  ;;  %v2225_v53 = vld [vmem:[%s2842_s6 + $0x28] sm:$0xff]   ;;  %v2226_v54 = vld [vmem:[%s2842_s6 + $0x70] sm:$0xff]   ;;  %v2228_v56 = vld [vmem:[%s2842_s6 + $0x78] sm:$0xff]  }
  0x69   : > { %1453 = vmatprep.subr.bf16.mxu0 %v2153_v57  ;;  %1483 = vmatprep.mubr.bf16.mxu0 %v1288_v55  ;;  %v2227_v55 = vld [vmem:[%s2842_s6 + $0x30] sm:$0xff]   ;;  %v2229_v57 = vld [vmem:[%s2842_s6 + $0x38] sm:$0xff]  }
  0x6b   : > { %1138 = vmatpush1.bf16.msra.mxu1 %v2148_v58 }
  0x6c   : > { %1454 = vmatpush1.bf16.msra.mxu0 %v2151_v59  ;;  %1139 = vmatprep.subr.bf16.mxu1 %v2156_v60 }
  0x6d   : > { %1455 = vmatprep.subr.bf16.mxu0 %v2159_v62 }
  0x6f   : > { %1140 = vmatpush1.bf16.msra.mxu1 %v2154_v63 }
  0x70   : > { %1456 = vmatpush1.bf16.msra.mxu0 %v2157_v0  ;;  %1141 = vmatprep.subr.bf16.mxu1 %v2162_v1 }
  0x71   : > { %1457 = vmatprep.subr.bf16.mxu0 %v2165_v3 }
  0x73   : > { %1142 = vmatpush1.bf16.msra.mxu1 %v2160_v4 }
  0x74   : > { %1458 = vmatpush1.bf16.msra.mxu0 %v2163_v5  ;;  %1143 = vmatprep.subr.bf16.mxu1 %v2168_v6 }
  0x75   : > { %1459 = vmatprep.subr.bf16.mxu0 %v2171_v7 }
  0x77   : > { %1144 = vmatpush1.bf16.msra.mxu1 %v2166_v8 }
  0x78   : > { %1460 = vmatpush1.bf16.msra.mxu0 %v2169_v9  ;;  %1145 = vmatprep.subr.bf16.mxu1 %v2174_v10 }
  0x79   : > { %1461 = vmatprep.subr.bf16.mxu0 %v2177_v11 }
  0x7b   : > { %1146 = vmatpush1.bf16.msra.mxu1 %v2172_v13  ;;  %v1497_v13 = vshrl.u32 %v1496_v12, 7 }
  0x7c   : > { %1462 = vmatpush1.bf16.msra.mxu0 %v2175_v14  ;;  %1147 = vmatprep.subr.bf16.mxu1 %v2180_v15  ;;  %v1494_v15 = vld [vmem:[%s2840_s4] sm:$0x3] }
  0x7d   : > { %1463 = vmatprep.subr.bf16.mxu0 %v2183_v49  ;;  %v1498_v14 = vsub.s32 0, %v1497_v13  ;;  %v1502_v49 = vsub.s32 1, %v1497_v13 }
  0x7f   : > { %1148 = vmatpush1.bf16.msra.mxu1 %v2178_v16  ;;  %v1499_v16 = vrot.slane %v1494_v15, %v1498_v14  ;;  %v1513_v20 = vrot.slane %v1508_v61, %v1498_v14 }
  0x80   : > { %1464 = vmatpush1.bf16.msra.mxu0 %v2181_v17  ;;  %1149 = vmatprep.subr.bf16.mxu1 %v2186_v18  ;;  %v1503_v18 = vrot.slane %v1494_v15, %v1502_v49 }
  0x81   : > { %1465 = vmatprep.subr.bf16.mxu0 %v2189_v19 }
  0x83   : > { %1150 = vmatpush1.bf16.msra.mxu1 %v2184_v22 }
  0x84   : > { %1466 = vmatpush1.bf16.msra.mxu0 %v2187_v23  ;;  %1948 = vmatprep.subr.bf16.mxu1 %v2214_v41  ;;  %v1517_v23 = vrot.slane %v1508_v61, %v1502_v49 }
  0x85   : > { %1467 = vmatprep.subr.bf16.mxu0 %v2192_v24 }
  0x86   : > { %1152 = vmatmul.mubr.bf16.vlgmr.msra.gmra.mrb[4].mxu1 %v949_v25 }
  0x87   : > { %1949 = vmatpush3.bf16.msra.mxu1 %v2215_v42 }
  0x88   : > { %1468 = vmatpush1.bf16.msra.mxu0 %v2190_v26  ;;  %1950 = vmatprep.subr.bf16.mxu1 %v2216_v43 }
  0x89   : > { %1469 = vmatprep.subr.bf16.mxu0 %v2195_v27 }
  0x8b   : > { %1951 = vmatpush3.bf16.msra.mxu1 %v2217_v44 }
  0x8c   : > { %1470 = vmatpush1.bf16.msra.mxu0 %v2193_v28  ;;  %1952 = vmatprep.subr.bf16.mxu1 %v2218_v45 }
  0x8d   : > { %1471 = vmatprep.subr.bf16.mxu0 %v2198_v29 }
  0x8f   : > { %1953 = vmatpush3.bf16.msra.mxu1 %v2219_v46 }
  0x90   : > { %1472 = vmatpush1.bf16.msra.mxu0 %v2196_v30  ;;  %1954 = vmatprep.subr.bf16.mxu1 %v2220_v47 }
  0x91   : > { %1473 = vmatprep.subr.bf16.mxu0 %v2201_v2 }
  0x93   : > { %1955 = vmatpush3.bf16.msra.mxu1 %v2221_v48 }
  0x94   : > { %1474 = vmatpush1.bf16.msra.mxu0 %v2199_v31  ;;  %1956 = vmatprep.subr.bf16.mxu1 %v2222_v50 }
  0x95   : > { %1475 = vmatprep.subr.bf16.mxu0 %v2204_v32 }
  0x97   : > { %1957 = vmatpush3.bf16.msra.mxu1 %v2223_v51 }
  0x98   : > { %1476 = vmatpush1.bf16.msra.mxu0 %v2202_v33  ;;  %1958 = vmatprep.subr.bf16.mxu1 %v2224_v52 }
  0x99   : > { %1477 = vmatprep.subr.bf16.mxu0 %v2207_v34  ;;  %v1927_v34 = vld [vmem:[%s2843_s7] ss:$0 sm:$0xff] }
  0x9b   : > { %1959 = vmatpush3.bf16.msra.mxu1 %v2225_v53 }
  0x9c   : > { %1478 = vmatpush1.bf16.msra.mxu0 %v2205_v35  ;;  %1960 = vmatprep.subr.bf16.mxu1 %v2226_v54 }
  0x9d   : > { %1479 = vmatprep.subr.bf16.mxu0 %v2210_v36 }
  0x9f   : > { %1961 = vmatpush3.bf16.msra.mxu1 %v2227_v55 }
  0xa0   : > { %1480 = vmatpush1.bf16.msra.mxu0 %v2208_v37  ;;  %1962 = vmatprep.subr.bf16.mxu1 %v2228_v56 }
  0xa1   : > { %1481 = vmatprep.subr.bf16.mxu0 %v2213_v38 }
  0xa3   : > { %1963 = vmatpush3.bf16.msra.mxu1 %v2229_v57 }
  0xa4   : > { %1482 = vmatpush1.bf16.msra.mxu0 %v2211_v39 }
  0xa7   : > { %1484 = vmatmul.mubr.bf16.vlgmr.msra.gmra.mrb[4].mxu0 %v1287_v40 }
 0x119   : > { %v674_v58 = vpop.f32.mrb[0].mxu1 }
 0x11a   : > { %v929_v59 = vpop.f32.mrb[0].mxu0  ;;  %v676_v62 = vpop.f32.mrb[1].mxu1 }
 0x11b   : > { %v1970_v60 = vadd.f32 %v929_v59, %v674_v58  ;;  %v931_v63 = vpop.f32.mrb[1].mxu0  ;;  %v678_v3 = vpop.f32.mrb[2].mxu1 }
 0x11c   : > { %v1973_v0 = vadd.f32 %v931_v63, %v676_v62  ;;  %v933_v1 = vpop.f32.mrb[2].mxu0  ;;  %v679_v5 = vpop.f32.mrb[3].mxu1 }
 0x11d   : > { %v934_v4 = vpop.f32.mrb[3].mxu0 }
 0x159   : > { %v1153_v6 = vpop.f32.mrb[4].mxu1 }
 0x15a   : > { %v1971_v7 = vadd.f32 %v1970_v60, %v1153_v6  ;;  %v1155_v8 = vpop.f32.mrb[5].mxu1 }
 0x15b   : > { %v1974_v9 = vadd.f32 %v1973_v0, %v1155_v8  ;;  %v1157_v10 = vpop.f32.mrb[6].mxu1 }
 0x15c   : > { %v1158_v11 = vpop.f32.mrb[7].mxu1 }
 0x17a   : > { %v1485_v17 = vpop.f32.mrb[4].mxu0 }
 0x17b   : > { %v1972_v19 = vadd.f32 %v1971_v7, %v1485_v17  ;;  %v1487_v21 = vpop.f32.mrb[5].mxu0 }
 0x17c   : > { %v1975_v22 = vadd.f32 %v1974_v9, %v1487_v21  ;;  %v1489_v24 = vpop.f32.mrb[6].mxu0 }
 0x17d   : > { %v1506_v25 = vmul.f32 %v1972_v19, %v1499_v16  ;;  %v1490_v26 = vpop.f32.mrb[7].mxu0 }
 0x17e   : > { %v1507_v27 = vmul.f32 %v1975_v22, %v1503_v18 }
 0x17f   : > { %v1520_v28 = vadd.f32 %v1513_v20, %v1506_v25 }
 0x180   : > { %v1521_v29 = vadd.f32 %v1517_v23, %v1507_v27 }
 0x181   : > { %v1522_v30 = vmax.f32 %v1520_v28, 0.0 }
 0x182   : > { %v1523_v2 = vmax.f32 %v1521_v29, 0.0 }
 0x183   : > { %v1524_v32 = vpack.c.bf16 %v1522_v30, %v1522_v30 }
 0x184   : > { %v1525_v31 = vpack.c.bf16 %v1523_v2, %v1523_v2 }
 0x186   : > { %1693 = vmatprep.mubr.bf16.mxu1 %v1525_v31 }
 0x187   : > { %1694 = vmatmul.mubr.bf16.vlgmr.msra.gmra.mrb[8].mxu1 %v1524_v32 }
 0x25a   : > { %v1964_v33 = vpop.f32.mrb[8].mxu1 }
 0x25b   : > { %v1965_v35 = vpop.f32.mrb[9].mxu1 }
 0x25c   : > { %v1966_v36 = vadd.f32 %v1965_v35, %v1964_v33  ;;  %v1967_v37 = vpop.f32.mrb[10].mxu1 }
 0x25d   : > { %v1968_v38 = vpop.f32.mrb[11].mxu1 }
 0x25e   : > { %v1696_v39 = vadd.f32 %v1966_v36, %v1927_v34 }
 0x260   : > { %v1701_v40 = vpack.c.bf16 %v1696_v39, %v1696_v39 }
 0x262   : > { %1702 = vst [vmem:[%s323_s26] sm:$0xf] %v1701_v40 }
 0x263 PF: > { %s18_s27 = sadd.s32 1, %s2236_s27  }
 0x264   : > { %p15_p4 = scmp.ge.s32.totalorder %s18_s27, 4  }
 0x266   :  { %17 = sbr.rel (!%p15_p4) target bundleno = 1 (0x1), region = 85 }

</bundles_post_ra>
